<compile_context>
chip_gen: v5e
topology: v5e:2x2
jax: 0.10.0
libtpu: 0.0.40
codegen_flags: <defaults>
</compile_context>

<pallas_src>
import functools

import jax
import jax.numpy as jnp
from jax import lax
from jax.experimental import pallas as pl
from jax.experimental.pallas import tpu as pltpu


def _row_col_indices(nb, hwp, W):
    """(row, col) int32 maps of shape (nb, hwp) for flat positions, avoiding integer div."""
    pos = lax.broadcasted_iota(jnp.int32, (nb, hwp), 1)
    if W & (W - 1) == 0:                      # power of two: exact shift / mask
        sh = (W - 1).bit_length()
        row = pos >> sh
        col = pos & (W - 1)
    else:
        # floor((pos + 0.5)/W) is exact for realistic feature-map sizes:
        # margin 0.5/W >> f32 rounding error of the quotient.
        rowf = jnp.floor((pos.astype(jnp.float32) + 0.5) * (1.0 / float(W)))
        row = rowf.astype(jnp.int32)
        col = pos - row * W
    return row, col


def _spatial_attention_kernel(w_ref, x_ref, o_ref, maps_scr, *, H, W, K, chunks):
    """One (Nb, C, HWp) lane-dense block per grid step.

    Args:
      w_ref:    SMEM f32[2*K*K]   conv weights (O=1, I=2 flattened); mean-channel weights
                                  are pre-scaled by 1/C in the wrapper.
      x_ref:    VMEM dtype[Nb, C, HWp]   lane-dense input block.
      o_ref:    VMEM dtype[Nb, C, HWp]   lane-dense output block.
      maps_scr: VMEM f32[2, Nb, HWp]     [0] = channel-sum map, [1] = channel-max map.
    """
    pad = K // 2
    nb = x_ref.shape[0]
    hwp = x_ref.shape[2]

    # ---- channel statistics, streamed over C chunks (bounds f32 temporaries) ----
    for idx, (c0, cs) in enumerate(chunks):
        xs = x_ref[:, c0:c0 + cs, :].astype(jnp.float32)          # (Nb, cs, HWp)
        csum = jnp.sum(xs, axis=1)
        cmax = jnp.max(xs, axis=1)
        if idx == 0:
            maps_scr[0] = csum
            maps_scr[1] = cmax
        else:
            maps_scr[0] = maps_scr[0] + csum
            maps_scr[1] = jnp.maximum(maps_scr[1], cmax)

    # ---- KxK conv (2 in-ch -> 1 out-ch, zero pad) on the flat maps via rolls + gates ----
    wv = [w_ref[i] for i in range(2 * K * K)]                     # hoist SMEM scalar reads
    row, col = _row_col_indices(nb, hwp, W)

    # Column gates are a single comparison each (the other bound always holds for valid
    # output positions); reused across all rows and both channels.
    col_gate = {}
    for dc in range(-pad, pad + 1):
        if dc < 0:
            col_gate[dc] = col >= -dc
        elif dc > 0:
            col_gate[dc] = col < (W - dc)

    maps = maps_scr[...]                                          # (2, Nb, HWp) f32
    acc = None
    for di in range(K):
        dr = di - pad
        if dr < 0:
            row_gate = row >= -dr
        elif dr > 0:
            row_gate = row < (H - dr)
        else:
            row_gate = None
        row_acc = None
        for dj in range(K):
            dc = dj - pad
            shift = (-(dr * W + dc)) % hwp
            # rolled[..., p] = maps[..., p + dr*W + dc]  (wrap handled by the gates)
            rolled = pltpu.roll(maps, shift, axis=2) if shift else maps
            t = rolled[0] * wv[di * K + dj] + rolled[1] * wv[K * K + di * K + dj]
            cg = col_gate.get(dc)
            if cg is not None:
                t = jnp.where(cg, t, 0.0)
            row_acc = t if row_acc is None else row_acc + t
        if row_gate is not None:
            row_acc = jnp.where(row_gate, row_acc, 0.0)
        acc = row_acc if acc is None else acc + row_acc

    sa = jax.nn.sigmoid(acc)                                      # (Nb, HWp) f32 (EUP)
    sa = sa.astype(o_ref.dtype)                                   # scale in I/O dtype

    # ---- y = x * sigmoid(conv), streamed over C chunks, lane-dense stores ----
    for c0, cs in chunks:
        o_ref[:, c0:c0 + cs, :] = (x_ref[:, c0:c0 + cs, :]
                                   * sa[:, None, :]).astype(o_ref.dtype)


def _vmem_capacity_bytes():
    try:
        info = pltpu.get_tpu_info()
        cap = getattr(info, "vmem_capacity_bytes", None)
        if cap:
            return int(cap)
    except Exception:
        pass
    return 64 << 20                     # conservative default (v7x-class per-core VMEM)


def spatial_attention_pallas(x, w_sa, *, batch_block=None):
    """x: [N, C, H, W] (f32/bf16); w_sa: f32[1, 2, K, K], K in (3, 7). Returns [N, C, H, W]."""
    N, C, H, W = x.shape
    K = w_sa.shape[-1]
    assert w_sa.shape[:2] == (1, 2), "spatial-attention conv must be Conv2d(2, 1, K)"
    assert K % 2 == 1, "only odd kernel sizes (3/7) match PyTorch padding=K//2"
    HW = H * W
    HWp = ((HW + 127) // 128) * 128     # lane-dense: pad flat spatial dim to a 128 multiple

    itemsize = jnp.dtype(x.dtype).itemsize
    per_n_bytes = C * HWp * itemsize

    vmem_cap = _vmem_capacity_bytes()
    if vmem_cap <= (96 << 20):          # v7x-class: 64 MiB VMEM, 2 TensorCores
        target_block = 4 << 20
        limit_cap = 56 << 20
    else:                               # v5e / v6e: 128 MiB VMEM
        target_block = 16 << 20
        limit_cap = 100 << 20

    if batch_block is None:
        # Keep >= 8 grid steps when N allows (pipelining on both v7x cores) and cap the
        # per-step block bytes per generation.
        if N >= 8:
            steps_cap = N // 8
        elif N >= 2:
            steps_cap = max(1, N // 2)
        else:
            steps_cap = 1
        nb_cap = max(1, min(steps_cap, target_block // max(per_n_bytes, 1)))
        batch_block = 1
        for d in range(1, int(nb_cap) + 1):
            if N % d == 0:
                batch_block = d
    Nb = int(batch_block)
    assert N % Nb == 0
    grid = (N // Nb,)

    # Channel-chunk plan (static): keeps per-chunk f32 temporaries <= ~4 MiB.
    cc = max(1, min(C, 16, (4 << 20) // max(Nb * HWp * 4, 1)))
    chunks = tuple((s, min(cc, C - s)) for s in range(0, C, cc))

    block_bytes = Nb * per_n_bytes
    map_bytes = Nb * HWp * 4
    vmem_need = (4 * block_bytes                 # in + out, double-buffered
                 + 2 * map_bytes                 # stat scratch
                 + 14 * map_bytes                # conv value temporaries (maps/rolls/gates/acc/sa)
                 + 3 * Nb * cc * HWp * 4         # chunk temporaries
                 + (2 << 20))
    vmem_limit = int(min(max(vmem_need, 32 << 20), limit_cap))
    if vmem_need > vmem_limit:
        vmem_limit = int(vmem_need)              # never under-provision below the estimate

    # TODO(synk): add an HW-tiled (haloed) grid axis for the case where a single batch
    # element (C*HW) alone exceeds the per-block VMEM budget.

    x_flat = x.reshape(N, C, HW)
    if HWp != HW:
        x_flat = jnp.pad(x_flat, ((0, 0), (0, 0), (0, HWp - HW)))

    w = w_sa.astype(jnp.float32).reshape(2, K, K)
    w = w.at[0].multiply(1.0 / C)                # fold channel-mean 1/C into the conv weights
    w_flat = w.reshape(-1)

    kernel = functools.partial(_spatial_attention_kernel, H=H, W=W, K=K, chunks=chunks)

    out_flat = pl.pallas_call(
        kernel,
        out_shape=jax.ShapeDtypeStruct((N, C, HWp), x.dtype),
        grid_spec=pltpu.PrefetchScalarGridSpec(
            num_scalar_prefetch=0,
            grid=grid,
            in_specs=[
                pl.BlockSpec(memory_space=pltpu.MemorySpace.SMEM),   # conv weights (scalars)
                pl.BlockSpec((Nb, C, HWp), lambda n: (n, 0, 0)),     # x, lane-dense
            ],
            out_specs=pl.BlockSpec((Nb, C, HWp), lambda n: (n, 0, 0)),
            scratch_shapes=[pltpu.VMEM((2, Nb, HWp), jnp.float32)],  # sum / max maps
        ),
        compiler_params=pltpu.CompilerParams(
            dimension_semantics=("parallel",),
            vmem_limit_bytes=vmem_limit,
        ),
    )(w_flat, x_flat)

    out = out_flat[:, :, :HW] if HWp != HW else out_flat
    return out.reshape(N, C, H, W)


def spatial_attention_reference(x, w_sa):
    """Pure-JAX reference matching the PyTorch SpatialAttention forward (NCHW)."""
    mean_map = jnp.mean(x, axis=1, keepdims=True)
    max_map = jnp.max(x, axis=1, keepdims=True)
    cat = jnp.concatenate([mean_map, max_map], axis=1)               # (N, 2, H, W)
    conv = lax.conv_general_dilated(cat, w_sa, window_strides=(1, 1), padding="SAME",
                                    dimension_numbers=("NCHW", "OIHW", "NCHW"))
    return x * jax.nn.sigmoid(conv)


if __name__ == "__main__":
    N, C, H, W = 2, 4, 16, 16
    K = 7

    key = jax.random.PRNGKey(0)
    kx, kw = jax.random.split(key, 2)

    x = jax.random.normal(kx, (N, C, H, W), dtype=jnp.float32)
    # SpatialAttention.cv1: Conv2d(2, 1, 7, padding=3, bias=False) -> weight (1, 2, 7, 7)
    w_sa = jax.random.normal(kw, (1, 2, K, K), dtype=jnp.float32) * 0.1

    out = jax.block_until_ready(spatial_attention_pallas(x, w_sa))
    ref = jax.block_until_ready(spatial_attention_reference(x, w_sa))

    assert out.shape == (N, C, H, W)
    assert jnp.allclose(out, ref, atol=1e-4, rtol=1e-4), "mismatch vs reference"

    print("KERNEL_OK")
</pallas_src>

<mosaic_0001>
module attributes {stable_mosaic.version = 11 : i64} {
  func.func @_spatial_attention_kernel(%arg0: i32, %arg1: memref<98xf32, #tpu.memory_space<smem>>, %arg2: memref<1x4x256xf32, #tpu.memory_space<vmem>>, %arg3: memref<1x4x256xf32, #tpu.memory_space<vmem>>, %arg4: memref<2x1x256xf32, #tpu.memory_space<vmem>>) attributes {dimension_semantics = [#tpu.dimension_semantics<parallel>], iteration_bounds = array<i64: 2>, scalar_prefetch = 0 : i64, scratch_operands = 1 : i64, tpu.core_type = #tpu.core_type<tc>, window_params = [{transform_indices = @transform_0, window_bounds = array<i64: 98>}, {transform_indices = @transform_1, window_bounds = array<i64: 1, 4, 256>}, {transform_indices = @transform_2, window_bounds = array<i64: 1, 4, 256>}]} {
    %c0 = arith.constant 0 : index
    %c0_0 = arith.constant 0 : index
    %c0_1 = arith.constant 0 : index
    %0 = vector.load %arg2[%c0, %c0_0, %c0_1] : memref<1x4x256xf32, #tpu.memory_space<vmem>>, vector<1x4x256xf32>
    %cst = arith.constant dense<0.000000e+00> : vector<1x256xf32>
    %1 = vector.multi_reduction <add>, %0, %cst [1] : vector<1x4x256xf32> to vector<1x256xf32>
    %cst_2 = arith.constant dense<0xFF800000> : vector<1x256xf32>
    %2 = vector.multi_reduction <maximumf>, %0, %cst_2 [1] : vector<1x4x256xf32> to vector<1x256xf32>
    %c0_3 = arith.constant 0 : index
    %c0_4 = arith.constant 0 : index
    %c0_5 = arith.constant 0 : index
    %3 = vector.load %arg4[%c0_3, %c0_4, %c0_5] : memref<2x1x256xf32, #tpu.memory_space<vmem>>, vector<1x1x256xf32>
    %4 = vector.shape_cast %3 : vector<1x1x256xf32> to vector<1x256xf32>
    %5 = vector.shape_cast %1 : vector<1x256xf32> to vector<1x1x256xf32>
    tpu.vector_store %arg4[%c0_3, %c0_4, %c0_5], %5 {strides = array<i32>} : memref<2x1x256xf32, #tpu.memory_space<vmem>>, vector<1x1x256xf32>,
    %c1 = arith.constant 1 : index
    %c0_6 = arith.constant 0 : index
    %c0_7 = arith.constant 0 : index
    %6 = vector.load %arg4[%c1, %c0_6, %c0_7] : memref<2x1x256xf32, #tpu.memory_space<vmem>>, vector<1x1x256xf32>
    %7 = vector.shape_cast %6 : vector<1x1x256xf32> to vector<1x256xf32>
    %8 = vector.shape_cast %2 : vector<1x256xf32> to vector<1x1x256xf32>
    tpu.vector_store %arg4[%c1, %c0_6, %c0_7], %8 {strides = array<i32>} : memref<2x1x256xf32, #tpu.memory_space<vmem>>, vector<1x1x256xf32>,
    %c0_8 = arith.constant 0 : index
    %9 = memref.load %arg1[%c0_8] : memref<98xf32, #tpu.memory_space<smem>>
    %c1_9 = arith.constant 1 : index
    %10 = memref.load %arg1[%c1_9] : memref<98xf32, #tpu.memory_space<smem>>
    %c2 = arith.constant 2 : index
    %11 = memref.load %arg1[%c2] : memref<98xf32, #tpu.memory_space<smem>>
    %c3 = arith.constant 3 : index
    %12 = memref.load %arg1[%c3] : memref<98xf32, #tpu.memory_space<smem>>
    %c4 = arith.constant 4 : index
    %13 = memref.load %arg1[%c4] : memref<98xf32, #tpu.memory_space<smem>>
    %c5 = arith.constant 5 : index
    %14 = memref.load %arg1[%c5] : memref<98xf32, #tpu.memory_space<smem>>
    %c6 = arith.constant 6 : index
    %15 = memref.load %arg1[%c6] : memref<98xf32, #tpu.memory_space<smem>>
    %c7 = arith.constant 7 : index
    %16 = memref.load %arg1[%c7] : memref<98xf32, #tpu.memory_space<smem>>
    %c8 = arith.constant 8 : index
    %17 = memref.load %arg1[%c8] : memref<98xf32, #tpu.memory_space<smem>>
    %c9 = arith.constant 9 : index
    %18 = memref.load %arg1[%c9] : memref<98xf32, #tpu.memory_space<smem>>
    %c10 = arith.constant 10 : index
    %19 = memref.load %arg1[%c10] : memref<98xf32, #tpu.memory_space<smem>>
    %c11 = arith.constant 11 : index
    %20 = memref.load %arg1[%c11] : memref<98xf32, #tpu.memory_space<smem>>
    %c12 = arith.constant 12 : index
    %21 = memref.load %arg1[%c12] : memref<98xf32, #tpu.memory_space<smem>>
    %c13 = arith.constant 13 : index
    %22 = memref.load %arg1[%c13] : memref<98xf32, #tpu.memory_space<smem>>
    %c14 = arith.constant 14 : index
    %23 = memref.load %arg1[%c14] : memref<98xf32, #tpu.memory_space<smem>>
    %c15 = arith.constant 15 : index
    %24 = memref.load %arg1[%c15] : memref<98xf32, #tpu.memory_space<smem>>
    %c16 = arith.constant 16 : index
    %25 = memref.load %arg1[%c16] : memref<98xf32, #tpu.memory_space<smem>>
    %c17 = arith.constant 17 : index
    %26 = memref.load %arg1[%c17] : memref<98xf32, #tpu.memory_space<smem>>
    %c18 = arith.constant 18 : index
    %27 = memref.load %arg1[%c18] : memref<98xf32, #tpu.memory_space<smem>>
    %c19 = arith.constant 19 : index
    %28 = memref.load %arg1[%c19] : memref<98xf32, #tpu.memory_space<smem>>
    %c20 = arith.constant 20 : index
    %29 = memref.load %arg1[%c20] : memref<98xf32, #tpu.memory_space<smem>>
    %c21 = arith.constant 21 : index
    %30 = memref.load %arg1[%c21] : memref<98xf32, #tpu.memory_space<smem>>
    %c22 = arith.constant 22 : index
    %31 = memref.load %arg1[%c22] : memref<98xf32, #tpu.memory_space<smem>>
    %c23 = arith.constant 23 : index
    %32 = memref.load %arg1[%c23] : memref<98xf32, #tpu.memory_space<smem>>
    %c24 = arith.constant 24 : index
    %33 = memref.load %arg1[%c24] : memref<98xf32, #tpu.memory_space<smem>>
    %c25 = arith.constant 25 : index
    %34 = memref.load %arg1[%c25] : memref<98xf32, #tpu.memory_space<smem>>
    %c26 = arith.constant 26 : index
    %35 = memref.load %arg1[%c26] : memref<98xf32, #tpu.memory_space<smem>>
    %c27 = arith.constant 27 : index
    %36 = memref.load %arg1[%c27] : memref<98xf32, #tpu.memory_space<smem>>
    %c28 = arith.constant 28 : index
    %37 = memref.load %arg1[%c28] : memref<98xf32, #tpu.memory_space<smem>>
    %c29 = arith.constant 29 : index
    %38 = memref.load %arg1[%c29] : memref<98xf32, #tpu.memory_space<smem>>
    %c30 = arith.constant 30 : index
    %39 = memref.load %arg1[%c30] : memref<98xf32, #tpu.memory_space<smem>>
    %c31 = arith.constant 31 : index
    %40 = memref.load %arg1[%c31] : memref<98xf32, #tpu.memory_space<smem>>
    %c32 = arith.constant 32 : index
    %41 = memref.load %arg1[%c32] : memref<98xf32, #tpu.memory_space<smem>>
    %c33 = arith.constant 33 : index
    %42 = memref.load %arg1[%c33] : memref<98xf32, #tpu.memory_space<smem>>
    %c34 = arith.constant 34 : index
    %43 = memref.load %arg1[%c34] : memref<98xf32, #tpu.memory_space<smem>>
    %c35 = arith.constant 35 : index
    %44 = memref.load %arg1[%c35] : memref<98xf32, #tpu.memory_space<smem>>
    %c36 = arith.constant 36 : index
    %45 = memref.load %arg1[%c36] : memref<98xf32, #tpu.memory_space<smem>>
    %c37 = arith.constant 37 : index
    %46 = memref.load %arg1[%c37] : memref<98xf32, #tpu.memory_space<smem>>
    %c38 = arith.constant 38 : index
    %47 = memref.load %arg1[%c38] : memref<98xf32, #tpu.memory_space<smem>>
    %c39 = arith.constant 39 : index
    %48 = memref.load %arg1[%c39] : memref<98xf32, #tpu.memory_space<smem>>
    %c40 = arith.constant 40 : index
    %49 = memref.load %arg1[%c40] : memref<98xf32, #tpu.memory_space<smem>>
    %c41 = arith.constant 41 : index
    %50 = memref.load %arg1[%c41] : memref<98xf32, #tpu.memory_space<smem>>
    %c42 = arith.constant 42 : index
    %51 = memref.load %arg1[%c42] : memref<98xf32, #tpu.memory_space<smem>>
    %c43 = arith.constant 43 : index
    %52 = memref.load %arg1[%c43] : memref<98xf32, #tpu.memory_space<smem>>
    %c44 = arith.constant 44 : index
    %53 = memref.load %arg1[%c44] : memref<98xf32, #tpu.memory_space<smem>>
    %c45 = arith.constant 45 : index
    %54 = memref.load %arg1[%c45] : memref<98xf32, #tpu.memory_space<smem>>
    %c46 = arith.constant 46 : index
    %55 = memref.load %arg1[%c46] : memref<98xf32, #tpu.memory_space<smem>>
    %c47 = arith.constant 47 : index
    %56 = memref.load %arg1[%c47] : memref<98xf32, #tpu.memory_space<smem>>
    %c48 = arith.constant 48 : index
    %57 = memref.load %arg1[%c48] : memref<98xf32, #tpu.memory_space<smem>>
    %c49 = arith.constant 49 : index
    %58 = memref.load %arg1[%c49] : memref<98xf32, #tpu.memory_space<smem>>
    %c50 = arith.constant 50 : index
    %59 = memref.load %arg1[%c50] : memref<98xf32, #tpu.memory_space<smem>>
    %c51 = arith.constant 51 : index
    %60 = memref.load %arg1[%c51] : memref<98xf32, #tpu.memory_space<smem>>
    %c52 = arith.constant 52 : index
    %61 = memref.load %arg1[%c52] : memref<98xf32, #tpu.memory_space<smem>>
    %c53 = arith.constant 53 : index
    %62 = memref.load %arg1[%c53] : memref<98xf32, #tpu.memory_space<smem>>
    %c54 = arith.constant 54 : index
    %63 = memref.load %arg1[%c54] : memref<98xf32, #tpu.memory_space<smem>>
    %c55 = arith.constant 55 : index
    %64 = memref.load %arg1[%c55] : memref<98xf32, #tpu.memory_space<smem>>
    %c56 = arith.constant 56 : index
    %65 = memref.load %arg1[%c56] : memref<98xf32, #tpu.memory_space<smem>>
    %c57 = arith.constant 57 : index
    %66 = memref.load %arg1[%c57] : memref<98xf32, #tpu.memory_space<smem>>
    %c58 = arith.constant 58 : index
    %67 = memref.load %arg1[%c58] : memref<98xf32, #tpu.memory_space<smem>>
    %c59 = arith.constant 59 : index
    %68 = memref.load %arg1[%c59] : memref<98xf32, #tpu.memory_space<smem>>
    %c60 = arith.constant 60 : index
    %69 = memref.load %arg1[%c60] : memref<98xf32, #tpu.memory_space<smem>>
    %c61 = arith.constant 61 : index
    %70 = memref.load %arg1[%c61] : memref<98xf32, #tpu.memory_space<smem>>
    %c62 = arith.constant 62 : index
    %71 = memref.load %arg1[%c62] : memref<98xf32, #tpu.memory_space<smem>>
    %c63 = arith.constant 63 : index
    %72 = memref.load %arg1[%c63] : memref<98xf32, #tpu.memory_space<smem>>
    %c64 = arith.constant 64 : index
    %73 = memref.load %arg1[%c64] : memref<98xf32, #tpu.memory_space<smem>>
    %c65 = arith.constant 65 : index
    %74 = memref.load %arg1[%c65] : memref<98xf32, #tpu.memory_space<smem>>
    %c66 = arith.constant 66 : index
    %75 = memref.load %arg1[%c66] : memref<98xf32, #tpu.memory_space<smem>>
    %c67 = arith.constant 67 : index
    %76 = memref.load %arg1[%c67] : memref<98xf32, #tpu.memory_space<smem>>
    %c68 = arith.constant 68 : index
    %77 = memref.load %arg1[%c68] : memref<98xf32, #tpu.memory_space<smem>>
    %c69 = arith.constant 69 : index
    %78 = memref.load %arg1[%c69] : memref<98xf32, #tpu.memory_space<smem>>
    %c70 = arith.constant 70 : index
    %79 = memref.load %arg1[%c70] : memref<98xf32, #tpu.memory_space<smem>>
    %c71 = arith.constant 71 : index
    %80 = memref.load %arg1[%c71] : memref<98xf32, #tpu.memory_space<smem>>
    %c72 = arith.constant 72 : index
    %81 = memref.load %arg1[%c72] : memref<98xf32, #tpu.memory_space<smem>>
    %c73 = arith.constant 73 : index
    %82 = memref.load %arg1[%c73] : memref<98xf32, #tpu.memory_space<smem>>
    %c74 = arith.constant 74 : index
    %83 = memref.load %arg1[%c74] : memref<98xf32, #tpu.memory_space<smem>>
    %c75 = arith.constant 75 : index
    %84 = memref.load %arg1[%c75] : memref<98xf32, #tpu.memory_space<smem>>
    %c76 = arith.constant 76 : index
    %85 = memref.load %arg1[%c76] : memref<98xf32, #tpu.memory_space<smem>>
    %c77 = arith.constant 77 : index
    %86 = memref.load %arg1[%c77] : memref<98xf32, #tpu.memory_space<smem>>
    %c78 = arith.constant 78 : index
    %87 = memref.load %arg1[%c78] : memref<98xf32, #tpu.memory_space<smem>>
    %c79 = arith.constant 79 : index
    %88 = memref.load %arg1[%c79] : memref<98xf32, #tpu.memory_space<smem>>
    %c80 = arith.constant 80 : index
    %89 = memref.load %arg1[%c80] : memref<98xf32, #tpu.memory_space<smem>>
    %c81 = arith.constant 81 : index
    %90 = memref.load %arg1[%c81] : memref<98xf32, #tpu.memory_space<smem>>
    %c82 = arith.constant 82 : index
    %91 = memref.load %arg1[%c82] : memref<98xf32, #tpu.memory_space<smem>>
    %c83 = arith.constant 83 : index
    %92 = memref.load %arg1[%c83] : memref<98xf32, #tpu.memory_space<smem>>
    %c84 = arith.constant 84 : index
    %93 = memref.load %arg1[%c84] : memref<98xf32, #tpu.memory_space<smem>>
    %c85 = arith.constant 85 : index
    %94 = memref.load %arg1[%c85] : memref<98xf32, #tpu.memory_space<smem>>
    %c86 = arith.constant 86 : index
    %95 = memref.load %arg1[%c86] : memref<98xf32, #tpu.memory_space<smem>>
    %c87 = arith.constant 87 : index
    %96 = memref.load %arg1[%c87] : memref<98xf32, #tpu.memory_space<smem>>
    %c88 = arith.constant 88 : index
    %97 = memref.load %arg1[%c88] : memref<98xf32, #tpu.memory_space<smem>>
    %c89 = arith.constant 89 : index
    %98 = memref.load %arg1[%c89] : memref<98xf32, #tpu.memory_space<smem>>
    %c90 = arith.constant 90 : index
    %99 = memref.load %arg1[%c90] : memref<98xf32, #tpu.memory_space<smem>>
    %c91 = arith.constant 91 : index
    %100 = memref.load %arg1[%c91] : memref<98xf32, #tpu.memory_space<smem>>
    %c92 = arith.constant 92 : index
    %101 = memref.load %arg1[%c92] : memref<98xf32, #tpu.memory_space<smem>>
    %c93 = arith.constant 93 : index
    %102 = memref.load %arg1[%c93] : memref<98xf32, #tpu.memory_space<smem>>
    %c94 = arith.constant 94 : index
    %103 = memref.load %arg1[%c94] : memref<98xf32, #tpu.memory_space<smem>>
    %c95 = arith.constant 95 : index
    %104 = memref.load %arg1[%c95] : memref<98xf32, #tpu.memory_space<smem>>
    %c96 = arith.constant 96 : index
    %105 = memref.load %arg1[%c96] : memref<98xf32, #tpu.memory_space<smem>>
    %c97 = arith.constant 97 : index
    %106 = memref.load %arg1[%c97] : memref<98xf32, #tpu.memory_space<smem>>
    %107 = tpu.iota {dimensions = array<i32: 1>} : vector<1x256xi32>
    %c4_i32 = arith.constant 4 : i32
    %108 = vector.broadcast %c4_i32 : i32 to vector<1x256xi32>
    %109 = arith.shrsi %107, %108 : vector<1x256xi32>
    %c15_i32 = arith.constant 15 : i32
    %110 = vector.broadcast %c15_i32 : i32 to vector<1x256xi32>
    %111 = arith.andi %107, %110 : vector<1x256xi32>
    %c3_i32 = arith.constant 3 : i32
    %112 = vector.broadcast %c3_i32 : i32 to vector<1x256xi32>
    %113 = arith.cmpi sge, %111, %112 : vector<1x256xi32>
    %c2_i32 = arith.constant 2 : i32
    %114 = vector.broadcast %c2_i32 : i32 to vector<1x256xi32>
    %115 = arith.cmpi sge, %111, %114 : vector<1x256xi32>
    %c1_i32 = arith.constant 1 : i32
    %116 = vector.broadcast %c1_i32 : i32 to vector<1x256xi32>
    %117 = arith.cmpi sge, %111, %116 : vector<1x256xi32>
    %c15_i32_10 = arith.constant 15 : i32
    %118 = vector.broadcast %c15_i32_10 : i32 to vector<1x256xi32>
    %119 = arith.cmpi slt, %111, %118 : vector<1x256xi32>
    %c14_i32 = arith.constant 14 : i32
    %120 = vector.broadcast %c14_i32 : i32 to vector<1x256xi32>
    %121 = arith.cmpi slt, %111, %120 : vector<1x256xi32>
    %c13_i32 = arith.constant 13 : i32
    %122 = vector.broadcast %c13_i32 : i32 to vector<1x256xi32>
    %123 = arith.cmpi slt, %111, %122 : vector<1x256xi32>
    %c0_11 = arith.constant 0 : index
    %c0_12 = arith.constant 0 : index
    %c0_13 = arith.constant 0 : index
    %124 = vector.load %arg4[%c0_11, %c0_12, %c0_13] : memref<2x1x256xf32, #tpu.memory_space<vmem>>, vector<2x1x256xf32>
    %c3_i32_14 = arith.constant 3 : i32
    %125 = vector.broadcast %c3_i32_14 : i32 to vector<1x256xi32>
    %126 = arith.cmpi sge, %109, %125 : vector<1x256xi32>
    %c51_i32 = arith.constant 51 : i32
    %127 = tpu.dynamic_rotate %124 by %c51_i32 dim 2 : vector<2x1x256xf32>, i32 -> vector<2x1x256xf32>
    %128 = vector.extract_strided_slice %127 {offsets = [0, 0, 0], sizes = [1, 1, 256], strides = [1, 1, 1]} : vector<2x1x256xf32> to vector<1x1x256xf32>
    %129 = vector.shape_cast %128 : vector<1x1x256xf32> to vector<1x256xf32>
    %130 = vector.broadcast %9 : f32 to vector<1x256xf32>
    %131 = arith.mulf %129, %130 : vector<1x256xf32>
    %132 = vector.extract_strided_slice %127 {offsets = [1, 0, 0], sizes = [1, 1, 256], strides = [1, 1, 1]} : vector<2x1x256xf32> to vector<1x1x256xf32>
    %133 = vector.shape_cast %132 : vector<1x1x256xf32> to vector<1x256xf32>
    %134 = vector.broadcast %58 : f32 to vector<1x256xf32>
    %135 = arith.mulf %133, %134 : vector<1x256xf32>
    %136 = arith.addf %131, %135 : vector<1x256xf32>
    %cst_15 = arith.constant 0.000000e+00 : f32
    %137 = vector.broadcast %cst_15 : f32 to vector<1x256xf32>
    %138 = arith.select %113, %136, %137 : vector<1x256xi1>, vector<1x256xf32>
    %c50_i32 = arith.constant 50 : i32
    %139 = tpu.dynamic_rotate %124 by %c50_i32 dim 2 : vector<2x1x256xf32>, i32 -> vector<2x1x256xf32>
    %140 = vector.extract_strided_slice %139 {offsets = [0, 0, 0], sizes = [1, 1, 256], strides = [1, 1, 1]} : vector<2x1x256xf32> to vector<1x1x256xf32>
    %141 = vector.shape_cast %140 : vector<1x1x256xf32> to vector<1x256xf32>
    %142 = vector.broadcast %10 : f32 to vector<1x256xf32>
    %143 = arith.mulf %141, %142 : vector<1x256xf32>
    %144 = vector.extract_strided_slice %139 {offsets = [1, 0, 0], sizes = [1, 1, 256], strides = [1, 1, 1]} : vector<2x1x256xf32> to vector<1x1x256xf32>
    %145 = vector.shape_cast %144 : vector<1x1x256xf32> to vector<1x256xf32>
    %146 = vector.broadcast %59 : f32 to vector<1x256xf32>
    %147 = arith.mulf %145, %146 : vector<1x256xf32>
    %148 = arith.addf %143, %147 : vector<1x256xf32>
    %cst_16 = arith.constant 0.000000e+00 : f32
    %149 = vector.broadcast %cst_16 : f32 to vector<1x256xf32>
    %150 = arith.select %115, %148, %149 : vector<1x256xi1>, vector<1x256xf32>
    %151 = arith.addf %138, %150 : vector<1x256xf32>
    %c49_i32 = arith.constant 49 : i32
    %152 = tpu.dynamic_rotate %124 by %c49_i32 dim 2 : vector<2x1x256xf32>, i32 -> vector<2x1x256xf32>
    %153 = vector.extract_strided_slice %152 {offsets = [0, 0, 0], sizes = [1, 1, 256], strides = [1, 1, 1]} : vector<2x1x256xf32> to vector<1x1x256xf32>
    %154 = vector.shape_cast %153 : vector<1x1x256xf32> to vector<1x256xf32>
    %155 = vector.broadcast %11 : f32 to vector<1x256xf32>
    %156 = arith.mulf %154, %155 : vector<1x256xf32>
    %157 = vector.extract_strided_slice %152 {offsets = [1, 0, 0], sizes = [1, 1, 256], strides = [1, 1, 1]} : vector<2x1x256xf32> to vector<1x1x256xf32>
    %158 = vector.shape_cast %157 : vector<1x1x256xf32> to vector<1x256xf32>
    %159 = vector.broadcast %60 : f32 to vector<1x256xf32>
    %160 = arith.mulf %158, %159 : vector<1x256xf32>
    %161 = arith.addf %156, %160 : vector<1x256xf32>
    %cst_17 = arith.constant 0.000000e+00 : f32
    %162 = vector.broadcast %cst_17 : f32 to vector<1x256xf32>
    %163 = arith.select %117, %161, %162 : vector<1x256xi1>, vector<1x256xf32>
    %164 = arith.addf %151, %163 : vector<1x256xf32>
    %c48_i32 = arith.constant 48 : i32
    %165 = tpu.dynamic_rotate %124 by %c48_i32 dim 2 : vector<2x1x256xf32>, i32 -> vector<2x1x256xf32>
    %166 = vector.extract_strided_slice %165 {offsets = [0, 0, 0], sizes = [1, 1, 256], strides = [1, 1, 1]} : vector<2x1x256xf32> to vector<1x1x256xf32>
    %167 = vector.shape_cast %166 : vector<1x1x256xf32> to vector<1x256xf32>
    %168 = vector.broadcast %12 : f32 to vector<1x256xf32>
    %169 = arith.mulf %167, %168 : vector<1x256xf32>
    %170 = vector.extract_strided_slice %165 {offsets = [1, 0, 0], sizes = [1, 1, 256], strides = [1, 1, 1]} : vector<2x1x256xf32> to vector<1x1x256xf32>
    %171 = vector.shape_cast %170 : vector<1x1x256xf32> to vector<1x256xf32>
    %172 = vector.broadcast %61 : f32 to vector<1x256xf32>
    %173 = arith.mulf %171, %172 : vector<1x256xf32>
    %174 = arith.addf %169, %173 : vector<1x256xf32>
    %175 = arith.addf %164, %174 : vector<1x256xf32>
    %c47_i32 = arith.constant 47 : i32
    %176 = tpu.dynamic_rotate %124 by %c47_i32 dim 2 : vector<2x1x256xf32>, i32 -> vector<2x1x256xf32>
    %177 = vector.extract_strided_slice %176 {offsets = [0, 0, 0], sizes = [1, 1, 256], strides = [1, 1, 1]} : vector<2x1x256xf32> to vector<1x1x256xf32>
    %178 = vector.shape_cast %177 : vector<1x1x256xf32> to vector<1x256xf32>
    %179 = vector.broadcast %13 : f32 to vector<1x256xf32>
    %180 = arith.mulf %178, %179 : vector<1x256xf32>
    %181 = vector.extract_strided_slice %176 {offsets = [1, 0, 0], sizes = [1, 1, 256], strides = [1, 1, 1]} : vector<2x1x256xf32> to vector<1x1x256xf32>
    %182 = vector.shape_cast %181 : vector<1x1x256xf32> to vector<1x256xf32>
    %183 = vector.broadcast %62 : f32 to vector<1x256xf32>
    %184 = arith.mulf %182, %183 : vector<1x256xf32>
    %185 = arith.addf %180, %184 : vector<1x256xf32>
    %cst_18 = arith.constant 0.000000e+00 : f32
    %186 = vector.broadcast %cst_18 : f32 to vector<1x256xf32>
    %187 = arith.select %119, %185, %186 : vector<1x256xi1>, vector<1x256xf32>
    %188 = arith.addf %175, %187 : vector<1x256xf32>
    %c46_i32 = arith.constant 46 : i32
    %189 = tpu.dynamic_rotate %124 by %c46_i32 dim 2 : vector<2x1x256xf32>, i32 -> vector<2x1x256xf32>
    %190 = vector.extract_strided_slice %189 {offsets = [0, 0, 0], sizes = [1, 1, 256], strides = [1, 1, 1]} : vector<2x1x256xf32> to vector<1x1x256xf32>
    %191 = vector.shape_cast %190 : vector<1x1x256xf32> to vector<1x256xf32>
    %192 = vector.broadcast %14 : f32 to vector<1x256xf32>
    %193 = arith.mulf %191, %192 : vector<1x256xf32>
    %194 = vector.extract_strided_slice %189 {offsets = [1, 0, 0], sizes = [1, 1, 256], strides = [1, 1, 1]} : vector<2x1x256xf32> to vector<1x1x256xf32>
    %195 = vector.shape_cast %194 : vector<1x1x256xf32> to vector<1x256xf32>
    %196 = vector.broadcast %63 : f32 to vector<1x256xf32>
    %197 = arith.mulf %195, %196 : vector<1x256xf32>
    %198 = arith.addf %193, %197 : vector<1x256xf32>
    %cst_19 = arith.constant 0.000000e+00 : f32
    %199 = vector.broadcast %cst_19 : f32 to vector<1x256xf32>
    %200 = arith.select %121, %198, %199 : vector<1x256xi1>, vector<1x256xf32>
    %201 = arith.addf %188, %200 : vector<1x256xf32>
    %c45_i32 = arith.constant 45 : i32
    %202 = tpu.dynamic_rotate %124 by %c45_i32 dim 2 : vector<2x1x256xf32>, i32 -> vector<2x1x256xf32>
    %203 = vector.extract_strided_slice %202 {offsets = [0, 0, 0], sizes = [1, 1, 256], strides = [1, 1, 1]} : vector<2x1x256xf32> to vector<1x1x256xf32>
    %204 = vector.shape_cast %203 : vector<1x1x256xf32> to vector<1x256xf32>
    %205 = vector.broadcast %15 : f32 to vector<1x256xf32>
    %206 = arith.mulf %204, %205 : vector<1x256xf32>
    %207 = vector.extract_strided_slice %202 {offsets = [1, 0, 0], sizes = [1, 1, 256], strides = [1, 1, 1]} : vector<2x1x256xf32> to vector<1x1x256xf32>
    %208 = vector.shape_cast %207 : vector<1x1x256xf32> to vector<1x256xf32>
    %209 = vector.broadcast %64 : f32 to vector<1x256xf32>
    %210 = arith.mulf %208, %209 : vector<1x256xf32>
    %211 = arith.addf %206, %210 : vector<1x256xf32>
    %cst_20 = arith.constant 0.000000e+00 : f32
    %212 = vector.broadcast %cst_20 : f32 to vector<1x256xf32>
    %213 = arith.select %123, %211, %212 : vector<1x256xi1>, vector<1x256xf32>
    %214 = arith.addf %201, %213 : vector<1x256xf32>
    %cst_21 = arith.constant 0.000000e+00 : f32
    %215 = vector.broadcast %cst_21 : f32 to vector<1x256xf32>
    %216 = arith.select %126, %214, %215 : vector<1x256xi1>, vector<1x256xf32>
    %c2_i32_22 = arith.constant 2 : i32
    %217 = vector.broadcast %c2_i32_22 : i32 to vector<1x256xi32>
    %218 = arith.cmpi sge, %109, %217 : vector<1x256xi32>
    %c35_i32 = arith.constant 35 : i32
    %219 = tpu.dynamic_rotate %124 by %c35_i32 dim 2 : vector<2x1x256xf32>, i32 -> vector<2x1x256xf32>
    %220 = vector.extract_strided_slice %219 {offsets = [0, 0, 0], sizes = [1, 1, 256], strides = [1, 1, 1]} : vector<2x1x256xf32> to vector<1x1x256xf32>
    %221 = vector.shape_cast %220 : vector<1x1x256xf32> to vector<1x256xf32>
    %222 = vector.broadcast %16 : f32 to vector<1x256xf32>
    %223 = arith.mulf %221, %222 : vector<1x256xf32>
    %224 = vector.extract_strided_slice %219 {offsets = [1, 0, 0], sizes = [1, 1, 256], strides = [1, 1, 1]} : vector<2x1x256xf32> to vector<1x1x256xf32>
    %225 = vector.shape_cast %224 : vector<1x1x256xf32> to vector<1x256xf32>
    %226 = vector.broadcast %65 : f32 to vector<1x256xf32>
    %227 = arith.mulf %225, %226 : vector<1x256xf32>
    %228 = arith.addf %223, %227 : vector<1x256xf32>
    %cst_23 = arith.constant 0.000000e+00 : f32
    %229 = vector.broadcast %cst_23 : f32 to vector<1x256xf32>
    %230 = arith.select %113, %228, %229 : vector<1x256xi1>, vector<1x256xf32>
    %c34_i32 = arith.constant 34 : i32
    %231 = tpu.dynamic_rotate %124 by %c34_i32 dim 2 : vector<2x1x256xf32>, i32 -> vector<2x1x256xf32>
    %232 = vector.extract_strided_slice %231 {offsets = [0, 0, 0], sizes = [1, 1, 256], strides = [1, 1, 1]} : vector<2x1x256xf32> to vector<1x1x256xf32>
    %233 = vector.shape_cast %232 : vector<1x1x256xf32> to vector<1x256xf32>
    %234 = vector.broadcast %17 : f32 to vector<1x256xf32>
    %235 = arith.mulf %233, %234 : vector<1x256xf32>
    %236 = vector.extract_strided_slice %231 {offsets = [1, 0, 0], sizes = [1, 1, 256], strides = [1, 1, 1]} : vector<2x1x256xf32> to vector<1x1x256xf32>
    %237 = vector.shape_cast %236 : vector<1x1x256xf32> to vector<1x256xf32>
    %238 = vector.broadcast %66 : f32 to vector<1x256xf32>
    %239 = arith.mulf %237, %238 : vector<1x256xf32>
    %240 = arith.addf %235, %239 : vector<1x256xf32>
    %cst_24 = arith.constant 0.000000e+00 : f32
    %241 = vector.broadcast %cst_24 : f32 to vector<1x256xf32>
    %242 = arith.select %115, %240, %241 : vector<1x256xi1>, vector<1x256xf32>
    %243 = arith.addf %230, %242 : vector<1x256xf32>
    %c33_i32 = arith.constant 33 : i32
    %244 = tpu.dynamic_rotate %124 by %c33_i32 dim 2 : vector<2x1x256xf32>, i32 -> vector<2x1x256xf32>
    %245 = vector.extract_strided_slice %244 {offsets = [0, 0, 0], sizes = [1, 1, 256], strides = [1, 1, 1]} : vector<2x1x256xf32> to vector<1x1x256xf32>
    %246 = vector.shape_cast %245 : vector<1x1x256xf32> to vector<1x256xf32>
    %247 = vector.broadcast %18 : f32 to vector<1x256xf32>
    %248 = arith.mulf %246, %247 : vector<1x256xf32>
    %249 = vector.extract_strided_slice %244 {offsets = [1, 0, 0], sizes = [1, 1, 256], strides = [1, 1, 1]} : vector<2x1x256xf32> to vector<1x1x256xf32>
    %250 = vector.shape_cast %249 : vector<1x1x256xf32> to vector<1x256xf32>
    %251 = vector.broadcast %67 : f32 to vector<1x256xf32>
    %252 = arith.mulf %250, %251 : vector<1x256xf32>
    %253 = arith.addf %248, %252 : vector<1x256xf32>
    %cst_25 = arith.constant 0.000000e+00 : f32
    %254 = vector.broadcast %cst_25 : f32 to vector<1x256xf32>
    %255 = arith.select %117, %253, %254 : vector<1x256xi1>, vector<1x256xf32>
    %256 = arith.addf %243, %255 : vector<1x256xf32>
    %c32_i32 = arith.constant 32 : i32
    %257 = tpu.dynamic_rotate %124 by %c32_i32 dim 2 : vector<2x1x256xf32>, i32 -> vector<2x1x256xf32>
    %258 = vector.extract_strided_slice %257 {offsets = [0, 0, 0], sizes = [1, 1, 256], strides = [1, 1, 1]} : vector<2x1x256xf32> to vector<1x1x256xf32>
    %259 = vector.shape_cast %258 : vector<1x1x256xf32> to vector<1x256xf32>
    %260 = vector.broadcast %19 : f32 to vector<1x256xf32>
    %261 = arith.mulf %259, %260 : vector<1x256xf32>
    %262 = vector.extract_strided_slice %257 {offsets = [1, 0, 0], sizes = [1, 1, 256], strides = [1, 1, 1]} : vector<2x1x256xf32> to vector<1x1x256xf32>
    %263 = vector.shape_cast %262 : vector<1x1x256xf32> to vector<1x256xf32>
    %264 = vector.broadcast %68 : f32 to vector<1x256xf32>
    %265 = arith.mulf %263, %264 : vector<1x256xf32>
    %266 = arith.addf %261, %265 : vector<1x256xf32>
    %267 = arith.addf %256, %266 : vector<1x256xf32>
    %c31_i32 = arith.constant 31 : i32
    %268 = tpu.dynamic_rotate %124 by %c31_i32 dim 2 : vector<2x1x256xf32>, i32 -> vector<2x1x256xf32>
    %269 = vector.extract_strided_slice %268 {offsets = [0, 0, 0], sizes = [1, 1, 256], strides = [1, 1, 1]} : vector<2x1x256xf32> to vector<1x1x256xf32>
    %270 = vector.shape_cast %269 : vector<1x1x256xf32> to vector<1x256xf32>
    %271 = vector.broadcast %20 : f32 to vector<1x256xf32>
    %272 = arith.mulf %270, %271 : vector<1x256xf32>
    %273 = vector.extract_strided_slice %268 {offsets = [1, 0, 0], sizes = [1, 1, 256], strides = [1, 1, 1]} : vector<2x1x256xf32> to vector<1x1x256xf32>
    %274 = vector.shape_cast %273 : vector<1x1x256xf32> to vector<1x256xf32>
    %275 = vector.broadcast %69 : f32 to vector<1x256xf32>
    %276 = arith.mulf %274, %275 : vector<1x256xf32>
    %277 = arith.addf %272, %276 : vector<1x256xf32>
    %cst_26 = arith.constant 0.000000e+00 : f32
    %278 = vector.broadcast %cst_26 : f32 to vector<1x256xf32>
    %279 = arith.select %119, %277, %278 : vector<1x256xi1>, vector<1x256xf32>
    %280 = arith.addf %267, %279 : vector<1x256xf32>
    %c30_i32 = arith.constant 30 : i32
    %281 = tpu.dynamic_rotate %124 by %c30_i32 dim 2 : vector<2x1x256xf32>, i32 -> vector<2x1x256xf32>
    %282 = vector.extract_strided_slice %281 {offsets = [0, 0, 0], sizes = [1, 1, 256], strides = [1, 1, 1]} : vector<2x1x256xf32> to vector<1x1x256xf32>
    %283 = vector.shape_cast %282 : vector<1x1x256xf32> to vector<1x256xf32>
    %284 = vector.broadcast %21 : f32 to vector<1x256xf32>
    %285 = arith.mulf %283, %284 : vector<1x256xf32>
    %286 = vector.extract_strided_slice %281 {offsets = [1, 0, 0], sizes = [1, 1, 256], strides = [1, 1, 1]} : vector<2x1x256xf32> to vector<1x1x256xf32>
    %287 = vector.shape_cast %286 : vector<1x1x256xf32> to vector<1x256xf32>
    %288 = vector.broadcast %70 : f32 to vector<1x256xf32>
    %289 = arith.mulf %287, %288 : vector<1x256xf32>
    %290 = arith.addf %285, %289 : vector<1x256xf32>
    %cst_27 = arith.constant 0.000000e+00 : f32
    %291 = vector.broadcast %cst_27 : f32 to vector<1x256xf32>
    %292 = arith.select %121, %290, %291 : vector<1x256xi1>, vector<1x256xf32>
    %293 = arith.addf %280, %292 : vector<1x256xf32>
    %c29_i32 = arith.constant 29 : i32
    %294 = tpu.dynamic_rotate %124 by %c29_i32 dim 2 : vector<2x1x256xf32>, i32 -> vector<2x1x256xf32>
    %295 = vector.extract_strided_slice %294 {offsets = [0, 0, 0], sizes = [1, 1, 256], strides = [1, 1, 1]} : vector<2x1x256xf32> to vector<1x1x256xf32>
    %296 = vector.shape_cast %295 : vector<1x1x256xf32> to vector<1x256xf32>
    %297 = vector.broadcast %22 : f32 to vector<1x256xf32>
    %298 = arith.mulf %296, %297 : vector<1x256xf32>
    %299 = vector.extract_strided_slice %294 {offsets = [1, 0, 0], sizes = [1, 1, 256], strides = [1, 1, 1]} : vector<2x1x256xf32> to vector<1x1x256xf32>
    %300 = vector.shape_cast %299 : vector<1x1x256xf32> to vector<1x256xf32>
    %301 = vector.broadcast %71 : f32 to vector<1x256xf32>
    %302 = arith.mulf %300, %301 : vector<1x256xf32>
    %303 = arith.addf %298, %302 : vector<1x256xf32>
    %cst_28 = arith.constant 0.000000e+00 : f32
    %304 = vector.broadcast %cst_28 : f32 to vector<1x256xf32>
    %305 = arith.select %123, %303, %304 : vector<1x256xi1>, vector<1x256xf32>
    %306 = arith.addf %293, %305 : vector<1x256xf32>
    %cst_29 = arith.constant 0.000000e+00 : f32
    %307 = vector.broadcast %cst_29 : f32 to vector<1x256xf32>
    %308 = arith.select %218, %306, %307 : vector<1x256xi1>, vector<1x256xf32>
    %309 = arith.addf %216, %308 : vector<1x256xf32>
    %c1_i32_30 = arith.constant 1 : i32
    %310 = vector.broadcast %c1_i32_30 : i32 to vector<1x256xi32>
    %311 = arith.cmpi sge, %109, %310 : vector<1x256xi32>
    %c19_i32 = arith.constant 19 : i32
    %312 = tpu.dynamic_rotate %124 by %c19_i32 dim 2 : vector<2x1x256xf32>, i32 -> vector<2x1x256xf32>
    %313 = vector.extract_strided_slice %312 {offsets = [0, 0, 0], sizes = [1, 1, 256], strides = [1, 1, 1]} : vector<2x1x256xf32> to vector<1x1x256xf32>
    %314 = vector.shape_cast %313 : vector<1x1x256xf32> to vector<1x256xf32>
    %315 = vector.broadcast %23 : f32 to vector<1x256xf32>
    %316 = arith.mulf %314, %315 : vector<1x256xf32>
    %317 = vector.extract_strided_slice %312 {offsets = [1, 0, 0], sizes = [1, 1, 256], strides = [1, 1, 1]} : vector<2x1x256xf32> to vector<1x1x256xf32>
    %318 = vector.shape_cast %317 : vector<1x1x256xf32> to vector<1x256xf32>
    %319 = vector.broadcast %72 : f32 to vector<1x256xf32>
    %320 = arith.mulf %318, %319 : vector<1x256xf32>
    %321 = arith.addf %316, %320 : vector<1x256xf32>
    %cst_31 = arith.constant 0.000000e+00 : f32
    %322 = vector.broadcast %cst_31 : f32 to vector<1x256xf32>
    %323 = arith.select %113, %321, %322 : vector<1x256xi1>, vector<1x256xf32>
    %c18_i32 = arith.constant 18 : i32
    %324 = tpu.dynamic_rotate %124 by %c18_i32 dim 2 : vector<2x1x256xf32>, i32 -> vector<2x1x256xf32>
    %325 = vector.extract_strided_slice %324 {offsets = [0, 0, 0], sizes = [1, 1, 256], strides = [1, 1, 1]} : vector<2x1x256xf32> to vector<1x1x256xf32>
    %326 = vector.shape_cast %325 : vector<1x1x256xf32> to vector<1x256xf32>
    %327 = vector.broadcast %24 : f32 to vector<1x256xf32>
    %328 = arith.mulf %326, %327 : vector<1x256xf32>
    %329 = vector.extract_strided_slice %324 {offsets = [1, 0, 0], sizes = [1, 1, 256], strides = [1, 1, 1]} : vector<2x1x256xf32> to vector<1x1x256xf32>
    %330 = vector.shape_cast %329 : vector<1x1x256xf32> to vector<1x256xf32>
    %331 = vector.broadcast %73 : f32 to vector<1x256xf32>
    %332 = arith.mulf %330, %331 : vector<1x256xf32>
    %333 = arith.addf %328, %332 : vector<1x256xf32>
    %cst_32 = arith.constant 0.000000e+00 : f32
    %334 = vector.broadcast %cst_32 : f32 to vector<1x256xf32>
    %335 = arith.select %115, %333, %334 : vector<1x256xi1>, vector<1x256xf32>
    %336 = arith.addf %323, %335 : vector<1x256xf32>
    %c17_i32 = arith.constant 17 : i32
    %337 = tpu.dynamic_rotate %124 by %c17_i32 dim 2 : vector<2x1x256xf32>, i32 -> vector<2x1x256xf32>
    %338 = vector.extract_strided_slice %337 {offsets = [0, 0, 0], sizes = [1, 1, 256], strides = [1, 1, 1]} : vector<2x1x256xf32> to vector<1x1x256xf32>
    %339 = vector.shape_cast %338 : vector<1x1x256xf32> to vector<1x256xf32>
    %340 = vector.broadcast %25 : f32 to vector<1x256xf32>
    %341 = arith.mulf %339, %340 : vector<1x256xf32>
    %342 = vector.extract_strided_slice %337 {offsets = [1, 0, 0], sizes = [1, 1, 256], strides = [1, 1, 1]} : vector<2x1x256xf32> to vector<1x1x256xf32>
    %343 = vector.shape_cast %342 : vector<1x1x256xf32> to vector<1x256xf32>
    %344 = vector.broadcast %74 : f32 to vector<1x256xf32>
    %345 = arith.mulf %343, %344 : vector<1x256xf32>
    %346 = arith.addf %341, %345 : vector<1x256xf32>
    %cst_33 = arith.constant 0.000000e+00 : f32
    %347 = vector.broadcast %cst_33 : f32 to vector<1x256xf32>
    %348 = arith.select %117, %346, %347 : vector<1x256xi1>, vector<1x256xf32>
    %349 = arith.addf %336, %348 : vector<1x256xf32>
    %c16_i32 = arith.constant 16 : i32
    %350 = tpu.dynamic_rotate %124 by %c16_i32 dim 2 : vector<2x1x256xf32>, i32 -> vector<2x1x256xf32>
    %351 = vector.extract_strided_slice %350 {offsets = [0, 0, 0], sizes = [1, 1, 256], strides = [1, 1, 1]} : vector<2x1x256xf32> to vector<1x1x256xf32>
    %352 = vector.shape_cast %351 : vector<1x1x256xf32> to vector<1x256xf32>
    %353 = vector.broadcast %26 : f32 to vector<1x256xf32>
    %354 = arith.mulf %352, %353 : vector<1x256xf32>
    %355 = vector.extract_strided_slice %350 {offsets = [1, 0, 0], sizes = [1, 1, 256], strides = [1, 1, 1]} : vector<2x1x256xf32> to vector<1x1x256xf32>
    %356 = vector.shape_cast %355 : vector<1x1x256xf32> to vector<1x256xf32>
    %357 = vector.broadcast %75 : f32 to vector<1x256xf32>
    %358 = arith.mulf %356, %357 : vector<1x256xf32>
    %359 = arith.addf %354, %358 : vector<1x256xf32>
    %360 = arith.addf %349, %359 : vector<1x256xf32>
    %c15_i32_34 = arith.constant 15 : i32
    %361 = tpu.dynamic_rotate %124 by %c15_i32_34 dim 2 : vector<2x1x256xf32>, i32 -> vector<2x1x256xf32>
    %362 = vector.extract_strided_slice %361 {offsets = [0, 0, 0], sizes = [1, 1, 256], strides = [1, 1, 1]} : vector<2x1x256xf32> to vector<1x1x256xf32>
    %363 = vector.shape_cast %362 : vector<1x1x256xf32> to vector<1x256xf32>
    %364 = vector.broadcast %27 : f32 to vector<1x256xf32>
    %365 = arith.mulf %363, %364 : vector<1x256xf32>
    %366 = vector.extract_strided_slice %361 {offsets = [1, 0, 0], sizes = [1, 1, 256], strides = [1, 1, 1]} : vector<2x1x256xf32> to vector<1x1x256xf32>
    %367 = vector.shape_cast %366 : vector<1x1x256xf32> to vector<1x256xf32>
    %368 = vector.broadcast %76 : f32 to vector<1x256xf32>
    %369 = arith.mulf %367, %368 : vector<1x256xf32>
    %370 = arith.addf %365, %369 : vector<1x256xf32>
    %cst_35 = arith.constant 0.000000e+00 : f32
    %371 = vector.broadcast %cst_35 : f32 to vector<1x256xf32>
    %372 = arith.select %119, %370, %371 : vector<1x256xi1>, vector<1x256xf32>
    %373 = arith.addf %360, %372 : vector<1x256xf32>
    %c14_i32_36 = arith.constant 14 : i32
    %374 = tpu.dynamic_rotate %124 by %c14_i32_36 dim 2 : vector<2x1x256xf32>, i32 -> vector<2x1x256xf32>
    %375 = vector.extract_strided_slice %374 {offsets = [0, 0, 0], sizes = [1, 1, 256], strides = [1, 1, 1]} : vector<2x1x256xf32> to vector<1x1x256xf32>
    %376 = vector.shape_cast %375 : vector<1x1x256xf32> to vector<1x256xf32>
    %377 = vector.broadcast %28 : f32 to vector<1x256xf32>
    %378 = arith.mulf %376, %377 : vector<1x256xf32>
    %379 = vector.extract_strided_slice %374 {offsets = [1, 0, 0], sizes = [1, 1, 256], strides = [1, 1, 1]} : vector<2x1x256xf32> to vector<1x1x256xf32>
    %380 = vector.shape_cast %379 : vector<1x1x256xf32> to vector<1x256xf32>
    %381 = vector.broadcast %77 : f32 to vector<1x256xf32>
    %382 = arith.mulf %380, %381 : vector<1x256xf32>
    %383 = arith.addf %378, %382 : vector<1x256xf32>
    %cst_37 = arith.constant 0.000000e+00 : f32
    %384 = vector.broadcast %cst_37 : f32 to vector<1x256xf32>
    %385 = arith.select %121, %383, %384 : vector<1x256xi1>, vector<1x256xf32>
    %386 = arith.addf %373, %385 : vector<1x256xf32>
    %c13_i32_38 = arith.constant 13 : i32
    %387 = tpu.dynamic_rotate %124 by %c13_i32_38 dim 2 : vector<2x1x256xf32>, i32 -> vector<2x1x256xf32>
    %388 = vector.extract_strided_slice %387 {offsets = [0, 0, 0], sizes = [1, 1, 256], strides = [1, 1, 1]} : vector<2x1x256xf32> to vector<1x1x256xf32>
    %389 = vector.shape_cast %388 : vector<1x1x256xf32> to vector<1x256xf32>
    %390 = vector.broadcast %29 : f32 to vector<1x256xf32>
    %391 = arith.mulf %389, %390 : vector<1x256xf32>
    %392 = vector.extract_strided_slice %387 {offsets = [1, 0, 0], sizes = [1, 1, 256], strides = [1, 1, 1]} : vector<2x1x256xf32> to vector<1x1x256xf32>
    %393 = vector.shape_cast %392 : vector<1x1x256xf32> to vector<1x256xf32>
    %394 = vector.broadcast %78 : f32 to vector<1x256xf32>
    %395 = arith.mulf %393, %394 : vector<1x256xf32>
    %396 = arith.addf %391, %395 : vector<1x256xf32>
    %cst_39 = arith.constant 0.000000e+00 : f32
    %397 = vector.broadcast %cst_39 : f32 to vector<1x256xf32>
    %398 = arith.select %123, %396, %397 : vector<1x256xi1>, vector<1x256xf32>
    %399 = arith.addf %386, %398 : vector<1x256xf32>
    %cst_40 = arith.constant 0.000000e+00 : f32
    %400 = vector.broadcast %cst_40 : f32 to vector<1x256xf32>
    %401 = arith.select %311, %399, %400 : vector<1x256xi1>, vector<1x256xf32>
    %402 = arith.addf %309, %401 : vector<1x256xf32>
    %c3_i32_41 = arith.constant 3 : i32
    %403 = tpu.dynamic_rotate %124 by %c3_i32_41 dim 2 : vector<2x1x256xf32>, i32 -> vector<2x1x256xf32>
    %404 = vector.extract_strided_slice %403 {offsets = [0, 0, 0], sizes = [1, 1, 256], strides = [1, 1, 1]} : vector<2x1x256xf32> to vector<1x1x256xf32>
    %405 = vector.shape_cast %404 : vector<1x1x256xf32> to vector<1x256xf32>
    %406 = vector.broadcast %30 : f32 to vector<1x256xf32>
    %407 = arith.mulf %405, %406 : vector<1x256xf32>
    %408 = vector.extract_strided_slice %403 {offsets = [1, 0, 0], sizes = [1, 1, 256], strides = [1, 1, 1]} : vector<2x1x256xf32> to vector<1x1x256xf32>
    %409 = vector.shape_cast %408 : vector<1x1x256xf32> to vector<1x256xf32>
    %410 = vector.broadcast %79 : f32 to vector<1x256xf32>
    %411 = arith.mulf %409, %410 : vector<1x256xf32>
    %412 = arith.addf %407, %411 : vector<1x256xf32>
    %cst_42 = arith.constant 0.000000e+00 : f32
    %413 = vector.broadcast %cst_42 : f32 to vector<1x256xf32>
    %414 = arith.select %113, %412, %413 : vector<1x256xi1>, vector<1x256xf32>
    %c2_i32_43 = arith.constant 2 : i32
    %415 = tpu.dynamic_rotate %124 by %c2_i32_43 dim 2 : vector<2x1x256xf32>, i32 -> vector<2x1x256xf32>
    %416 = vector.extract_strided_slice %415 {offsets = [0, 0, 0], sizes = [1, 1, 256], strides = [1, 1, 1]} : vector<2x1x256xf32> to vector<1x1x256xf32>
    %417 = vector.shape_cast %416 : vector<1x1x256xf32> to vector<1x256xf32>
    %418 = vector.broadcast %31 : f32 to vector<1x256xf32>
    %419 = arith.mulf %417, %418 : vector<1x256xf32>
    %420 = vector.extract_strided_slice %415 {offsets = [1, 0, 0], sizes = [1, 1, 256], strides = [1, 1, 1]} : vector<2x1x256xf32> to vector<1x1x256xf32>
    %421 = vector.shape_cast %420 : vector<1x1x256xf32> to vector<1x256xf32>
    %422 = vector.broadcast %80 : f32 to vector<1x256xf32>
    %423 = arith.mulf %421, %422 : vector<1x256xf32>
    %424 = arith.addf %419, %423 : vector<1x256xf32>
    %cst_44 = arith.constant 0.000000e+00 : f32
    %425 = vector.broadcast %cst_44 : f32 to vector<1x256xf32>
    %426 = arith.select %115, %424, %425 : vector<1x256xi1>, vector<1x256xf32>
    %427 = arith.addf %414, %426 : vector<1x256xf32>
    %c1_i32_45 = arith.constant 1 : i32
    %428 = tpu.dynamic_rotate %124 by %c1_i32_45 dim 2 : vector<2x1x256xf32>, i32 -> vector<2x1x256xf32>
    %429 = vector.extract_strided_slice %428 {offsets = [0, 0, 0], sizes = [1, 1, 256], strides = [1, 1, 1]} : vector<2x1x256xf32> to vector<1x1x256xf32>
    %430 = vector.shape_cast %429 : vector<1x1x256xf32> to vector<1x256xf32>
    %431 = vector.broadcast %32 : f32 to vector<1x256xf32>
    %432 = arith.mulf %430, %431 : vector<1x256xf32>
    %433 = vector.extract_strided_slice %428 {offsets = [1, 0, 0], sizes = [1, 1, 256], strides = [1, 1, 1]} : vector<2x1x256xf32> to vector<1x1x256xf32>
    %434 = vector.shape_cast %433 : vector<1x1x256xf32> to vector<1x256xf32>
    %435 = vector.broadcast %81 : f32 to vector<1x256xf32>
    %436 = arith.mulf %434, %435 : vector<1x256xf32>
    %437 = arith.addf %432, %436 : vector<1x256xf32>
    %cst_46 = arith.constant 0.000000e+00 : f32
    %438 = vector.broadcast %cst_46 : f32 to vector<1x256xf32>
    %439 = arith.select %117, %437, %438 : vector<1x256xi1>, vector<1x256xf32>
    %440 = arith.addf %427, %439 : vector<1x256xf32>
    %441 = vector.extract_strided_slice %124 {offsets = [0, 0, 0], sizes = [1, 1, 256], strides = [1, 1, 1]} : vector<2x1x256xf32> to vector<1x1x256xf32>
    %442 = vector.shape_cast %441 : vector<1x1x256xf32> to vector<1x256xf32>
    %443 = vector.broadcast %33 : f32 to vector<1x256xf32>
    %444 = arith.mulf %442, %443 : vector<1x256xf32>
    %445 = vector.extract_strided_slice %124 {offsets = [1, 0, 0], sizes = [1, 1, 256], strides = [1, 1, 1]} : vector<2x1x256xf32> to vector<1x1x256xf32>
    %446 = vector.shape_cast %445 : vector<1x1x256xf32> to vector<1x256xf32>
    %447 = vector.broadcast %82 : f32 to vector<1x256xf32>
    %448 = arith.mulf %446, %447 : vector<1x256xf32>
    %449 = arith.addf %444, %448 : vector<1x256xf32>
    %450 = arith.addf %440, %449 : vector<1x256xf32>
    %c255_i32 = arith.constant 255 : i32
    %451 = tpu.dynamic_rotate %124 by %c255_i32 dim 2 : vector<2x1x256xf32>, i32 -> vector<2x1x256xf32>
    %452 = vector.extract_strided_slice %451 {offsets = [0, 0, 0], sizes = [1, 1, 256], strides = [1, 1, 1]} : vector<2x1x256xf32> to vector<1x1x256xf32>
    %453 = vector.shape_cast %452 : vector<1x1x256xf32> to vector<1x256xf32>
    %454 = vector.broadcast %34 : f32 to vector<1x256xf32>
    %455 = arith.mulf %453, %454 : vector<1x256xf32>
    %456 = vector.extract_strided_slice %451 {offsets = [1, 0, 0], sizes = [1, 1, 256], strides = [1, 1, 1]} : vector<2x1x256xf32> to vector<1x1x256xf32>
    %457 = vector.shape_cast %456 : vector<1x1x256xf32> to vector<1x256xf32>
    %458 = vector.broadcast %83 : f32 to vector<1x256xf32>
    %459 = arith.mulf %457, %458 : vector<1x256xf32>
    %460 = arith.addf %455, %459 : vector<1x256xf32>
    %cst_47 = arith.constant 0.000000e+00 : f32
    %461 = vector.broadcast %cst_47 : f32 to vector<1x256xf32>
    %462 = arith.select %119, %460, %461 : vector<1x256xi1>, vector<1x256xf32>
    %463 = arith.addf %450, %462 : vector<1x256xf32>
    %c254_i32 = arith.constant 254 : i32
    %464 = tpu.dynamic_rotate %124 by %c254_i32 dim 2 : vector<2x1x256xf32>, i32 -> vector<2x1x256xf32>
    %465 = vector.extract_strided_slice %464 {offsets = [0, 0, 0], sizes = [1, 1, 256], strides = [1, 1, 1]} : vector<2x1x256xf32> to vector<1x1x256xf32>
    %466 = vector.shape_cast %465 : vector<1x1x256xf32> to vector<1x256xf32>
    %467 = vector.broadcast %35 : f32 to vector<1x256xf32>
    %468 = arith.mulf %466, %467 : vector<1x256xf32>
    %469 = vector.extract_strided_slice %464 {offsets = [1, 0, 0], sizes = [1, 1, 256], strides = [1, 1, 1]} : vector<2x1x256xf32> to vector<1x1x256xf32>
    %470 = vector.shape_cast %469 : vector<1x1x256xf32> to vector<1x256xf32>
    %471 = vector.broadcast %84 : f32 to vector<1x256xf32>
    %472 = arith.mulf %470, %471 : vector<1x256xf32>
    %473 = arith.addf %468, %472 : vector<1x256xf32>
    %cst_48 = arith.constant 0.000000e+00 : f32
    %474 = vector.broadcast %cst_48 : f32 to vector<1x256xf32>
    %475 = arith.select %121, %473, %474 : vector<1x256xi1>, vector<1x256xf32>
    %476 = arith.addf %463, %475 : vector<1x256xf32>
    %c253_i32 = arith.constant 253 : i32
    %477 = tpu.dynamic_rotate %124 by %c253_i32 dim 2 : vector<2x1x256xf32>, i32 -> vector<2x1x256xf32>
    %478 = vector.extract_strided_slice %477 {offsets = [0, 0, 0], sizes = [1, 1, 256], strides = [1, 1, 1]} : vector<2x1x256xf32> to vector<1x1x256xf32>
    %479 = vector.shape_cast %478 : vector<1x1x256xf32> to vector<1x256xf32>
    %480 = vector.broadcast %36 : f32 to vector<1x256xf32>
    %481 = arith.mulf %479, %480 : vector<1x256xf32>
    %482 = vector.extract_strided_slice %477 {offsets = [1, 0, 0], sizes = [1, 1, 256], strides = [1, 1, 1]} : vector<2x1x256xf32> to vector<1x1x256xf32>
    %483 = vector.shape_cast %482 : vector<1x1x256xf32> to vector<1x256xf32>
    %484 = vector.broadcast %85 : f32 to vector<1x256xf32>
    %485 = arith.mulf %483, %484 : vector<1x256xf32>
    %486 = arith.addf %481, %485 : vector<1x256xf32>
    %cst_49 = arith.constant 0.000000e+00 : f32
    %487 = vector.broadcast %cst_49 : f32 to vector<1x256xf32>
    %488 = arith.select %123, %486, %487 : vector<1x256xi1>, vector<1x256xf32>
    %489 = arith.addf %476, %488 : vector<1x256xf32>
    %490 = arith.addf %402, %489 : vector<1x256xf32>
    %c15_i32_50 = arith.constant 15 : i32
    %491 = vector.broadcast %c15_i32_50 : i32 to vector<1x256xi32>
    %492 = arith.cmpi slt, %109, %491 : vector<1x256xi32>
    %c243_i32 = arith.constant 243 : i32
    %493 = tpu.dynamic_rotate %124 by %c243_i32 dim 2 : vector<2x1x256xf32>, i32 -> vector<2x1x256xf32>
    %494 = vector.extract_strided_slice %493 {offsets = [0, 0, 0], sizes = [1, 1, 256], strides = [1, 1, 1]} : vector<2x1x256xf32> to vector<1x1x256xf32>
    %495 = vector.shape_cast %494 : vector<1x1x256xf32> to vector<1x256xf32>
    %496 = vector.broadcast %37 : f32 to vector<1x256xf32>
    %497 = arith.mulf %495, %496 : vector<1x256xf32>
    %498 = vector.extract_strided_slice %493 {offsets = [1, 0, 0], sizes = [1, 1, 256], strides = [1, 1, 1]} : vector<2x1x256xf32> to vector<1x1x256xf32>
    %499 = vector.shape_cast %498 : vector<1x1x256xf32> to vector<1x256xf32>
    %500 = vector.broadcast %86 : f32 to vector<1x256xf32>
    %501 = arith.mulf %499, %500 : vector<1x256xf32>
    %502 = arith.addf %497, %501 : vector<1x256xf32>
    %cst_51 = arith.constant 0.000000e+00 : f32
    %503 = vector.broadcast %cst_51 : f32 to vector<1x256xf32>
    %504 = arith.select %113, %502, %503 : vector<1x256xi1>, vector<1x256xf32>
    %c242_i32 = arith.constant 242 : i32
    %505 = tpu.dynamic_rotate %124 by %c242_i32 dim 2 : vector<2x1x256xf32>, i32 -> vector<2x1x256xf32>
    %506 = vector.extract_strided_slice %505 {offsets = [0, 0, 0], sizes = [1, 1, 256], strides = [1, 1, 1]} : vector<2x1x256xf32> to vector<1x1x256xf32>
    %507 = vector.shape_cast %506 : vector<1x1x256xf32> to vector<1x256xf32>
    %508 = vector.broadcast %38 : f32 to vector<1x256xf32>
    %509 = arith.mulf %507, %508 : vector<1x256xf32>
    %510 = vector.extract_strided_slice %505 {offsets = [1, 0, 0], sizes = [1, 1, 256], strides = [1, 1, 1]} : vector<2x1x256xf32> to vector<1x1x256xf32>
    %511 = vector.shape_cast %510 : vector<1x1x256xf32> to vector<1x256xf32>
    %512 = vector.broadcast %87 : f32 to vector<1x256xf32>
    %513 = arith.mulf %511, %512 : vector<1x256xf32>
    %514 = arith.addf %509, %513 : vector<1x256xf32>
    %cst_52 = arith.constant 0.000000e+00 : f32
    %515 = vector.broadcast %cst_52 : f32 to vector<1x256xf32>
    %516 = arith.select %115, %514, %515 : vector<1x256xi1>, vector<1x256xf32>
    %517 = arith.addf %504, %516 : vector<1x256xf32>
    %c241_i32 = arith.constant 241 : i32
    %518 = tpu.dynamic_rotate %124 by %c241_i32 dim 2 : vector<2x1x256xf32>, i32 -> vector<2x1x256xf32>
    %519 = vector.extract_strided_slice %518 {offsets = [0, 0, 0], sizes = [1, 1, 256], strides = [1, 1, 1]} : vector<2x1x256xf32> to vector<1x1x256xf32>
    %520 = vector.shape_cast %519 : vector<1x1x256xf32> to vector<1x256xf32>
    %521 = vector.broadcast %39 : f32 to vector<1x256xf32>
    %522 = arith.mulf %520, %521 : vector<1x256xf32>
    %523 = vector.extract_strided_slice %518 {offsets = [1, 0, 0], sizes = [1, 1, 256], strides = [1, 1, 1]} : vector<2x1x256xf32> to vector<1x1x256xf32>
    %524 = vector.shape_cast %523 : vector<1x1x256xf32> to vector<1x256xf32>
    %525 = vector.broadcast %88 : f32 to vector<1x256xf32>
    %526 = arith.mulf %524, %525 : vector<1x256xf32>
    %527 = arith.addf %522, %526 : vector<1x256xf32>
    %cst_53 = arith.constant 0.000000e+00 : f32
    %528 = vector.broadcast %cst_53 : f32 to vector<1x256xf32>
    %529 = arith.select %117, %527, %528 : vector<1x256xi1>, vector<1x256xf32>
    %530 = arith.addf %517, %529 : vector<1x256xf32>
    %c240_i32 = arith.constant 240 : i32
    %531 = tpu.dynamic_rotate %124 by %c240_i32 dim 2 : vector<2x1x256xf32>, i32 -> vector<2x1x256xf32>
    %532 = vector.extract_strided_slice %531 {offsets = [0, 0, 0], sizes = [1, 1, 256], strides = [1, 1, 1]} : vector<2x1x256xf32> to vector<1x1x256xf32>
    %533 = vector.shape_cast %532 : vector<1x1x256xf32> to vector<1x256xf32>
    %534 = vector.broadcast %40 : f32 to vector<1x256xf32>
    %535 = arith.mulf %533, %534 : vector<1x256xf32>
    %536 = vector.extract_strided_slice %531 {offsets = [1, 0, 0], sizes = [1, 1, 256], strides = [1, 1, 1]} : vector<2x1x256xf32> to vector<1x1x256xf32>
    %537 = vector.shape_cast %536 : vector<1x1x256xf32> to vector<1x256xf32>
    %538 = vector.broadcast %89 : f32 to vector<1x256xf32>
    %539 = arith.mulf %537, %538 : vector<1x256xf32>
    %540 = arith.addf %535, %539 : vector<1x256xf32>
    %541 = arith.addf %530, %540 : vector<1x256xf32>
    %c239_i32 = arith.constant 239 : i32
    %542 = tpu.dynamic_rotate %124 by %c239_i32 dim 2 : vector<2x1x256xf32>, i32 -> vector<2x1x256xf32>
    %543 = vector.extract_strided_slice %542 {offsets = [0, 0, 0], sizes = [1, 1, 256], strides = [1, 1, 1]} : vector<2x1x256xf32> to vector<1x1x256xf32>
    %544 = vector.shape_cast %543 : vector<1x1x256xf32> to vector<1x256xf32>
    %545 = vector.broadcast %41 : f32 to vector<1x256xf32>
    %546 = arith.mulf %544, %545 : vector<1x256xf32>
    %547 = vector.extract_strided_slice %542 {offsets = [1, 0, 0], sizes = [1, 1, 256], strides = [1, 1, 1]} : vector<2x1x256xf32> to vector<1x1x256xf32>
    %548 = vector.shape_cast %547 : vector<1x1x256xf32> to vector<1x256xf32>
    %549 = vector.broadcast %90 : f32 to vector<1x256xf32>
    %550 = arith.mulf %548, %549 : vector<1x256xf32>
    %551 = arith.addf %546, %550 : vector<1x256xf32>
    %cst_54 = arith.constant 0.000000e+00 : f32
    %552 = vector.broadcast %cst_54 : f32 to vector<1x256xf32>
    %553 = arith.select %119, %551, %552 : vector<1x256xi1>, vector<1x256xf32>
    %554 = arith.addf %541, %553 : vector<1x256xf32>
    %c238_i32 = arith.constant 238 : i32
    %555 = tpu.dynamic_rotate %124 by %c238_i32 dim 2 : vector<2x1x256xf32>, i32 -> vector<2x1x256xf32>
    %556 = vector.extract_strided_slice %555 {offsets = [0, 0, 0], sizes = [1, 1, 256], strides = [1, 1, 1]} : vector<2x1x256xf32> to vector<1x1x256xf32>
    %557 = vector.shape_cast %556 : vector<1x1x256xf32> to vector<1x256xf32>
    %558 = vector.broadcast %42 : f32 to vector<1x256xf32>
    %559 = arith.mulf %557, %558 : vector<1x256xf32>
    %560 = vector.extract_strided_slice %555 {offsets = [1, 0, 0], sizes = [1, 1, 256], strides = [1, 1, 1]} : vector<2x1x256xf32> to vector<1x1x256xf32>
    %561 = vector.shape_cast %560 : vector<1x1x256xf32> to vector<1x256xf32>
    %562 = vector.broadcast %91 : f32 to vector<1x256xf32>
    %563 = arith.mulf %561, %562 : vector<1x256xf32>
    %564 = arith.addf %559, %563 : vector<1x256xf32>
    %cst_55 = arith.constant 0.000000e+00 : f32
    %565 = vector.broadcast %cst_55 : f32 to vector<1x256xf32>
    %566 = arith.select %121, %564, %565 : vector<1x256xi1>, vector<1x256xf32>
    %567 = arith.addf %554, %566 : vector<1x256xf32>
    %c237_i32 = arith.constant 237 : i32
    %568 = tpu.dynamic_rotate %124 by %c237_i32 dim 2 : vector<2x1x256xf32>, i32 -> vector<2x1x256xf32>
    %569 = vector.extract_strided_slice %568 {offsets = [0, 0, 0], sizes = [1, 1, 256], strides = [1, 1, 1]} : vector<2x1x256xf32> to vector<1x1x256xf32>
    %570 = vector.shape_cast %569 : vector<1x1x256xf32> to vector<1x256xf32>
    %571 = vector.broadcast %43 : f32 to vector<1x256xf32>
    %572 = arith.mulf %570, %571 : vector<1x256xf32>
    %573 = vector.extract_strided_slice %568 {offsets = [1, 0, 0], sizes = [1, 1, 256], strides = [1, 1, 1]} : vector<2x1x256xf32> to vector<1x1x256xf32>
    %574 = vector.shape_cast %573 : vector<1x1x256xf32> to vector<1x256xf32>
    %575 = vector.broadcast %92 : f32 to vector<1x256xf32>
    %576 = arith.mulf %574, %575 : vector<1x256xf32>
    %577 = arith.addf %572, %576 : vector<1x256xf32>
    %cst_56 = arith.constant 0.000000e+00 : f32
    %578 = vector.broadcast %cst_56 : f32 to vector<1x256xf32>
    %579 = arith.select %123, %577, %578 : vector<1x256xi1>, vector<1x256xf32>
    %580 = arith.addf %567, %579 : vector<1x256xf32>
    %cst_57 = arith.constant 0.000000e+00 : f32
    %581 = vector.broadcast %cst_57 : f32 to vector<1x256xf32>
    %582 = arith.select %492, %580, %581 : vector<1x256xi1>, vector<1x256xf32>
    %583 = arith.addf %490, %582 : vector<1x256xf32>
    %c14_i32_58 = arith.constant 14 : i32
    %584 = vector.broadcast %c14_i32_58 : i32 to vector<1x256xi32>
    %585 = arith.cmpi slt, %109, %584 : vector<1x256xi32>
    %c227_i32 = arith.constant 227 : i32
    %586 = tpu.dynamic_rotate %124 by %c227_i32 dim 2 : vector<2x1x256xf32>, i32 -> vector<2x1x256xf32>
    %587 = vector.extract_strided_slice %586 {offsets = [0, 0, 0], sizes = [1, 1, 256], strides = [1, 1, 1]} : vector<2x1x256xf32> to vector<1x1x256xf32>
    %588 = vector.shape_cast %587 : vector<1x1x256xf32> to vector<1x256xf32>
    %589 = vector.broadcast %44 : f32 to vector<1x256xf32>
    %590 = arith.mulf %588, %589 : vector<1x256xf32>
    %591 = vector.extract_strided_slice %586 {offsets = [1, 0, 0], sizes = [1, 1, 256], strides = [1, 1, 1]} : vector<2x1x256xf32> to vector<1x1x256xf32>
    %592 = vector.shape_cast %591 : vector<1x1x256xf32> to vector<1x256xf32>
    %593 = vector.broadcast %93 : f32 to vector<1x256xf32>
    %594 = arith.mulf %592, %593 : vector<1x256xf32>
    %595 = arith.addf %590, %594 : vector<1x256xf32>
    %cst_59 = arith.constant 0.000000e+00 : f32
    %596 = vector.broadcast %cst_59 : f32 to vector<1x256xf32>
    %597 = arith.select %113, %595, %596 : vector<1x256xi1>, vector<1x256xf32>
    %c226_i32 = arith.constant 226 : i32
    %598 = tpu.dynamic_rotate %124 by %c226_i32 dim 2 : vector<2x1x256xf32>, i32 -> vector<2x1x256xf32>
    %599 = vector.extract_strided_slice %598 {offsets = [0, 0, 0], sizes = [1, 1, 256], strides = [1, 1, 1]} : vector<2x1x256xf32> to vector<1x1x256xf32>
    %600 = vector.shape_cast %599 : vector<1x1x256xf32> to vector<1x256xf32>
    %601 = vector.broadcast %45 : f32 to vector<1x256xf32>
    %602 = arith.mulf %600, %601 : vector<1x256xf32>
    %603 = vector.extract_strided_slice %598 {offsets = [1, 0, 0], sizes = [1, 1, 256], strides = [1, 1, 1]} : vector<2x1x256xf32> to vector<1x1x256xf32>
    %604 = vector.shape_cast %603 : vector<1x1x256xf32> to vector<1x256xf32>
    %605 = vector.broadcast %94 : f32 to vector<1x256xf32>
    %606 = arith.mulf %604, %605 : vector<1x256xf32>
    %607 = arith.addf %602, %606 : vector<1x256xf32>
    %cst_60 = arith.constant 0.000000e+00 : f32
    %608 = vector.broadcast %cst_60 : f32 to vector<1x256xf32>
    %609 = arith.select %115, %607, %608 : vector<1x256xi1>, vector<1x256xf32>
    %610 = arith.addf %597, %609 : vector<1x256xf32>
    %c225_i32 = arith.constant 225 : i32
    %611 = tpu.dynamic_rotate %124 by %c225_i32 dim 2 : vector<2x1x256xf32>, i32 -> vector<2x1x256xf32>
    %612 = vector.extract_strided_slice %611 {offsets = [0, 0, 0], sizes = [1, 1, 256], strides = [1, 1, 1]} : vector<2x1x256xf32> to vector<1x1x256xf32>
    %613 = vector.shape_cast %612 : vector<1x1x256xf32> to vector<1x256xf32>
    %614 = vector.broadcast %46 : f32 to vector<1x256xf32>
    %615 = arith.mulf %613, %614 : vector<1x256xf32>
    %616 = vector.extract_strided_slice %611 {offsets = [1, 0, 0], sizes = [1, 1, 256], strides = [1, 1, 1]} : vector<2x1x256xf32> to vector<1x1x256xf32>
    %617 = vector.shape_cast %616 : vector<1x1x256xf32> to vector<1x256xf32>
    %618 = vector.broadcast %95 : f32 to vector<1x256xf32>
    %619 = arith.mulf %617, %618 : vector<1x256xf32>
    %620 = arith.addf %615, %619 : vector<1x256xf32>
    %cst_61 = arith.constant 0.000000e+00 : f32
    %621 = vector.broadcast %cst_61 : f32 to vector<1x256xf32>
    %622 = arith.select %117, %620, %621 : vector<1x256xi1>, vector<1x256xf32>
    %623 = arith.addf %610, %622 : vector<1x256xf32>
    %c224_i32 = arith.constant 224 : i32
    %624 = tpu.dynamic_rotate %124 by %c224_i32 dim 2 : vector<2x1x256xf32>, i32 -> vector<2x1x256xf32>
    %625 = vector.extract_strided_slice %624 {offsets = [0, 0, 0], sizes = [1, 1, 256], strides = [1, 1, 1]} : vector<2x1x256xf32> to vector<1x1x256xf32>
    %626 = vector.shape_cast %625 : vector<1x1x256xf32> to vector<1x256xf32>
    %627 = vector.broadcast %47 : f32 to vector<1x256xf32>
    %628 = arith.mulf %626, %627 : vector<1x256xf32>
    %629 = vector.extract_strided_slice %624 {offsets = [1, 0, 0], sizes = [1, 1, 256], strides = [1, 1, 1]} : vector<2x1x256xf32> to vector<1x1x256xf32>
    %630 = vector.shape_cast %629 : vector<1x1x256xf32> to vector<1x256xf32>
    %631 = vector.broadcast %96 : f32 to vector<1x256xf32>
    %632 = arith.mulf %630, %631 : vector<1x256xf32>
    %633 = arith.addf %628, %632 : vector<1x256xf32>
    %634 = arith.addf %623, %633 : vector<1x256xf32>
    %c223_i32 = arith.constant 223 : i32
    %635 = tpu.dynamic_rotate %124 by %c223_i32 dim 2 : vector<2x1x256xf32>, i32 -> vector<2x1x256xf32>
    %636 = vector.extract_strided_slice %635 {offsets = [0, 0, 0], sizes = [1, 1, 256], strides = [1, 1, 1]} : vector<2x1x256xf32> to vector<1x1x256xf32>
    %637 = vector.shape_cast %636 : vector<1x1x256xf32> to vector<1x256xf32>
    %638 = vector.broadcast %48 : f32 to vector<1x256xf32>
    %639 = arith.mulf %637, %638 : vector<1x256xf32>
    %640 = vector.extract_strided_slice %635 {offsets = [1, 0, 0], sizes = [1, 1, 256], strides = [1, 1, 1]} : vector<2x1x256xf32> to vector<1x1x256xf32>
    %641 = vector.shape_cast %640 : vector<1x1x256xf32> to vector<1x256xf32>
    %642 = vector.broadcast %97 : f32 to vector<1x256xf32>
    %643 = arith.mulf %641, %642 : vector<1x256xf32>
    %644 = arith.addf %639, %643 : vector<1x256xf32>
    %cst_62 = arith.constant 0.000000e+00 : f32
    %645 = vector.broadcast %cst_62 : f32 to vector<1x256xf32>
    %646 = arith.select %119, %644, %645 : vector<1x256xi1>, vector<1x256xf32>
    %647 = arith.addf %634, %646 : vector<1x256xf32>
    %c222_i32 = arith.constant 222 : i32
    %648 = tpu.dynamic_rotate %124 by %c222_i32 dim 2 : vector<2x1x256xf32>, i32 -> vector<2x1x256xf32>
    %649 = vector.extract_strided_slice %648 {offsets = [0, 0, 0], sizes = [1, 1, 256], strides = [1, 1, 1]} : vector<2x1x256xf32> to vector<1x1x256xf32>
    %650 = vector.shape_cast %649 : vector<1x1x256xf32> to vector<1x256xf32>
    %651 = vector.broadcast %49 : f32 to vector<1x256xf32>
    %652 = arith.mulf %650, %651 : vector<1x256xf32>
    %653 = vector.extract_strided_slice %648 {offsets = [1, 0, 0], sizes = [1, 1, 256], strides = [1, 1, 1]} : vector<2x1x256xf32> to vector<1x1x256xf32>
    %654 = vector.shape_cast %653 : vector<1x1x256xf32> to vector<1x256xf32>
    %655 = vector.broadcast %98 : f32 to vector<1x256xf32>
    %656 = arith.mulf %654, %655 : vector<1x256xf32>
    %657 = arith.addf %652, %656 : vector<1x256xf32>
    %cst_63 = arith.constant 0.000000e+00 : f32
    %658 = vector.broadcast %cst_63 : f32 to vector<1x256xf32>
    %659 = arith.select %121, %657, %658 : vector<1x256xi1>, vector<1x256xf32>
    %660 = arith.addf %647, %659 : vector<1x256xf32>
    %c221_i32 = arith.constant 221 : i32
    %661 = tpu.dynamic_rotate %124 by %c221_i32 dim 2 : vector<2x1x256xf32>, i32 -> vector<2x1x256xf32>
    %662 = vector.extract_strided_slice %661 {offsets = [0, 0, 0], sizes = [1, 1, 256], strides = [1, 1, 1]} : vector<2x1x256xf32> to vector<1x1x256xf32>
    %663 = vector.shape_cast %662 : vector<1x1x256xf32> to vector<1x256xf32>
    %664 = vector.broadcast %50 : f32 to vector<1x256xf32>
    %665 = arith.mulf %663, %664 : vector<1x256xf32>
    %666 = vector.extract_strided_slice %661 {offsets = [1, 0, 0], sizes = [1, 1, 256], strides = [1, 1, 1]} : vector<2x1x256xf32> to vector<1x1x256xf32>
    %667 = vector.shape_cast %666 : vector<1x1x256xf32> to vector<1x256xf32>
    %668 = vector.broadcast %99 : f32 to vector<1x256xf32>
    %669 = arith.mulf %667, %668 : vector<1x256xf32>
    %670 = arith.addf %665, %669 : vector<1x256xf32>
    %cst_64 = arith.constant 0.000000e+00 : f32
    %671 = vector.broadcast %cst_64 : f32 to vector<1x256xf32>
    %672 = arith.select %123, %670, %671 : vector<1x256xi1>, vector<1x256xf32>
    %673 = arith.addf %660, %672 : vector<1x256xf32>
    %cst_65 = arith.constant 0.000000e+00 : f32
    %674 = vector.broadcast %cst_65 : f32 to vector<1x256xf32>
    %675 = arith.select %585, %673, %674 : vector<1x256xi1>, vector<1x256xf32>
    %676 = arith.addf %583, %675 : vector<1x256xf32>
    %c13_i32_66 = arith.constant 13 : i32
    %677 = vector.broadcast %c13_i32_66 : i32 to vector<1x256xi32>
    %678 = arith.cmpi slt, %109, %677 : vector<1x256xi32>
    %c211_i32 = arith.constant 211 : i32
    %679 = tpu.dynamic_rotate %124 by %c211_i32 dim 2 : vector<2x1x256xf32>, i32 -> vector<2x1x256xf32>
    %680 = vector.extract_strided_slice %679 {offsets = [0, 0, 0], sizes = [1, 1, 256], strides = [1, 1, 1]} : vector<2x1x256xf32> to vector<1x1x256xf32>
    %681 = vector.shape_cast %680 : vector<1x1x256xf32> to vector<1x256xf32>
    %682 = vector.broadcast %51 : f32 to vector<1x256xf32>
    %683 = arith.mulf %681, %682 : vector<1x256xf32>
    %684 = vector.extract_strided_slice %679 {offsets = [1, 0, 0], sizes = [1, 1, 256], strides = [1, 1, 1]} : vector<2x1x256xf32> to vector<1x1x256xf32>
    %685 = vector.shape_cast %684 : vector<1x1x256xf32> to vector<1x256xf32>
    %686 = vector.broadcast %100 : f32 to vector<1x256xf32>
    %687 = arith.mulf %685, %686 : vector<1x256xf32>
    %688 = arith.addf %683, %687 : vector<1x256xf32>
    %cst_67 = arith.constant 0.000000e+00 : f32
    %689 = vector.broadcast %cst_67 : f32 to vector<1x256xf32>
    %690 = arith.select %113, %688, %689 : vector<1x256xi1>, vector<1x256xf32>
    %c210_i32 = arith.constant 210 : i32
    %691 = tpu.dynamic_rotate %124 by %c210_i32 dim 2 : vector<2x1x256xf32>, i32 -> vector<2x1x256xf32>
    %692 = vector.extract_strided_slice %691 {offsets = [0, 0, 0], sizes = [1, 1, 256], strides = [1, 1, 1]} : vector<2x1x256xf32> to vector<1x1x256xf32>
    %693 = vector.shape_cast %692 : vector<1x1x256xf32> to vector<1x256xf32>
    %694 = vector.broadcast %52 : f32 to vector<1x256xf32>
    %695 = arith.mulf %693, %694 : vector<1x256xf32>
    %696 = vector.extract_strided_slice %691 {offsets = [1, 0, 0], sizes = [1, 1, 256], strides = [1, 1, 1]} : vector<2x1x256xf32> to vector<1x1x256xf32>
    %697 = vector.shape_cast %696 : vector<1x1x256xf32> to vector<1x256xf32>
    %698 = vector.broadcast %101 : f32 to vector<1x256xf32>
    %699 = arith.mulf %697, %698 : vector<1x256xf32>
    %700 = arith.addf %695, %699 : vector<1x256xf32>
    %cst_68 = arith.constant 0.000000e+00 : f32
    %701 = vector.broadcast %cst_68 : f32 to vector<1x256xf32>
    %702 = arith.select %115, %700, %701 : vector<1x256xi1>, vector<1x256xf32>
    %703 = arith.addf %690, %702 : vector<1x256xf32>
    %c209_i32 = arith.constant 209 : i32
    %704 = tpu.dynamic_rotate %124 by %c209_i32 dim 2 : vector<2x1x256xf32>, i32 -> vector<2x1x256xf32>
    %705 = vector.extract_strided_slice %704 {offsets = [0, 0, 0], sizes = [1, 1, 256], strides = [1, 1, 1]} : vector<2x1x256xf32> to vector<1x1x256xf32>
    %706 = vector.shape_cast %705 : vector<1x1x256xf32> to vector<1x256xf32>
    %707 = vector.broadcast %53 : f32 to vector<1x256xf32>
    %708 = arith.mulf %706, %707 : vector<1x256xf32>
    %709 = vector.extract_strided_slice %704 {offsets = [1, 0, 0], sizes = [1, 1, 256], strides = [1, 1, 1]} : vector<2x1x256xf32> to vector<1x1x256xf32>
    %710 = vector.shape_cast %709 : vector<1x1x256xf32> to vector<1x256xf32>
    %711 = vector.broadcast %102 : f32 to vector<1x256xf32>
    %712 = arith.mulf %710, %711 : vector<1x256xf32>
    %713 = arith.addf %708, %712 : vector<1x256xf32>
    %cst_69 = arith.constant 0.000000e+00 : f32
    %714 = vector.broadcast %cst_69 : f32 to vector<1x256xf32>
    %715 = arith.select %117, %713, %714 : vector<1x256xi1>, vector<1x256xf32>
    %716 = arith.addf %703, %715 : vector<1x256xf32>
    %c208_i32 = arith.constant 208 : i32
    %717 = tpu.dynamic_rotate %124 by %c208_i32 dim 2 : vector<2x1x256xf32>, i32 -> vector<2x1x256xf32>
    %718 = vector.extract_strided_slice %717 {offsets = [0, 0, 0], sizes = [1, 1, 256], strides = [1, 1, 1]} : vector<2x1x256xf32> to vector<1x1x256xf32>
    %719 = vector.shape_cast %718 : vector<1x1x256xf32> to vector<1x256xf32>
    %720 = vector.broadcast %54 : f32 to vector<1x256xf32>
    %721 = arith.mulf %719, %720 : vector<1x256xf32>
    %722 = vector.extract_strided_slice %717 {offsets = [1, 0, 0], sizes = [1, 1, 256], strides = [1, 1, 1]} : vector<2x1x256xf32> to vector<1x1x256xf32>
    %723 = vector.shape_cast %722 : vector<1x1x256xf32> to vector<1x256xf32>
    %724 = vector.broadcast %103 : f32 to vector<1x256xf32>
    %725 = arith.mulf %723, %724 : vector<1x256xf32>
    %726 = arith.addf %721, %725 : vector<1x256xf32>
    %727 = arith.addf %716, %726 : vector<1x256xf32>
    %c207_i32 = arith.constant 207 : i32
    %728 = tpu.dynamic_rotate %124 by %c207_i32 dim 2 : vector<2x1x256xf32>, i32 -> vector<2x1x256xf32>
    %729 = vector.extract_strided_slice %728 {offsets = [0, 0, 0], sizes = [1, 1, 256], strides = [1, 1, 1]} : vector<2x1x256xf32> to vector<1x1x256xf32>
    %730 = vector.shape_cast %729 : vector<1x1x256xf32> to vector<1x256xf32>
    %731 = vector.broadcast %55 : f32 to vector<1x256xf32>
    %732 = arith.mulf %730, %731 : vector<1x256xf32>
    %733 = vector.extract_strided_slice %728 {offsets = [1, 0, 0], sizes = [1, 1, 256], strides = [1, 1, 1]} : vector<2x1x256xf32> to vector<1x1x256xf32>
    %734 = vector.shape_cast %733 : vector<1x1x256xf32> to vector<1x256xf32>
    %735 = vector.broadcast %104 : f32 to vector<1x256xf32>
    %736 = arith.mulf %734, %735 : vector<1x256xf32>
    %737 = arith.addf %732, %736 : vector<1x256xf32>
    %cst_70 = arith.constant 0.000000e+00 : f32
    %738 = vector.broadcast %cst_70 : f32 to vector<1x256xf32>
    %739 = arith.select %119, %737, %738 : vector<1x256xi1>, vector<1x256xf32>
    %740 = arith.addf %727, %739 : vector<1x256xf32>
    %c206_i32 = arith.constant 206 : i32
    %741 = tpu.dynamic_rotate %124 by %c206_i32 dim 2 : vector<2x1x256xf32>, i32 -> vector<2x1x256xf32>
    %742 = vector.extract_strided_slice %741 {offsets = [0, 0, 0], sizes = [1, 1, 256], strides = [1, 1, 1]} : vector<2x1x256xf32> to vector<1x1x256xf32>
    %743 = vector.shape_cast %742 : vector<1x1x256xf32> to vector<1x256xf32>
    %744 = vector.broadcast %56 : f32 to vector<1x256xf32>
    %745 = arith.mulf %743, %744 : vector<1x256xf32>
    %746 = vector.extract_strided_slice %741 {offsets = [1, 0, 0], sizes = [1, 1, 256], strides = [1, 1, 1]} : vector<2x1x256xf32> to vector<1x1x256xf32>
    %747 = vector.shape_cast %746 : vector<1x1x256xf32> to vector<1x256xf32>
    %748 = vector.broadcast %105 : f32 to vector<1x256xf32>
    %749 = arith.mulf %747, %748 : vector<1x256xf32>
    %750 = arith.addf %745, %749 : vector<1x256xf32>
    %cst_71 = arith.constant 0.000000e+00 : f32
    %751 = vector.broadcast %cst_71 : f32 to vector<1x256xf32>
    %752 = arith.select %121, %750, %751 : vector<1x256xi1>, vector<1x256xf32>
    %753 = arith.addf %740, %752 : vector<1x256xf32>
    %c205_i32 = arith.constant 205 : i32
    %754 = tpu.dynamic_rotate %124 by %c205_i32 dim 2 : vector<2x1x256xf32>, i32 -> vector<2x1x256xf32>
    %755 = vector.extract_strided_slice %754 {offsets = [0, 0, 0], sizes = [1, 1, 256], strides = [1, 1, 1]} : vector<2x1x256xf32> to vector<1x1x256xf32>
    %756 = vector.shape_cast %755 : vector<1x1x256xf32> to vector<1x256xf32>
    %757 = vector.broadcast %57 : f32 to vector<1x256xf32>
    %758 = arith.mulf %756, %757 : vector<1x256xf32>
    %759 = vector.extract_strided_slice %754 {offsets = [1, 0, 0], sizes = [1, 1, 256], strides = [1, 1, 1]} : vector<2x1x256xf32> to vector<1x1x256xf32>
    %760 = vector.shape_cast %759 : vector<1x1x256xf32> to vector<1x256xf32>
    %761 = vector.broadcast %106 : f32 to vector<1x256xf32>
    %762 = arith.mulf %760, %761 : vector<1x256xf32>
    %763 = arith.addf %758, %762 : vector<1x256xf32>
    %cst_72 = arith.constant 0.000000e+00 : f32
    %764 = vector.broadcast %cst_72 : f32 to vector<1x256xf32>
    %765 = arith.select %123, %763, %764 : vector<1x256xi1>, vector<1x256xf32>
    %766 = arith.addf %753, %765 : vector<1x256xf32>
    %cst_73 = arith.constant 0.000000e+00 : f32
    %767 = vector.broadcast %cst_73 : f32 to vector<1x256xf32>
    %768 = arith.select %678, %766, %767 : vector<1x256xi1>, vector<1x256xf32>
    %769 = arith.addf %676, %768 : vector<1x256xf32>
    %770 = arith.negf %769 : vector<1x256xf32>
    %771 = math.exp %770 : vector<1x256xf32>
    %cst_74 = arith.constant 1.000000e+00 : f32
    %772 = vector.broadcast %cst_74 : f32 to vector<1x256xf32>
    %773 = arith.addf %772, %771 : vector<1x256xf32>
    %774 = arith.divf %772, %773 : vector<1x256xf32>
    %c0_75 = arith.constant 0 : index
    %c0_76 = arith.constant 0 : index
    %c0_77 = arith.constant 0 : index
    %775 = vector.load %arg2[%c0_75, %c0_76, %c0_77] : memref<1x4x256xf32, #tpu.memory_space<vmem>>, vector<1x4x256xf32>
    %776 = vector.shape_cast %774 : vector<1x256xf32> to vector<1x1x256xf32>
    %777 = vector.broadcast %776 : vector<1x1x256xf32> to vector<1x4x256xf32>
    %778 = arith.mulf %775, %777 : vector<1x4x256xf32>
    %c0_78 = arith.constant 0 : index
    %c0_79 = arith.constant 0 : index
    %c0_80 = arith.constant 0 : index
    %779 = vector.load %arg3[%c0_78, %c0_79, %c0_80] : memref<1x4x256xf32, #tpu.memory_space<vmem>>, vector<1x4x256xf32>
    tpu.vector_store %arg3[%c0_78, %c0_79, %c0_80], %778 {strides = array<i32>} : memref<1x4x256xf32, #tpu.memory_space<vmem>>, vector<1x4x256xf32>,
    return
  }
  func.func @transform_0(%arg0: i32) -> i32 {
    %c0_i32 = arith.constant 0 : i32
    %c0_i32_0 = arith.constant 0 : i32
    return %c0_i32 : i32
  }
  func.func @transform_1(%arg0: i32) -> (i32, i32, i32) {
    %c0_i32 = arith.constant 0 : i32
    %c0_i32_0 = arith.constant 0 : i32
    %c0_i32_1 = arith.constant 0 : i32
    return %arg0, %c0_i32, %c0_i32_0 : i32, i32, i32
  }
  func.func @transform_2(%arg0: i32) -> (i32, i32, i32) {
    %c0_i32 = arith.constant 0 : i32
    %c0_i32_0 = arith.constant 0 : i32
    %c0_i32_1 = arith.constant 0 : i32
    return %arg0, %c0_i32, %c0_i32_0 : i32, i32, i32
  }
}

</mosaic_0001>

<bundles_post_ra>
// kernel: tpu_custom_call.1
= control target key start
LH: loop header
LB: loop body
LE: loop exit
PB: predicated region body
PF: predicated region fallthrough
CT: control target
= control target key end

     0   :  { %7 = vsyncpa [#allocation6], 0  ;;  %s3607_s0 = inlined_call_operand.hbm [shape: f32[98], index: 0, kind: input, shape index: {}]   ;;  %s3608_s1 = inlined_call_operand.hbm [shape: f32[2,4,256], index: 1, kind: input, shape index: {}]   ;;  %s3609_s2 = inlined_call_operand.hbm [shape: f32[2,4,256], index: 2, kind: output, shape index: {}]  }
   0x1   :  { %8 = vsyncpa [#allocation4], 0 }
   0x2   :  { %10 = vsyncpa [#allocation4 + $0x1], 0 }
   0x3   :  { %11 = vsyncpa [#allocation5], 0 }
   0x4   :  { %13 = vsyncpa [#allocation5 + $0x1], 0  ;;  %s2146_s9 = smov 0   ;;  %s2148_s10 = smov 0  }
   0x5   :  { %s2150_s11 = smov 0   ;;  %s2152_s12 = smov 0  }
   0x6 LB: > { %s2167_s13 = sadd.s32 4294967295, %s2080_s12   ;;  %s1733_s14 = sadd.s32 4294967294, %s2080_s12   ;;  %s2080_s12 = sphi %s2152_s12, %s3642_s12   ;;  %s2076_s11 = sphi %s2150_s11, %s3641_s11   ;;  %s2072_s10 = sphi %s2148_s10, %s3640_s10   ;;  %s2068_s9 = sphi %s2146_s9, %s3639_s9  }
   0x7   : > { %p60_p0 = scmp.ne.s32.totalorder %s2072_s10, %s2068_s9  ;;  %p61_p1 = scmp.eq.s32.totalorder %s2167_s13, 0 }
   0x8   : > { %p84_p2 = scmp.eq.s32.totalorder %s2167_s13, 1  ;;  %p90_p3 = scmp.eq.s32.totalorder %s1733_s14, 1 }
   0x9   : > { %p2176_p4 = por %p61_p1, %p60_p0  ;;  %p1734_p5 = scmp.ge.s32.totalorder %s2080_s12, 1 }
   0xa   : > { %p2181_p6 = por %p90_p3, %p60_p0  ;;  %p97_p7 = scmp.lt.s32.totalorder %s2080_s12, 3 }
   0xb   : > { %s109_s19 = sshll.u32 %s3607_s0, 4  ;;  %s2197_s21 = sadd.s32 1, %s2080_s12   ;;  %s110_s19 = int_to_ptr.hbm [resolvable:$true] %s109_s19 }
   0xc   : > { %p2189_p8 = pnand %p1734_p5, %p97_p7  ;;  %s44_s22 = ssub.s32 %s2080_s12, %s2197_s21 }
   0xd   : > { %p45_p12 = scmp.eq.s32.totalorder %s44_s22, 0  ;;  %s47_s23 = sadd.s32 1, %s2076_s11 }
   0xe   : > { %p1858_p10 = pneg %p2189_p8  ;;  %p54_p13 = scmp.ne.s32.totalorder %s2076_s11, %s2072_s10 }
   0xf   : > { %s2082_s24 = smov [#allocation3]   ;;  %p55_p0 = scmp.eq.s32.totalorder %s2080_s12, 0 }
  0x10   : > { %p1859_p11 = pnand %p1858_p10, %p61_p1  ;;  %p2212_p3 = por %p84_p2, %p54_p13 }
  0x11   : > { %s2207_s25 = scalar_select %p45_p12, %s2076_s11, %s47_s23  }
  0x12   : > { %1861 = dma.hbm_to_smem (!%p1859_p11), %s110_s19, 16, %s2082_s24, [#allocation6]  }
  0x13   : > { %s120_s27 = sand.u32 1, %s2076_s11   ;;  %p56_p5 = por %p55_p0, %p54_p13 }
  0x14   : > { %p1871_p7 = scmp.lt.s32.totalorder %s2080_s12, 2  ;;  %s1737_s28 = sshll.u32 %s120_s27, 3 }
  0x15   : > { %s1848_s29 = sshll.u32 %s2080_s12, 3  ;;  %s124_s6 = scalar_lea.vmem [#allocation7], %s1737_s28 }
  0x16   : > { %s129_s4 = scalar_lea.hbm %s3608_s1, %s1848_s29  ;;  %s133_s7 = sshll.u32 %s124_s6, 4  ;;  %s134_s7 = int_to_ptr.vmem [resolvable:$true] %s133_s7 }
  0x17   : > { %s131_s5 = sshll.u32 %s129_s4, 4  ;;  %p2222_p10 = pnand %p1871_p7, %p56_p5  ;;  %s132_s5 = int_to_ptr.hbm [resolvable:$true] %s131_s5 }
  0x18   : > { %s121_s14 = scalar_lea.sflag [#allocation4], %s120_s27  ;;  %s1980_s17 = sshra.s32 %s132_s5, 4  ;;  %s1981_s17 = int_to_ptr.hbm [resolvable:$true] %s1980_s17 }
  0x19   : > { %s1982_s18 = scalar_lea.hbm %s1981_s17, 8  ;;  %p1984_p11 = pneg %p2222_p10 }
  0x1a   : > { %p1983_p2 = scmp.ne.s32.totalorder %s1981_s17, %s1982_s18  ;;  %s1987_s23 = scalar_lea.hbm %s3608_s1, 16 }
  0x1b   : > { %p1988_p0 = scmp.lt.s32.totalorder %s1981_s17, %s3608_s1  ;;  %p1989_p5 = scmp.lt.s32.totalorder %s1987_s23, %s1982_s18 }
  0x1c   : > { %p1985_p12 = pnand %p1984_p11, %p1983_p2 }
  0x1d   : > { %p1990_p7 = por %p1989_p5, %p1988_p0 }
  0x1e   : > { %p1986_p13 = pneg %p1985_p12 }
  0x20   : > { %p1991_p9 = pnand %p1990_p7, %p1986_p13 }
  0x22   : > { %1994 = shalt.err (!%p1991_p9)
}
  0x23   : > { %1865 = dma.hbm_to_vmem [thread:$0]  (!%p2222_p10), %s132_s5, 128, %s134_s7, %s121_s14  }
  0x24   : > { %142 = sbr.rel (%p2189_p8) target bundleno = 753 (0x2f1), region = 28 }
  0x29   : > { %2055 = dma.done.wait (%p61_p1), [#allocation6], 16  }
  0x2a   : > { %2057 = vsyncadd (%p61_p1), [#allocation6], 4294967280  ;;  %s2243_s27 = sand.u32 1, %s2072_s10  }
  0x2b   : > { %s1742_s29 = sshll.u32 %s2243_s27, 3  ;;  %s150_s30 = scalar_lea.sflag [#allocation4], %s2243_s27 }
  0x2c   : > { %s2249_s3 = scalar_lea.vmem [#allocation7], %s1742_s29 }
  0x2d   : > { %2059 = dma.done.wait (%p2176_p4), %s150_s30, 128  }
  0x2e   : > { %2061 = vsyncadd (%p2176_p4), %s150_s30, 4294967168 }
  0x2f   : > { %159 = sfence }
  0x30   : > { %v176_v0 = vld [vmem:[%s2249_s3] sm:$0xff]  ;;  %vm3611_vm0 = vcmask 1043456   ;;  %v223_v15 = vlaneseq  ;;  %vm220_vm1 = vcmask 1040384   ;;  %s2083_s15 = smov 51   ;;  %s2084_s20 = smov 50  }
  0x31   : > { %178 = vst [vmem:[#allocation1] ss:$2 sm:$0xff] %v176_v0  ;;  %s2085_s4 = smov 49   ;;  %s2086_s5 = smov 47  }
  0x32   : > { %vm2261_vm2 = vcmp.lt.s32.totalorder %v223_v15, 256  ;;  %s2087_s6 = smov 48   ;;  %s2088_s7 = smov 46  }
  0x33   : > { %s2089_s8 = smov 45   ;;  %s2090_s14 = smov 35  }
  0x34   : > { %s2091_s17 = smov 34   ;;  %s2092_s18 = smov 33  }
  0x35   : > { %s2093_s19 = smov 32   ;;  %s2094_s22 = smov 31  }
  0x36   : > { %s2095_s23 = smov 30   ;;  %s2096_s24 = smov 29  }
  0x37   : > { %s2097_s28 = smov 19   ;;  %s2098_s30 = smov 18  }
  0x38   : > { %v179_v1 = vld.sshfl [vmem:[#allocation1] sm:$0xff pattern:$0x75316420]  ;;  %v180_v2 = vld.sshfl [vmem:[#allocation1 + $0x8] sm:$0xff pattern:$0x75316420] }
  0x39   : > { %v184_v3 = vsel %vm3611_vm0, %v179_v1, 0.0  ;;  %v191_v4 = vsel %vm3611_vm0, %v180_v2, 0.0  ;;  %198 = vst [vmem:[#allocation1] ss:$2 sm:$0xff] %v176_v0 }
  0x3a   : > { %v185_v5 = vrot.slane %v184_v3, 4  ;;  %v192_v6 = vrot.slane %v191_v4, 4 }
  0x3c   : > { %v186_v7 = vadd.f32 %v185_v5, %v184_v3  ;;  %v193_v8 = vadd.f32 %v192_v6, %v191_v4 }
  0x3e   : > { %v187_v9 = vrot.slane %v186_v7, 2  ;;  %v194_v10 = vrot.slane %v193_v8, 2 }
  0x40   : > { %v188_v11 = vadd.f32 %v187_v9, %v186_v7  ;;  %v195_v12 = vadd.f32 %v194_v10, %v193_v8  ;;  %v199_v13 = vld.sshfl [vmem:[#allocation1] sm:$0xff pattern:$0x75316420]  ;;  %v200_v14 = vld.sshfl [vmem:[#allocation1 + $0x8] sm:$0xff pattern:$0x75316420] }
  0x41   : > { %v203_v16 = vsel %vm3611_vm0, %v199_v13, -inf  ;;  %v210_v17 = vsel %vm3611_vm0, %v200_v14, -inf }
  0x42   : > { %v189_v18 = vrot.slane %v188_v11, 1  ;;  %v196_v19 = vrot.slane %v195_v12, 1  ;;  %v204_v20 = vrot.slane %v203_v16, 4  ;;  %v211_v21 = vrot.slane %v210_v17, 4 }
  0x44   : > { %v190_v22 = vadd.f32 %v189_v18, %v188_v11  ;;  %v197_v23 = vadd.f32 %v196_v19, %v195_v12  ;;  %v205_v24 = vmax.f32 %v203_v16, %v204_v20  ;;  %v212_v25 = vmax.f32 %v210_v17, %v211_v21 }
  0x45   : > { %v2435_v18 = vand.u32 127, %v223_v15 }
  0x46   : > { %v219_v26 = vrot.slane %v197_v23, 7  ;;  %v206_v28 = vrot.slane %v205_v24, 2  ;;  %v213_v29 = vrot.slane %v212_v25, 2 }
  0x47   : > { %vm374_vm3 = vcmp.lt.s32.totalorder %v2435_v18, 51  ;;  %vm422_vm4 = vcmp.lt.s32.totalorder %v2435_v18, 49  ;;  %v2457_v21 = vadd.s32 128, %v2435_v18  ;;  %vm397_vm5 = vcmp.lt.s32.totalorder %v2435_v18, 50 }
  0x48   : > { %v221_v30 = vsel %vm220_vm1, %v190_v22, %v219_v26  ;;  %v207_v31 = vmax.f32 %v205_v24, %v206_v28  ;;  %v214_v32 = vmax.f32 %v212_v25, %v213_v29  ;;  %v2463_v22 = vand.u32 15, %v2435_v18 }
  0x49   : > { %227 = vst.msk [vmem:[#allocation2] sm:$0x3] %vm2261_vm2, %v221_v30  ;;  %vm447_vm6 = vcmp.lt.s32.totalorder %v2435_v18, 48  ;;  %vm572_vm8 = vcmp.lt.s32.totalorder %v2435_v18, 34  ;;  %vm549_vm10 = vcmp.lt.s32.totalorder %v2435_v18, 35  ;;  %vm597_vm11 = vcmp.lt.s32.totalorder %v2435_v18, 33 }
  0x4a   : > { %v208_v33 = vrot.slane %v207_v31, 1  ;;  %v215_v34 = vrot.slane %v214_v32, 1  ;;  %3620 = vst [vmem:[#allocation12_spill] sm:$0xff] %v2457_v21  ;;  %vm340_vm7 = vcmp.ge.s32.totalorder %v2463_v22, 3  ;;  %vm342_vm12 = vcmp.ge.s32.totalorder %v2463_v22, 2 }
  0x4b   : > { %vm344_vm14 = vcmp.ge.s32.totalorder %v2463_v22, 1  ;;  %vm622_vm15 = vcmp.lt.s32.totalorder %v2435_v18, 32 }
  0x4c   : > { %v209_v35 = vmax.f32 %v207_v31, %v208_v33  ;;  %v216_v36 = vmax.f32 %v214_v32, %v215_v34  ;;  %v2502_v34 = vand.u32 15, %v2457_v21 }
  0x4e   : > { %v230_v37 = vrot.slane %v216_v36, 7  ;;  %vm341_vm9 = vcmp.ge.s32.totalorder %v2502_v34, 3  ;;  %vm343_vm13 = vcmp.ge.s32.totalorder %v2502_v34, 2 }
  0x50   : > { %v352_v38 = vld [vmem:[#allocation2] sm:$0x3]  ;;  %v231_v39 = vsel %vm220_vm1, %v209_v35, %v230_v37  ;;  %vm345_vm1 = vcmp.ge.s32.totalorder %v2502_v34, 1 }
  0x51   : > { %v2267_v40 = vperm.slane %v352_v38, 1  ;;  %v2269_v41 = vperm.slane %v352_v38, 0  ;;  %234 = vst.msk [vmem:[#allocation2 + $0x2] sm:$0x3] %vm2261_vm2, %v231_v39  ;;  %vm470_vm2 = vcmp.lt.s32.totalorder %v2435_v18, 47 }
  0x53   : > { %370 = vrot.lane.b32.xlu1 %v2267_v40, %s2083_s15  ;;  %366 = vrot.lane.b32.xlu0 %v2269_v41, %s2083_s15 }
  0x54   : > { %389 = vrot.lane.b32.xlu2 %v2269_v41, %s2084_s20 }
  0x58   : > { %v353_v42 = vld [vmem:[#allocation2 + $0x2] sm:$0x3] }
  0x59   : > { %v2282_v43 = vperm.slane %v353_v42, 1  ;;  %v2284_v44 = vperm.slane %v353_v42, 0 }
  0x5b   : > { %418 = vrot.lane.b32.xlu1 %v2267_v40, %s2085_s4  ;;  %393 = vrot.lane.b32.xlu0 %v2267_v40, %s2084_s20 }
  0x5c   : > { %414 = vrot.lane.b32.xlu2 %v2269_v41, %s2085_s4 }
  0x63   : > { %462 = vrot.lane.b32.xlu1 %v2269_v41, %s2086_s5  ;;  %439 = vrot.lane.b32.xlu0 %v2269_v41, %s2087_s6 }
  0x64   : > { %443 = vrot.lane.b32.xlu2 %v2267_v40, %s2087_s6 }
  0x6b   : > { %372 = vrot.lane.b32.xlu1 %v2282_v43, %s2083_s15  ;;  %368 = vrot.lane.b32.xlu0 %v2284_v44, %s2083_s15  ;;  %s2099_s15 = smov 17  }
  0x6c   : > { %391 = vrot.lane.b32.xlu2 %v2284_v44, %s2084_s20 }
  0x73   : > { %395 = vrot.lane.b32.xlu1 %v2282_v43, %s2084_s20  ;;  %416 = vrot.lane.b32.xlu0 %v2284_v44, %s2085_s4  ;;  %s2100_s20 = smov 16  }
  0x74   : > { %420 = vrot.lane.b32.xlu2 %v2282_v43, %s2085_s4  ;;  %s2101_s4 = smov 15  }
  0x7b   : > { %441 = vrot.lane.b32.xlu1 %v2284_v44, %s2087_s6  ;;  %445 = vrot.lane.b32.xlu0 %v2282_v43, %s2087_s6  ;;  %s2426_s6 = sld [smem:[#allocation3 + $0x2]] }
  0x7c   : > { %464 = vrot.lane.b32.xlu2 %v2284_v44, %s2086_s5 }
  0x81   : > { %v427_v26 = vstv %s2426_s6  ;;  %s2543_s6 = sld [smem:[#allocation3 + $0x7]] }
  0x83   : > { %468 = vrot.lane.b32.xlu1 %v2282_v43, %s2086_s5  ;;  %466 = vrot.lane.b32.xlu0 %v2267_v40, %s2086_s5  ;;  %s2422_s5 = sld [smem:[#allocation3]] }
  0x84   : > { %487 = vrot.lane.b32.xlu2 %v2269_v41, %s2088_s7 }
  0x89   : > { %v379_v25 = vstv %s2422_s5  ;;  %s2527_s5 = sld [smem:[#allocation3 + $0x38]] }
  0x8b   : > { %491 = vrot.lane.b32.xlu1 %v2267_v40, %s2088_s7  ;;  %489 = vrot.lane.b32.xlu0 %v2284_v44, %s2088_s7 }
  0x8c   : > { %493 = vrot.lane.b32.xlu2 %v2282_v43, %s2088_s7  ;;  %s2428_s7 = sld [smem:[#allocation3 + $0x31]] }
  0x92   : > { %v382_v23 = vstv %s2428_s7  ;;  %s2570_s7 = sld [smem:[#allocation3 + $0x3a]] }
  0x93   : > { %514 = vrot.lane.b32.xlu1 %v2284_v44, %s2089_s8  ;;  %512 = vrot.lane.b32.xlu0 %v2269_v41, %s2089_s8 }
  0x94   : > { %516 = vrot.lane.b32.xlu2 %v2267_v40, %s2089_s8 }
  0x9b   : > { %541 = vrot.lane.b32.xlu1 %v2269_v41, %s2090_s14  ;;  %518 = vrot.lane.b32.xlu0 %v2282_v43, %s2089_s8  ;;  %s2430_s8 = sld [smem:[#allocation3 + $0x1]] }
  0x9c   : > { %543 = vrot.lane.b32.xlu2 %v2284_v44, %s2090_s14 }
  0xa1   : > { %v402_v27 = vstv %s2430_s8  ;;  %s2575_s8 = sld [smem:[#allocation3 + $0x9]] }
  0xa3   : > { %547 = vrot.lane.b32.xlu1 %v2282_v43, %s2090_s14  ;;  %545 = vrot.lane.b32.xlu0 %v2267_v40, %s2090_s14  ;;  %s2432_s14 = sld [smem:[#allocation3 + $0x3]] }
  0xa4   : > { %564 = vrot.lane.b32.xlu2 %v2269_v41, %s2091_s17 }
  0xa9   : > { %v452_v31 = vstv %s2432_s14  ;;  %s2595_s14 = sld [smem:[#allocation3 + $0x3b]] }
  0xab   : > { %568 = vrot.lane.b32.xlu1 %v2267_v40, %s2091_s17  ;;  %566 = vrot.lane.b32.xlu0 %v2284_v44, %s2091_s17 }
  0xac   : > { %570 = vrot.lane.b32.xlu2 %v2282_v43, %s2091_s17  ;;  %s2102_s17 = smov 14  }
  0xae   : > { %v2313_v45 = vpop.permute.xlu2 %389 }
  0xb3   : > { %591 = vrot.lane.b32.xlu1 %v2284_v44, %s2092_s18  ;;  %589 = vrot.lane.b32.xlu0 %v2269_v41, %s2092_s18 }
  0xb4   : > { %593 = vrot.lane.b32.xlu2 %v2267_v40, %s2092_s18 }
  0xb6   : > { %v2318_v46 = vpop.permute.xlu2 %414 }
  0xbb   : > { %614 = vrot.lane.b32.xlu1 %v2269_v41, %s2093_s19  ;;  %595 = vrot.lane.b32.xlu0 %v2282_v43, %s2092_s18  ;;  %s2440_s18 = sld [smem:[#allocation3 + $0x32]] }
  0xbc   : > { %616 = vrot.lane.b32.xlu2 %v2284_v44, %s2093_s19 }
  0xbe   : > { %v2323_v47 = vpop.permute.xlu2 %443 }
  0xc1   : > { %v405_v38 = vstv %s2440_s18  ;;  %s2650_s18 = sld [smem:[#allocation3 + $0x6]] }
  0xc3   : > { %620 = vrot.lane.b32.xlu1 %v2282_v43, %s2093_s19  ;;  %618 = vrot.lane.b32.xlu0 %v2267_v40, %s2093_s19  ;;  %s2444_s19 = sld [smem:[#allocation3 + $0x33]] }
  0xc4   : > { %637 = vrot.lane.b32.xlu2 %v2269_v41, %s2094_s22 }
  0xc5   : > { %v2328_v48 = vpop.permute.xlu1 %370  ;;  %v2330_v49 = vpop.permute.xlu0 %366 }
  0xc6   : > { %v2332_v50 = vpop.permute.xlu2 %391  ;;  %v375_v28 = vsel %vm374_vm3, %v2330_v49, %v2328_v48  ;;  %v377_v29 = vsel %vm374_vm3, %v2328_v48, %v2330_v49 }
  0xc7   : > { %v380_v39 = vmul.f32 %v379_v25, %v377_v29  ;;  %v381_v42 = vmul.f32 %v379_v25, %v375_v28 }
  0xc9   : > { %v430_v48 = vstv %s2444_s19  ;;  %s2104_s19 = smov 3  }
  0xcb   : > { %641 = vrot.lane.b32.xlu1 %v2267_v40, %s2094_s22  ;;  %639 = vrot.lane.b32.xlu0 %v2284_v44, %s2094_s22 }
  0xcc   : > { %643 = vrot.lane.b32.xlu2 %v2282_v43, %s2094_s22  ;;  %s2450_s22 = sld [smem:[#allocation3 + $0x34]] }
  0xcd   : > { %v2337_v51 = vpop.permute.xlu1 %418  ;;  %v2339_v52 = vpop.permute.xlu0 %393 }
  0xce   : > { %v2341_v53 = vpop.permute.xlu2 %420  ;;  %v425_v30 = vsel %vm422_vm4, %v2337_v51, %v2318_v46  ;;  %v423_v32 = vsel %vm422_vm4, %v2318_v46, %v2337_v51  ;;  %v400_v33 = vsel %vm397_vm5, %v2339_v52, %v2313_v45  ;;  %v398_v36 = vsel %vm397_vm5, %v2313_v45, %v2339_v52 }
  0xcf   : > { %v2524_v46 = vmul.f32 %v427_v26, %v425_v30  ;;  %v2533_v51 = vmul.f32 %v427_v26, %v423_v32  ;;  %v403_v52 = vmul.f32 %v402_v27, %v400_v33  ;;  %v404_v25 = vmul.f32 %v402_v27, %v398_v36 }
  0xd3   : > { %664 = vrot.lane.b32.xlu1 %v2284_v44, %s2095_s23  ;;  %662 = vrot.lane.b32.xlu0 %v2269_v41, %s2095_s23 }
  0xd4   : > { %666 = vrot.lane.b32.xlu2 %v2267_v40, %s2095_s23 }
  0xd5   : > { %v2346_v54 = vpop.permute.xlu1 %462  ;;  %v2348_v55 = vpop.permute.xlu0 %439 }
  0xd6   : > { %v2350_v56 = vpop.permute.xlu2 %464 }
  0xdb   : > { %687 = vrot.lane.b32.xlu1 %v2269_v41, %s2096_s24  ;;  %668 = vrot.lane.b32.xlu0 %v2282_v43, %s2095_s23  ;;  %s2459_s23 = sld [smem:[#allocation3 + $0x35]] }
  0xdc   : > { %689 = vrot.lane.b32.xlu2 %v2284_v44, %s2096_s24 }
  0xdd   : > { %v2355_v57 = vpop.permute.xlu1 %372  ;;  %v2357_v58 = vpop.permute.xlu0 %368 }
  0xde   : > { %v2359_v59 = vpop.permute.xlu2 %487  ;;  %v378_v24 = vsel %vm374_vm3, %v2355_v57, %v2357_v58  ;;  %v376_v37 = vsel %vm374_vm3, %v2357_v58, %v2355_v57  ;;  %v448_v57 = vsel %vm447_vm6, %v2348_v55, %v2323_v47  ;;  %v450_v58 = vsel %vm447_vm6, %v2323_v47, %v2348_v55 }
  0xdf   : > { %v383_v35 = vmul.f32 %v382_v23, %v378_v24  ;;  %v384_v26 = vmul.f32 %v382_v23, %v376_v37  ;;  %v2561_v27 = vmul.f32 %v452_v31, %v450_v58  ;;  %v2563_v23 = vmul.f32 %v452_v31, %v448_v57 }
  0xe0   : > { %v605_v55 = vstv %s2570_s7  ;;  %vm346_vm3 = vcmp.lt.s32.totalorder %v2463_v22, 15  ;;  %s2778_s7 = sld [smem:[#allocation3 + $0x3d]] }
  0xe1   : > { %v385_v28 = vadd.f32 %v383_v35, %v380_v39  ;;  %v2577_v37 = vadd.f32 %v384_v26, %v381_v42 }
  0xe3   : > { %693 = vrot.lane.b32.xlu1 %v2282_v43, %s2096_s24  ;;  %691 = vrot.lane.b32.xlu0 %v2267_v40, %s2096_s24  ;;  %s2470_s24 = sld [smem:[#allocation3 + $0x4]]  ;;  %v2581_v31 = vsel %vm340_vm7, %v385_v28, 0.0 }
  0xe4   : > { %718 = vrot.lane.b32.xlu2 %v2269_v41, %s2097_s28 }
  0xe5   : > { %v2364_v60 = vpop.permute.xlu1 %395  ;;  %v2366_v61 = vpop.permute.xlu0 %416 }
  0xe6   : > { %v2368_v62 = vpop.permute.xlu2 %493  ;;  %v401_v29 = vsel %vm397_vm5, %v2364_v60, %v2332_v50  ;;  %v399_v30 = vsel %vm397_vm5, %v2332_v50, %v2364_v60  ;;  %v426_v47 = vsel %vm422_vm4, %v2341_v53, %v2366_v61  ;;  %v424_v33 = vsel %vm422_vm4, %v2366_v61, %v2341_v53 }
  0xe7   : > { %v406_v50 = vmul.f32 %v405_v38, %v401_v29  ;;  %v407_v39 = vmul.f32 %v405_v38, %v399_v30  ;;  %v2583_v53 = vmul.f32 %v430_v48, %v426_v47  ;;  %v2590_v61 = vmul.f32 %v430_v48, %v424_v33 }
  0xe8   : > { %v557_v47 = vstv %s2527_s5  ;;  %v554_v33 = vstv %s2543_s6  ;;  %vm347_vm4 = vcmp.lt.s32.totalorder %v2502_v34, 15  ;;  %vm495_vm5 = vcmp.lt.s32.totalorder %v2435_v18, 46  ;;  %s2755_s5 = sld [smem:[#allocation3 + $0x37]] }
  0xe9   : > { %v2617_v30 = vadd.f32 %v406_v50, %v403_v52  ;;  %v409_v32 = vadd.f32 %v407_v39, %v404_v25  ;;  %s2767_s6 = sld [smem:[#allocation3 + $0xc]] }
  0xeb   : > { %722 = vrot.lane.b32.xlu1 %v2267_v40, %s2097_s28  ;;  %720 = vrot.lane.b32.xlu0 %v2284_v44, %s2097_s28 }
  0xec   : > { %724 = vrot.lane.b32.xlu2 %v2282_v43, %s2097_s28  ;;  %s2476_s28 = sld [smem:[#allocation3 + $0x5]] }
  0xed   : > { %v2373_v63 = vpop.permute.xlu1 %441  ;;  %v2375_v0 = vpop.permute.xlu0 %445 }
  0xee   : > { %v2377_v1 = vpop.permute.xlu2 %516 }
  0xf3   : > { %743 = vrot.lane.b32.xlu1 %v2284_v44, %s2098_s30  ;;  %741 = vrot.lane.b32.xlu0 %v2269_v41, %s2098_s30 }
  0xf4   : > { %745 = vrot.lane.b32.xlu2 %v2267_v40, %s2098_s30 }
  0xf5   : > { %v2382_v2 = vpop.permute.xlu1 %468  ;;  %v2384_v3 = vpop.permute.xlu0 %466 }
  0xf6   : > { %v2386_v4 = vpop.permute.xlu2 %543 }
  0xfb   : > { %766 = vrot.lane.b32.xlu1 %v2269_v41, %s2099_s15  ;;  %747 = vrot.lane.b32.xlu0 %v2282_v43, %s2098_s30  ;;  %s2491_s30 = sld [smem:[#allocation3 + $0x36]] }
  0xfc   : > { %768 = vrot.lane.b32.xlu2 %v2284_v44, %s2099_s15 }
  0xfd   : > { %v2391_v5 = vpop.permute.xlu1 %491  ;;  %v2393_v6 = vpop.permute.xlu0 %489 }
  0xfe   : > { %v2395_v7 = vpop.permute.xlu2 %564 }
 0x103   : > { %772 = vrot.lane.b32.xlu1 %v2282_v43, %s2099_s15  ;;  %770 = vrot.lane.b32.xlu0 %v2267_v40, %s2099_s15  ;;  %s2504_s15 = sld [smem:[#allocation3 + $0x8]] }
 0x104   : > { %791 = vrot.lane.b32.xlu2 %v2269_v41, %s2100_s20 }
 0x105   : > { %v2400_v8 = vpop.permute.xlu1 %514  ;;  %v2402_v9 = vpop.permute.xlu0 %512 }
 0x106   : > { %v2404_v10 = vpop.permute.xlu2 %570 }
 0x109   : > { %v577_v42 = vstv %s2504_s15  ;;  %s2666_s15 = sld [smem:[#allocation3 + $0xb]] }
 0x10b   : > { %795 = vrot.lane.b32.xlu1 %v2267_v40, %s2100_s20  ;;  %793 = vrot.lane.b32.xlu0 %v2284_v44, %s2100_s20 }
 0x10c   : > { %797 = vrot.lane.b32.xlu2 %v2282_v43, %s2100_s20  ;;  %s2520_s20 = sld [smem:[#allocation3 + $0x39]] }
 0x10d   : > { %v2409_v11 = vpop.permute.xlu1 %541  ;;  %v2411_v12 = vpop.permute.xlu0 %518 }
 0x10e   : > { %v2413_v13 = vpop.permute.xlu2 %593 }
 0x112   : > { %v580_v57 = vstv %s2520_s20  ;;  %s2669_s20 = sld [smem:[#allocation3 + $0x3c]] }
 0x113   : > { %816 = vrot.lane.b32.xlu1 %v2284_v44, %s2101_s4  ;;  %814 = vrot.lane.b32.xlu0 %v2269_v41, %s2101_s4 }
 0x114   : > { %818 = vrot.lane.b32.xlu2 %v2267_v40, %s2101_s4 }
 0x115   : > { %v2418_v14 = vpop.permute.xlu1 %547  ;;  %v2420_v16 = vpop.permute.xlu0 %545 }
 0x116   : > { %v2424_v17 = vpop.permute.xlu2 %616  ;;  %v552_v52 = vsel %vm549_vm10, %v2420_v16, %v2409_v11 }
 0x11b   : > { %839 = vrot.lane.b32.xlu1 %v2269_v41, %s2102_s17  ;;  %820 = vrot.lane.b32.xlu0 %v2282_v43, %s2101_s4  ;;  %s2103_s4 = smov 13  }
 0x11c   : > { %841 = vrot.lane.b32.xlu2 %v2284_v44, %s2102_s17 }
 0x11d   : > { %v2446_v19 = vpop.permute.xlu1 %568  ;;  %v2448_v15 = vpop.permute.xlu0 %566 }
 0x11e   : > { %v2452_v20 = vpop.permute.xlu2 %637  ;;  %v573_v38 = vsel %vm572_vm8, %v2395_v7, %v2446_v19  ;;  %v575_v48 = vsel %vm572_vm8, %v2446_v19, %v2395_v7  ;;  %v574_v58 = vsel %vm572_vm8, %v2448_v15, %v2404_v10  ;;  %v576_v26 = vsel %vm572_vm8, %v2404_v10, %v2448_v15 }
 0x11f   : > { %v551_v10 = vsel %vm549_vm10, %v2386_v4, %v2418_v14  ;;  %v553_v19 = vsel %vm549_vm10, %v2418_v14, %v2386_v4  ;;  %v550_v15 = vsel %vm549_vm10, %v2409_v11, %v2420_v16  ;;  %v578_v50 = vmul.f32 %v577_v42, %v575_v48 }
 0x120   : > { %v579_v36 = vmul.f32 %v577_v42, %v573_v38  ;;  %v581_v60 = vmul.f32 %v580_v57, %v576_v26  ;;  %v582_v35 = vmul.f32 %v580_v57, %v574_v58  ;;  %v558_v21 = vmul.f32 %v557_v47, %v553_v19 }
 0x121   : > { %v602_v11 = vstv %s2575_s8  ;;  %v559_v39 = vmul.f32 %v557_v47, %v551_v10  ;;  %v555_v42 = vmul.f32 %v554_v33, %v552_v52  ;;  %v556_v57 = vmul.f32 %v554_v33, %v550_v15  ;;  %s2106_s8 = smov 1  }
 0x122   : > { %v630_v26 = vstv %s2595_s14  ;;  %v388_v19 = vsel %vm341_vm9, %v2577_v37, 0.0  ;;  %v433_v15 = vadd.f32 %v2583_v53, %v2524_v46  ;;  %v410_v37 = vsel %vm342_vm12, %v2617_v30, 0.0  ;;  %s2108_s14 = smov 126  }
 0x123   : > { %845 = vrot.lane.b32.xlu1 %v2282_v43, %s2102_s17  ;;  %843 = vrot.lane.b32.xlu0 %v2267_v40, %s2102_s17  ;;  %s2615_s17 = sld [smem:[#allocation3 + $0xa]]  ;;  %v560_v52 = vadd.f32 %v558_v21, %v555_v42  ;;  %v411_v21 = vsel %vm343_vm13, %v409_v32, 0.0  ;;  %v2704_v46 = vadd.f32 %v2590_v61, %v2533_v51  ;;  %v525_v53 = vstv %s2650_s18 }
 0x124   : > { %864 = vrot.lane.b32.xlu2 %v2269_v41, %s2103_s4  ;;  %vm645_vm8 = vcmp.lt.s32.totalorder %v2435_v18, 31  ;;  %v650_v42 = vstv %s2666_s15  ;;  %vm520_vm10 = vcmp.lt.s32.totalorder %v2435_v18, 45  ;;  %s1807_s18 = sld [smem:[#allocation3 + $0x40]] }
 0x125   : > { %v2529_v45 = vpop.permute.xlu1 %591  ;;  %v2531_v49 = vpop.permute.xlu0 %589  ;;  %v562_v30 = vsel %vm340_vm7, %v560_v52, 0.0  ;;  %s2979_s15 = sld [smem:[#allocation3 + $0x41]] }
 0x126   : > { %v2545_v24 = vpop.permute.xlu2 %643  ;;  %v598_v16 = vsel %vm597_vm11, %v2531_v49, %v2413_v13  ;;  %v600_v25 = vsel %vm597_vm11, %v2413_v13, %v2531_v49  ;;  %v584_v13 = vadd.f32 %v582_v35, %v579_v36 }
 0x127   : > { %v603_v48 = vmul.f32 %v602_v11, %v600_v25  ;;  %v604_v58 = vmul.f32 %v602_v11, %v598_v16 }
 0x129   : > { %v627_v47 = vstv %s2615_s17  ;;  %s1758_s17 = sld [smem:[#allocation3 + $0xf]] }
 0x12b   : > { %868 = vrot.lane.b32.xlu1 %v2267_v40, %s2103_s4  ;;  %866 = vrot.lane.b32.xlu0 %v2284_v44, %s2103_s4 }
 0x12c   : > { %870 = vrot.lane.b32.xlu2 %v2282_v43, %s2103_s4  ;;  %s2105_s4 = smov 2  }
 0x12d   : > { %v615_v28 = vpop.permute.xlu1 %614  ;;  %v596_v29 = vpop.permute.xlu0 %595 }
 0x12e   : > { %v2622_v7 = vpop.permute.xlu2 %666  ;;  %v599_v4 = vsel %vm597_vm11, %v2529_v45, %v596_v29  ;;  %v601_v14 = vsel %vm597_vm11, %v596_v29, %v2529_v45  ;;  %v583_v45 = vadd.f32 %v581_v60, %v578_v50  ;;  %v561_v50 = vadd.f32 %v559_v39, %v556_v57 }
 0x12f   : > { %v606_v49 = vmul.f32 %v605_v55, %v601_v14  ;;  %v607_v38 = vmul.f32 %v605_v55, %v599_v4  ;;  %v586_v4 = vsel %vm343_vm13, %v584_v13, 0.0  ;;  %v2712_v39 = vsel %vm344_vm14, %v433_v15, 0.0 }
 0x130   : > { %v563_v32 = vsel %vm341_vm9, %v561_v50, 0.0  ;;  %v653_v57 = vstv %s2669_s20  ;;  %v412_v50 = vadd.f32 %v410_v37, %v2581_v31  ;;  %v473_v31 = vsel %vm470_vm2, %v2384_v3, %v2346_v54  ;;  %s2981_s20 = sld [smem:[#allocation3 + $0x10]] }
 0x131   : > { %v608_v14 = vadd.f32 %v606_v49, %v603_v48  ;;  %v588_v61 = vadd.f32 %v586_v4, %v563_v32  ;;  %v3621_v37 = vstv %s2450_s22  ;;  %vm348_vm11 = vcmp.lt.s32.totalorder %v2463_v22, 14  ;;  %s2863_s22 = sld [smem:[#allocation3 + $0x3e]] }
 0x133   : > { %895 = vrot.lane.b32.xlu1 %v2284_v44, %s2104_s19  ;;  %893 = vrot.lane.b32.xlu0 %v2269_v41, %s2104_s19 }
 0x134   : > { %897 = vrot.lane.b32.xlu2 %v2267_v40, %s2104_s19 }
 0x135   : > { %v621_v29 = vpop.permute.xlu1 %620  ;;  %v619_v33 = vpop.permute.xlu0 %618 }
 0x136   : > { %v624_v60 = vsel %vm622_vm15, %v2424_v17, %v621_v29  ;;  %v626_v55 = vsel %vm622_vm15, %v621_v29, %v2424_v17  ;;  %v623_v35 = vsel %vm622_vm15, %v615_v28, %v619_v33  ;;  %v625_v36 = vsel %vm622_vm15, %v619_v33, %v615_v28  ;;  %v2686_v10 = vpop.permute.xlu2 %689 }
 0x137   : > { %v585_v17 = vsel %vm342_vm12, %v583_v45, 0.0  ;;  %v609_v28 = vadd.f32 %v607_v38, %v604_v58  ;;  %v631_v11 = vmul.f32 %v630_v26, %v626_v55  ;;  %v632_v16 = vmul.f32 %v630_v26, %v624_v60 }
 0x138   : > { %v628_v25 = vmul.f32 %v627_v47, %v625_v36  ;;  %v629_v29 = vmul.f32 %v627_v47, %v623_v35  ;;  %v587_v51 = vadd.f32 %v585_v17, %v562_v30  ;;  %v610_v45 = vsel %vm344_vm14, %v608_v14, 0.0 }
 0x139   : > { %v611_v13 = vsel %vm345_vm1, %v609_v28, 0.0  ;;  %v451_v17 = vsel %vm447_vm6, %v2375_v0, %v2373_v63  ;;  %vm3612_vm15 = vcmp.lt.s32.totalorder %v2502_v34, 14 }
 0x13a   : > { %v633_v49 = vadd.f32 %v631_v11, %v628_v25  ;;  %v634_v38 = vadd.f32 %v632_v16, %v629_v29  ;;  %v613_v4 = vadd.f32 %v611_v13, %v588_v61  ;;  %v413_v11 = vadd.f32 %v411_v21, %v388_v19 }
 0x13b   : > { %916 = vrot.lane.b32.xlu1 %v2269_v41, %s2105_s4  ;;  %899 = vrot.lane.b32.xlu0 %v2282_v43, %s2104_s19  ;;  %v449_v16 = vsel %vm447_vm6, %v2373_v63, %v2375_v0  ;;  %v456_v30 = vmul.f32 %v3621_v37, %v451_v17  ;;  %vm670_vm6 = vcmp.lt.s32.totalorder %v2435_v18, 30  ;;  %v3622_v63 = vstv %s2459_s23  ;;  %s2869_s23 = sld [smem:[#allocation3 + $0xd]]  ;;  %s2109_s19 = smov 125  }
 0x13c   : > { %918 = vrot.lane.b32.xlu2 %v2284_v44, %s2105_s4  ;;  %v636_v29 = vadd.f32 %v634_v38, %v613_v4  ;;  %v3623_v19 = vstv %s2470_s24  ;;  %v496_v13 = vsel %vm495_vm5, %v2359_v59, %v2391_v5  ;;  %s2107_s24 = smov 127  }
 0x13d   : > { %v642_v48 = vpop.permute.xlu1 %641  ;;  %v640_v58 = vpop.permute.xlu0 %639  ;;  %v476_v21 = vmul.f32 %v3623_v19, %v473_v31  ;;  %v528_v31 = vstv %s2755_s5  ;;  %s2997_s5 = sld [smem:[#allocation3 + $0x11]] }
 0x13e   : > { %v646_v26 = vsel %vm645_vm8, %v2452_v20, %v642_v48  ;;  %v648_v47 = vsel %vm645_vm8, %v642_v48, %v2452_v20  ;;  %v647_v33 = vsel %vm645_vm8, %v640_v58, %v2545_v24  ;;  %v649_v60 = vsel %vm645_vm8, %v2545_v24, %v640_v58  ;;  %v2735_v55 = vpop.permute.xlu2 %718 }
 0x13f   : > { %v651_v35 = vmul.f32 %v650_v42, %v648_v47  ;;  %v652_v36 = vmul.f32 %v650_v42, %v646_v26  ;;  %v654_v15 = vmul.f32 %v653_v57, %v649_v60  ;;  %v655_v52 = vmul.f32 %v653_v57, %v647_v33 }
 0x140   : > { %v612_v20 = vadd.f32 %v610_v45, %v587_v51  ;;  %v474_v24 = vsel %vm470_vm2, %v2382_v2, %v2350_v56  ;;  %v472_v57 = vsel %vm470_vm2, %v2350_v56, %v2382_v2  ;;  %v471_v45 = vsel %vm470_vm2, %v2346_v54, %v2384_v3 }
 0x141   : > { %v656_v14 = vadd.f32 %v654_v15, %v651_v35  ;;  %v657_v28 = vadd.f32 %v655_v52, %v652_v36  ;;  %v479_v0 = vmul.f32 %v3622_v63, %v474_v24  ;;  %v497_v54 = vsel %vm495_vm5, %v2393_v6, %v2368_v62 }
 0x142   : > { %v635_v25 = vadd.f32 %v633_v49, %v612_v20  ;;  %v498_v49 = vsel %vm495_vm5, %v2391_v5, %v2359_v59  ;;  %v499_v56 = vsel %vm495_vm5, %v2368_v62, %v2393_v6  ;;  %v436_v5 = vsel %vm345_vm1, %v2704_v46, 0.0 }
 0x143   : > { %v658_v32 = vsel %vm346_vm3, %v656_v14, 0.0  ;;  %v659_v51 = vsel %vm347_vm4, %v657_v28, 0.0  ;;  %922 = vrot.lane.b32.xlu1 %v2282_v43, %s2105_s4  ;;  %920 = vrot.lane.b32.xlu0 %v2267_v40, %s2105_s4  ;;  %v437_v58 = vadd.f32 %v2712_v39, %v412_v50  ;;  %v3624_v62 = vmov %v3621_v37  ;;  %s2110_s4 = smov 115  }
 0x144   : > { %v2774_v61 = vadd.f32 %v658_v32, %v635_v25  ;;  %v2776_v42 = vadd.f32 %v659_v51, %v636_v29  ;;  %941 = vrot.lane.b32.xlu2 %v2269_v41, %s2106_s8  ;;  %v457_v6 = vmul.f32 %v3624_v62, %v449_v16  ;;  %v2823_v26 = vshra.s32 %v2435_v18, 4  ;;  %v3631_v25 = vld [vmem:[#allocation12_spill] sm:$0xff] }
 0x145   : > { %v665_v38 = vpop.permute.xlu1 %664  ;;  %v663_v48 = vpop.permute.xlu0 %662  ;;  %v438_v47 = vadd.f32 %v436_v5, %v413_v11  ;;  %v3626_v60 = vmov %v3623_v19  ;;  %v481_v36 = vadd.f32 %v479_v0, %v476_v21  ;;  %v3627_v15 = vstv %s2476_s28  ;;  %s2904_s28 = sld [smem:[#allocation3 + $0xe]] }
 0x146   : > { %v671_v59 = vsel %vm670_vm6, %v663_v48, %v2622_v7  ;;  %v673_v2 = vsel %vm670_vm6, %v2622_v7, %v663_v48  ;;  %v2812_v3 = vpop.permute.xlu2 %724  ;;  %v3625_v7 = vmov %v3622_v63  ;;  %v477_v35 = vmul.f32 %v3626_v60, %v471_v45 }
 0x147   : > { %v480_v33 = vmul.f32 %v3625_v7, %v472_v57  ;;  %v501_v52 = vmul.f32 %v3627_v15, %v498_v49  ;;  %v3628_v46 = vmov %v3627_v15  ;;  %v3629_v39 = vstv %s2491_s30  ;;  %s2912_s30 = sld [smem:[#allocation3 + $0x3f]] }
 0x148   : > { %v502_v17 = vmul.f32 %v3628_v46, %v496_v13  ;;  %v504_v50 = vmul.f32 %v3629_v39, %v499_v56  ;;  %v3630_v20 = vmov %v3629_v39  ;;  %v458_v24 = vadd.f32 %v456_v30, %v2561_v27 }
 0x149   : > { %v505_v4 = vmul.f32 %v3630_v20, %v497_v54  ;;  %v522_v14 = vsel %vm520_vm10, %v2400_v8, %v2411_v12  ;;  %v524_v28 = vsel %vm520_vm10, %v2411_v12, %v2400_v8  ;;  %v459_v11 = vadd.f32 %v457_v6, %v2563_v23 }
 0x14a   : > { %v521_v16 = vsel %vm520_vm10, %v2402_v9, %v2377_v1  ;;  %v523_v27 = vsel %vm520_vm10, %v2377_v1, %v2402_v9  ;;  %v2857_v29 = vshra.s32 %v3631_v25, 4  ;;  %v482_v8 = vadd.f32 %v480_v33, %v477_v35 }
 0x14b   : > { %945 = vrot.lane.b32.xlu1 %v2267_v40, %s2106_s8  ;;  %943 = vrot.lane.b32.xlu0 %v2284_v44, %s2106_s8  ;;  %v483_v12 = vsel %vm346_vm3, %v481_v36, 0.0  ;;  %v675_v23 = vstv %s2767_s6  ;;  %v678_v37 = vstv %s2778_s7  ;;  %v506_v1 = vadd.f32 %v504_v50, %v501_v52  ;;  %s3001_s6 = sld [smem:[#allocation3 + $0x42]]  ;;  %s2111_s7 = smov 114  }
 0x14c   : > { %947 = vrot.lane.b32.xlu2 %v2282_v43, %s2106_s8  ;;  %v507_v9 = vadd.f32 %v505_v4, %v502_v17  ;;  %v529_v30 = vmul.f32 %v528_v31, %v524_v28  ;;  %v530_v32 = vmul.f32 %v528_v31, %v522_v14  ;;  %v526_v0 = vmul.f32 %v525_v53, %v523_v27  ;;  %s1761_s8 = sld [smem:[#allocation3 + $0x12]] }
 0x14d   : > { %v688_v51 = vpop.permute.xlu1 %687  ;;  %v669_v63 = vpop.permute.xlu0 %668  ;;  %v527_v19 = vmul.f32 %v525_v53, %v521_v16  ;;  %v676_v13 = vmul.f32 %v675_v23, %v673_v2  ;;  %v677_v49 = vmul.f32 %v675_v23, %v671_v59  ;;  %v460_v56 = vadd.f32 %v458_v24, %v437_v58 }
 0x14e   : > { %v672_v21 = vsel %vm670_vm6, %v665_v38, %v669_v63  ;;  %v674_v57 = vsel %vm670_vm6, %v669_v63, %v665_v38  ;;  %v2881_v45 = vpop.permute.xlu2 %745  ;;  %v461_v5 = vadd.f32 %v459_v11, %v438_v47  ;;  %v484_v62 = vsel %vm347_vm4, %v482_v8, 0.0 }
 0x14f   : > { %v679_v48 = vmul.f32 %v678_v37, %v674_v57  ;;  %v680_v54 = vmul.f32 %v678_v37, %v672_v21  ;;  %vm350_vm2 = vcmp.lt.s32.totalorder %v2463_v22, 13  ;;  %v531_v53 = vadd.f32 %v529_v30, %v526_v0 }
 0x150   : > { %v532_v6 = vadd.f32 %v530_v32, %v527_v19  ;;  %v485_v38 = vadd.f32 %v483_v12, %v460_v56  ;;  %v508_v2 = vsel %vm348_vm11, %v506_v1, 0.0  ;;  %v509_v59 = vsel %vm3612_vm15, %v507_v9, 0.0 }
 0x151   : > { %v681_v7 = vadd.f32 %v679_v48, %v676_v13  ;;  %v682_v33 = vadd.f32 %v680_v54, %v677_v49  ;;  %vm351_vm5 = vcmp.lt.s32.totalorder %v2502_v34, 13  ;;  %v486_v58 = vadd.f32 %v484_v62, %v461_v5 }
 0x152   : > { %vm695_vm8 = vcmp.lt.s32.totalorder %v2435_v18, 29  ;;  %v703_v15 = vstv %s2863_s22  ;;  %v700_v52 = vstv %s2869_s23  ;;  %v510_v46 = vadd.f32 %v508_v2, %v485_v38  ;;  %s1810_s22 = sld [smem:[#allocation3 + $0x43]]  ;;  %s2112_s23 = smov 113  }
 0x153   : > { %v683_v47 = vsel %vm348_vm11, %v681_v7, 0.0  ;;  %v684_v60 = vsel %vm3612_vm15, %v682_v33, 0.0  ;;  %980 = vrot.lane.b32.xlu1 %v2284_v44, %s2107_s24  ;;  %978 = vrot.lane.b32.xlu0 %v2269_v41, %s2107_s24  ;;  %v511_v17 = vadd.f32 %v509_v59, %v486_v58  ;;  %v533_v39 = vsel %vm350_vm2, %v531_v53, 0.0 }
 0x154   : > { %v685_v35 = vadd.f32 %v683_v47, %v2774_v61  ;;  %v686_v36 = vadd.f32 %v684_v60, %v2776_v42  ;;  %982 = vrot.lane.b32.xlu2 %v2267_v40, %s2107_s24  ;;  %v534_v50 = vsel %vm351_vm5, %v532_v6, 0.0  ;;  %v535_v25 = vadd.f32 %v533_v39, %v510_v46 }
 0x155   : > { %v694_v20 = vpop.permute.xlu1 %693  ;;  %v692_v4 = vpop.permute.xlu0 %691  ;;  %v536_v8 = vadd.f32 %v534_v50, %v511_v17  ;;  %vm354_vm10 = vcmp.ge.s32.totalorder %v2823_v26, 3  ;;  %vm355_vm6 = vcmp.ge.s32.totalorder %v2857_v29, 3  ;;  %vm539_vm0 = vcmp.ge.s32.totalorder %v2823_v26, 2 }
 0x156   : > { %v697_v61 = vsel %vm695_vm8, %v2686_v10, %v694_v20  ;;  %v699_v42 = vsel %vm695_vm8, %v694_v20, %v2686_v10  ;;  %v696_v24 = vsel %vm695_vm8, %v688_v51, %v692_v4  ;;  %v698_v31 = vsel %vm695_vm8, %v692_v4, %v688_v51  ;;  %v2924_v14 = vpop.permute.xlu2 %768 }
 0x157   : > { %v704_v28 = vmul.f32 %v703_v15, %v699_v42  ;;  %v705_v11 = vmul.f32 %v703_v15, %v697_v61  ;;  %v701_v16 = vmul.f32 %v700_v52, %v698_v31  ;;  %v702_v27 = vmul.f32 %v700_v52, %v696_v24 }
 0x158   : > { %vm540_vm8 = vcmp.ge.s32.totalorder %v2857_v29, 2  ;;  %vm726_vm15 = vcmp.lt.s32.totalorder %v2435_v18, 19  ;;  %v731_v30 = vstv %s2904_s28  ;;  %v537_v32 = vsel %vm354_vm10, %v535_v25, 0.0  ;;  %s3036_s28 = sld [smem:[#allocation3 + $0x13]] }
 0x159   : > { %v706_v12 = vadd.f32 %v704_v28, %v701_v16  ;;  %v707_v23 = vadd.f32 %v705_v11, %v702_v27  ;;  %v538_v51 = vsel %vm355_vm6, %v536_v8, 0.0  ;;  %v734_v0 = vstv %s2912_s30  ;;  %s2113_s30 = smov 112  }
 0x15a   : > { %v757_v15 = vstv %s1807_s18  ;;  %v782_v27 = vstv %s2979_s15  ;;  %v779_v25 = vstv %s2981_s20  ;;  %vm799_vm10 = vcmp.lt.s32.totalorder %v2435_v18, 16  ;;  %s2114_s18 = smov 111   ;;  %s1813_s15 = sld [smem:[#allocation3 + $0x46]] }
 0x15b   : > { %v708_v10 = vsel %vm350_vm2, %v706_v12, 0.0  ;;  %v709_v37 = vsel %vm351_vm5, %v707_v23, 0.0  ;;  %1003 = vrot.lane.b32.xlu1 %v2269_v41, %s2108_s14  ;;  %984 = vrot.lane.b32.xlu0 %v2282_v43, %s2107_s24  ;;  %vm822_vm6 = vcmp.lt.s32.totalorder %v2435_v18, 15  ;;  %s3034_s24 = sld [smem:[#allocation3 + $0x44]]  ;;  %s2115_s20 = smov 110  }
 0x15c   : > { %v710_v1 = vadd.f32 %v708_v10, %v685_v35  ;;  %v711_v9 = vadd.f32 %v709_v37, %v686_v36  ;;  %1005 = vrot.lane.b32.xlu2 %v2284_v44, %s2108_s14  ;;  %v754_v36 = vstv %s1758_s17  ;;  %s3056_s17 = sld [smem:[#allocation3 + $0x45]] }
 0x15d   : > { %v723_v63 = vpop.permute.xlu1 %722  ;;  %v721_v19 = vpop.permute.xlu0 %720 }
 0x15e   : > { %v712_v21 = vsel %vm539_vm0, %v710_v1, 0.0  ;;  %v713_v57 = vsel %vm540_vm8, %v711_v9, 0.0  ;;  %v727_v13 = vsel %vm726_vm15, %v2735_v55, %v723_v63  ;;  %v729_v49 = vsel %vm726_vm15, %v723_v63, %v2735_v55  ;;  %v2951_v48 = vpop.permute.xlu2 %791 }
 0x15f   : > { %v2953_v54 = vadd.f32 %v712_v21, %v537_v32  ;;  %v2955_v56 = vadd.f32 %v713_v57, %v538_v51  ;;  %v732_v5 = vmul.f32 %v731_v30, %v729_v49  ;;  %v733_v62 = vmul.f32 %v731_v30, %v727_v13 }
 0x160   : > { %v728_v53 = vsel %vm726_vm15, %v721_v19, %v2812_v3  ;;  %v730_v6 = vsel %vm726_vm15, %v2812_v3, %v721_v19  ;;  %vm749_vm0 = vcmp.lt.s32.totalorder %v2435_v18, 18  ;;  %vm774_vm15 = vcmp.lt.s32.totalorder %v2435_v18, 17 }
 0x161   : > { %v735_v7 = vmul.f32 %v734_v0, %v730_v6  ;;  %v736_v33 = vmul.f32 %v734_v0, %v728_v53  ;;  %v804_v49 = vstv %s2997_s5  ;;  %vm847_vm8 = vcmp.lt.s32.totalorder %v2435_v18, 14  ;;  %s3108_s5 = sld [smem:[#allocation3 + $0x16]] }
 0x163   : > { %v737_v38 = vadd.f32 %v735_v7, %v732_v5  ;;  %v738_v55 = vadd.f32 %v736_v33, %v733_v62  ;;  %1009 = vrot.lane.b32.xlu1 %v2282_v43, %s2108_s14  ;;  %1007 = vrot.lane.b32.xlu0 %v2267_v40, %s2108_s14  ;;  %v807_v5 = vstv %s3001_s6  ;;  %s3052_s14 = sld [smem:[#allocation3 + $0x14]]  ;;  %s2116_s6 = smov 109  }
 0x164   : > { %1028 = vrot.lane.b32.xlu2 %v2269_v41, %s2109_s19 }
 0x165   : > { %v739_v2 = vsel %vm340_vm7, %v737_v38, 0.0  ;;  %v740_v3 = vsel %vm341_vm9, %v738_v55, 0.0  ;;  %v744_v59 = vpop.permute.xlu1 %743  ;;  %v742_v58 = vpop.permute.xlu0 %741 }
 0x166   : > { %v750_v47 = vsel %vm749_vm0, %v742_v58, %v2881_v45  ;;  %v752_v60 = vsel %vm749_vm0, %v2881_v45, %v742_v58  ;;  %v798_v35 = vpop.permute.xlu2 %797 }
 0x167   : > { %v755_v50 = vmul.f32 %v754_v36, %v752_v60  ;;  %v756_v20 = vmul.f32 %v754_v36, %v750_v47 }
 0x16b   : > { %1032 = vrot.lane.b32.xlu1 %v2267_v40, %s2109_s19  ;;  %1030 = vrot.lane.b32.xlu0 %v2284_v44, %s2109_s19 }
 0x16c   : > { %1034 = vrot.lane.b32.xlu2 %v2282_v43, %s2109_s19  ;;  %s3078_s19 = sld [smem:[#allocation3 + $0x15]] }
 0x16d   : > { %v767_v52 = vpop.permute.xlu1 %766  ;;  %v748_v46 = vpop.permute.xlu0 %747 }
 0x16e   : > { %v751_v17 = vsel %vm749_vm0, %v744_v59, %v748_v46  ;;  %v753_v45 = vsel %vm749_vm0, %v748_v46, %v744_v59  ;;  %v2988_v39 = vpop.permute.xlu2 %818  ;;  %vm3632_vm0 = vcmp.lt.s32.totalorder %v2502_v34, 14 }
 0x16f   : > { %v758_v4 = vmul.f32 %v757_v15, %v753_v45  ;;  %v759_v61 = vmul.f32 %v757_v15, %v751_v17  ;;  %v827_v45 = vstv %s1761_s8  ;;  %s3128_s8 = sld [smem:[#allocation3 + $0x48]] }
 0x171   : > { %v760_v42 = vadd.f32 %v758_v4, %v755_v50  ;;  %v761_v24 = vadd.f32 %v759_v61, %v756_v20  ;;  %v830_v50 = vstv %s1810_s22  ;;  %s3135_s22 = sld [smem:[#allocation3 + $0x18]] }
 0x173   : > { %v762_v31 = vsel %vm342_vm12, %v760_v42, 0.0  ;;  %v763_v28 = vsel %vm343_vm13, %v761_v24, 0.0  ;;  %1059 = vrot.lane.b32.xlu1 %v2284_v44, %s2110_s4  ;;  %1057 = vrot.lane.b32.xlu0 %v2269_v41, %s2110_s4 }
 0x174   : > { %v764_v11 = vadd.f32 %v762_v31, %v739_v2  ;;  %v765_v16 = vadd.f32 %v763_v28, %v740_v3  ;;  %1061 = vrot.lane.b32.xlu2 %v2267_v40, %s2110_s4 }
 0x175   : > { %v773_v8 = vpop.permute.xlu1 %772  ;;  %v771_v12 = vpop.permute.xlu0 %770 }
 0x176   : > { %v776_v23 = vsel %vm774_vm15, %v2924_v14, %v773_v8  ;;  %v778_v10 = vsel %vm774_vm15, %v773_v8, %v2924_v14  ;;  %v775_v37 = vsel %vm774_vm15, %v767_v52, %v771_v12  ;;  %v777_v1 = vsel %vm774_vm15, %v771_v12, %v767_v52  ;;  %v3006_v9 = vpop.permute.xlu2 %841 }
 0x177   : > { %v783_v30 = vmul.f32 %v782_v27, %v778_v10  ;;  %v784_v32 = vmul.f32 %v782_v27, %v776_v23  ;;  %v780_v51 = vmul.f32 %v779_v25, %v777_v1  ;;  %v781_v63 = vmul.f32 %v779_v25, %v775_v37 }
 0x178   : > { %v855_v10 = vstv %s3034_s24  ;;  %v852_v37 = vstv %s3036_s28  ;;  %vm872_vm15 = vcmp.lt.s32.totalorder %v2435_v18, 13  ;;  %s3144_s24 = sld [smem:[#allocation3 + $0x49]] }
 0x179   : > { %v785_v0 = vadd.f32 %v783_v30, %v780_v51  ;;  %v786_v19 = vadd.f32 %v784_v32, %v781_v63  ;;  %s3162_s28 = sld [smem:[#allocation3 + $0x19]] }
 0x17b   : > { %v787_v21 = vsel %vm344_vm14, %v785_v0, 0.0  ;;  %v788_v57 = vsel %vm345_vm1, %v786_v19, 0.0  ;;  %1080 = vrot.lane.b32.xlu1 %v2269_v41, %s2111_s7  ;;  %1063 = vrot.lane.b32.xlu0 %v2282_v43, %s2110_s4  ;;  %s3105_s4 = sld [smem:[#allocation3 + $0x47]] }
 0x17c   : > { %v789_v14 = vadd.f32 %v787_v21, %v764_v11  ;;  %v790_v13 = vadd.f32 %v788_v57, %v765_v16  ;;  %1082 = vrot.lane.b32.xlu2 %v2284_v44, %s2111_s7 }
 0x17d   : > { %v796_v62 = vpop.permute.xlu1 %795  ;;  %v794_v53 = vpop.permute.xlu0 %793 }
 0x17e   : > { %v800_v6 = vsel %vm799_vm10, %v2951_v48, %v796_v62  ;;  %v802_v7 = vsel %vm799_vm10, %v796_v62, %v2951_v48  ;;  %v801_v33 = vsel %vm799_vm10, %v794_v53, %v798_v35  ;;  %v803_v38 = vsel %vm799_vm10, %v798_v35, %v794_v53  ;;  %v3020_v55 = vpop.permute.xlu2 %864 }
 0x17f   : > { %v805_v2 = vmul.f32 %v804_v49, %v802_v7  ;;  %v806_v3 = vmul.f32 %v804_v49, %v800_v6  ;;  %v808_v59 = vmul.f32 %v807_v5, %v803_v38  ;;  %v809_v58 = vmul.f32 %v807_v5, %v801_v33 }
 0x180   : > { %v877_v7 = vstv %s3052_s14  ;;  %v880_v33 = vstv %s3056_s17  ;;  %vm716_vm10 = vcmp.ge.s32.totalorder %v2823_v26, 1  ;;  %s2118_s14 = smov 98   ;;  %s3177_s17 = sld [smem:[#allocation3 + $0x4b]] }
 0x181   : > { %v810_v47 = vadd.f32 %v808_v59, %v805_v2  ;;  %v811_v60 = vadd.f32 %v809_v58, %v806_v3 }
 0x183   : > { %v812_v36 = vadd.f32 %v810_v47, %v789_v14  ;;  %v813_v15 = vadd.f32 %v811_v60, %v790_v13  ;;  %1086 = vrot.lane.b32.xlu1 %v2282_v43, %s2111_s7  ;;  %1084 = vrot.lane.b32.xlu0 %v2267_v40, %s2111_s7  ;;  %s3124_s7 = sld [smem:[#allocation3 + $0x17]] }
 0x184   : > { %1105 = vrot.lane.b32.xlu2 %v2269_v41, %s2112_s23 }
 0x185   : > { %v817_v48 = vpop.permute.xlu1 %816  ;;  %v815_v35 = vpop.permute.xlu0 %814 }
 0x186   : > { %v823_v52 = vsel %vm822_vm6, %v815_v35, %v2988_v39  ;;  %v825_v46 = vsel %vm822_vm6, %v2988_v39, %v815_v35  ;;  %v871_v17 = vpop.permute.xlu2 %870 }
 0x187   : > { %v828_v24 = vmul.f32 %v827_v45, %v825_v46  ;;  %v829_v31 = vmul.f32 %v827_v45, %v823_v52 }
 0x18b   : > { %1109 = vrot.lane.b32.xlu1 %v2267_v40, %s2112_s23  ;;  %1107 = vrot.lane.b32.xlu0 %v2284_v44, %s2112_s23 }
 0x18c   : > { %1111 = vrot.lane.b32.xlu2 %v2282_v43, %s2112_s23  ;;  %s2117_s23 = smov 99  }
 0x18d   : > { %v840_v20 = vpop.permute.xlu1 %839  ;;  %v821_v4 = vpop.permute.xlu0 %820 }
 0x18e   : > { %v824_v61 = vsel %vm822_vm6, %v817_v48, %v821_v4  ;;  %v826_v39 = vsel %vm822_vm6, %v821_v4, %v817_v48  ;;  %v3043_v42 = vpop.permute.xlu2 %897  ;;  %vm717_vm6 = vcmp.ge.s32.totalorder %v2857_v29, 1 }
 0x18f   : > { %v831_v28 = vmul.f32 %v830_v50, %v826_v39  ;;  %v832_v11 = vmul.f32 %v830_v50, %v824_v61 }
 0x191   : > { %v833_v16 = vadd.f32 %v831_v28, %v828_v24  ;;  %v834_v27 = vadd.f32 %v832_v11, %v829_v31 }
 0x193   : > { %v835_v25 = vsel %vm346_vm3, %v833_v16, 0.0  ;;  %v836_v8 = vsel %vm347_vm4, %v834_v27, 0.0  ;;  %1132 = vrot.lane.b32.xlu1 %v2284_v44, %s2113_s30  ;;  %1130 = vrot.lane.b32.xlu0 %v2269_v41, %s2113_s30  ;;  %v906_v27 = vstv %s3078_s19  ;;  %s2119_s19 = smov 97  }
 0x194   : > { %v837_v12 = vadd.f32 %v835_v25, %v812_v36  ;;  %v838_v23 = vadd.f32 %v836_v8, %v813_v15  ;;  %1134 = vrot.lane.b32.xlu2 %v2267_v40, %s2113_s30  ;;  %v909_v25 = vstv %s1813_s15  ;;  %s3196_s15 = sld [smem:[#allocation3 + $0x1b]] }
 0x195   : > { %v846_v1 = vpop.permute.xlu1 %845  ;;  %v844_v30 = vpop.permute.xlu0 %843 }
 0x196   : > { %v849_v32 = vsel %vm847_vm8, %v3006_v9, %v846_v1  ;;  %v851_v51 = vsel %vm847_vm8, %v846_v1, %v3006_v9  ;;  %v848_v63 = vsel %vm847_vm8, %v840_v20, %v844_v30  ;;  %v850_v0 = vsel %vm847_vm8, %v844_v30, %v840_v20  ;;  %v3061_v19 = vpop.permute.xlu2 %918 }
 0x197   : > { %v856_v21 = vmul.f32 %v855_v10, %v851_v51  ;;  %v857_v57 = vmul.f32 %v855_v10, %v849_v32  ;;  %v853_v14 = vmul.f32 %v852_v37, %v850_v0  ;;  %v854_v13 = vmul.f32 %v852_v37, %v848_v63 }
 0x198   : > { %vm901_vm8 = vcmp.lt.s32.totalorder %v2435_v18, 3  ;;  %v932_v0 = vstv %s3105_s4  ;;  %s2120_s4 = smov 96  }
 0x199   : > { %v858_v49 = vadd.f32 %v856_v21, %v853_v14  ;;  %v859_v5 = vadd.f32 %v857_v57, %v854_v13  ;;  %v929_v21 = vstv %s3108_s5  ;;  %s1771_s5 = sld [smem:[#allocation3 + $0x1c]] }
 0x19b   : > { %v860_v62 = vsel %vm348_vm11, %v858_v49, 0.0  ;;  %v861_v53 = vsel %vm3632_vm0, %v859_v5, 0.0  ;;  %1153 = vrot.lane.b32.xlu1 %v2269_v41, %s2114_s18  ;;  %1136 = vrot.lane.b32.xlu0 %v2282_v43, %s2113_s30  ;;  %vm924_vm0 = vcmp.lt.s32.totalorder %v2435_v18, 2  ;;  %s1817_s30 = sld [smem:[#allocation3 + $0x4a]] }
 0x19c   : > { %v862_v9 = vadd.f32 %v860_v62, %v837_v12  ;;  %v863_v6 = vadd.f32 %v861_v53, %v838_v23  ;;  %1155 = vrot.lane.b32.xlu2 %v2284_v44, %s2114_s18 }
 0x19d   : > { %v869_v38 = vpop.permute.xlu1 %868  ;;  %v867_v2 = vpop.permute.xlu0 %866 }
 0x19e   : > { %v873_v3 = vsel %vm872_vm15, %v3020_v55, %v869_v38  ;;  %v875_v59 = vsel %vm872_vm15, %v869_v38, %v3020_v55  ;;  %v874_v58 = vsel %vm872_vm15, %v867_v2, %v871_v17  ;;  %v876_v47 = vsel %vm872_vm15, %v871_v17, %v867_v2  ;;  %v3075_v60 = vpop.permute.xlu2 %941 }
 0x19f   : > { %v878_v36 = vmul.f32 %v877_v7, %v875_v59  ;;  %v879_v15 = vmul.f32 %v877_v7, %v873_v3  ;;  %v881_v48 = vmul.f32 %v880_v33, %v876_v47  ;;  %v882_v35 = vmul.f32 %v880_v33, %v874_v58 }
 0x1a0   : > { %vm949_vm15 = vcmp.lt.s32.totalorder %v2435_v18, 1  ;;  %v954_v47 = vstv %s3124_s7  ;;  %s2121_s7 = smov 95  }
 0x1a1   : > { %v883_v52 = vadd.f32 %v881_v48, %v878_v36  ;;  %v884_v46 = vadd.f32 %v882_v35, %v879_v15  ;;  %v957_v36 = vstv %s3128_s8  ;;  %s3245_s8 = sld [smem:[#allocation3 + $0x4e]] }
 0x1a3   : > { %v885_v45 = vsel %vm350_vm2, %v883_v52, 0.0  ;;  %v886_v55 = vsel %vm351_vm5, %v884_v46, 0.0  ;;  %1159 = vrot.lane.b32.xlu1 %v2282_v43, %s2114_s18  ;;  %1157 = vrot.lane.b32.xlu0 %v2267_v40, %s2114_s18  ;;  %s3180_s18 = sld [smem:[#allocation3 + $0x1a]] }
 0x1a4   : > { %v887_v17 = vadd.f32 %v885_v45, %v862_v9  ;;  %v888_v50 = vadd.f32 %v886_v55, %v863_v6  ;;  %1178 = vrot.lane.b32.xlu2 %v2269_v41, %s2115_s20 }
 0x1a5   : > { %v896_v20 = vpop.permute.xlu1 %895  ;;  %v894_v4 = vpop.permute.xlu0 %893 }
 0x1a6   : > { %v889_v61 = vsel %vm716_vm10, %v887_v17, 0.0  ;;  %v890_v39 = vsel %vm717_vm6, %v888_v50, 0.0  ;;  %v902_v24 = vsel %vm901_vm8, %v894_v4, %v3043_v42  ;;  %v904_v31 = vsel %vm901_vm8, %v3043_v42, %v894_v4  ;;  %v3095_v28 = vpop.permute.xlu2 %947 }
 0x1a7   : > { %v3098_v11 = vadd.f32 %v889_v61, %v2953_v54  ;;  %v3101_v16 = vadd.f32 %v890_v39, %v2955_v56  ;;  %v907_v23 = vmul.f32 %v906_v27, %v904_v31  ;;  %v908_v10 = vmul.f32 %v906_v27, %v902_v24 }
 0x1a8   : > { %v966_v24 = vstv %s3135_s22  ;;  %vm986_vm10 = vcmp.lt.s32.totalorder %v2435_v18, 127  ;;  %vm1011_vm6 = vcmp.lt.s32.totalorder %v2435_v18, 126  ;;  %s3247_s22 = sld [smem:[#allocation3 + $0x1d]] }
 0x1ab   : > { %1182 = vrot.lane.b32.xlu1 %v2267_v40, %s2115_s20  ;;  %1180 = vrot.lane.b32.xlu0 %v2284_v44, %s2115_s20 }
 0x1ac   : > { %1184 = vrot.lane.b32.xlu2 %v2282_v43, %s2115_s20  ;;  %s3200_s20 = sld [smem:[#allocation3 + $0x4c]] }
 0x1ad   : > { %v917_v42 = vpop.permute.xlu1 %916  ;;  %v900_v8 = vpop.permute.xlu0 %899 }
 0x1ae   : > { %v903_v54 = vsel %vm901_vm8, %v896_v20, %v900_v8  ;;  %v905_v56 = vsel %vm901_vm8, %v900_v8, %v896_v20  ;;  %v3115_v12 = vpop.permute.xlu2 %982  ;;  %vm3633_vm8 = vcmp.lt.s32.totalorder %v2502_v34, 14 }
 0x1af   : > { %v910_v37 = vmul.f32 %v909_v25, %v905_v56  ;;  %v911_v1 = vmul.f32 %v909_v25, %v903_v54 }
 0x1b1   : > { %v912_v30 = vadd.f32 %v910_v37, %v907_v23  ;;  %v913_v32 = vadd.f32 %v911_v1, %v908_v10  ;;  %v1963_v23 = vld [vmem:[#allocation2] sm:$0x3]  ;;  %v1964_v37 = vld [vmem:[#allocation2 + $0x2] sm:$0x3] }
 0x1b2   : > { %v967_v10 = vmul.f32 %v1963_v23, %v966_v24 }
 0x1b3   : > { %v914_v51 = vsel %vm340_vm7, %v912_v30, 0.0  ;;  %v915_v63 = vsel %vm341_vm9, %v913_v32, 0.0  ;;  %1205 = vrot.lane.b32.xlu1 %v2284_v44, %s2116_s6  ;;  %1203 = vrot.lane.b32.xlu0 %v2269_v41, %s2116_s6 }
 0x1b4   : > { %1207 = vrot.lane.b32.xlu2 %v2267_v40, %s2116_s6 }
 0x1b5   : > { %v923_v57 = vpop.permute.xlu1 %922  ;;  %v921_v14 = vpop.permute.xlu0 %920 }
 0x1b6   : > { %v926_v13 = vsel %vm924_vm0, %v3061_v19, %v923_v57  ;;  %v928_v49 = vsel %vm924_vm0, %v923_v57, %v3061_v19  ;;  %v925_v5 = vsel %vm924_vm0, %v917_v42, %v921_v14  ;;  %v927_v62 = vsel %vm924_vm0, %v921_v14, %v917_v42  ;;  %v3133_v53 = vpop.permute.xlu2 %1005 }
 0x1b7   : > { %v933_v9 = vmul.f32 %v932_v0, %v928_v49  ;;  %v934_v6 = vmul.f32 %v932_v0, %v926_v13  ;;  %v930_v7 = vmul.f32 %v929_v21, %v927_v62  ;;  %v931_v33 = vmul.f32 %v929_v21, %v925_v5 }
 0x1b8   : > { %vm1036_vm0 = vcmp.lt.s32.totalorder %v2435_v18, 125 }
 0x1b9   : > { %v935_v38 = vadd.f32 %v933_v9, %v930_v7  ;;  %v936_v2 = vadd.f32 %v934_v6, %v931_v33 }
 0x1bb   : > { %v937_v3 = vsel %vm342_vm12, %v935_v38, 0.0  ;;  %v938_v19 = vsel %vm343_vm13, %v936_v2, 0.0  ;;  %1234 = vrot.lane.b32.xlu1 %v2269_v41, %s2117_s23  ;;  %1209 = vrot.lane.b32.xlu0 %v2282_v43, %s2116_s6  ;;  %s1820_s6 = sld [smem:[#allocation3 + $0x4d]] }
 0x1bc   : > { %v939_v59 = vadd.f32 %v937_v3, %v914_v51  ;;  %v940_v58 = vadd.f32 %v938_v19, %v915_v63  ;;  %1236 = vrot.lane.b32.xlu2 %v2284_v44, %s2117_s23  ;;  %v991_v51 = vstv %s3162_s28  ;;  %v994_v63 = vstv %s1817_s30  ;;  %s3267_s28 = sld [smem:[#allocation3 + $0x4f]]  ;;  %s2123_s30 = smov 83  }
 0x1bd   : > { %v946_v15 = vpop.permute.xlu1 %945  ;;  %v944_v48 = vpop.permute.xlu0 %943 }
 0x1be   : > { %v950_v35 = vsel %vm949_vm15, %v3075_v60, %v946_v15  ;;  %v952_v52 = vsel %vm949_vm15, %v946_v15, %v3075_v60  ;;  %v951_v46 = vsel %vm949_vm15, %v944_v48, %v3095_v28  ;;  %v953_v45 = vsel %vm949_vm15, %v3095_v28, %v944_v48  ;;  %v3153_v55 = vpop.permute.xlu2 %1028 }
 0x1bf   : > { %v955_v17 = vmul.f32 %v954_v47, %v952_v52  ;;  %v956_v50 = vmul.f32 %v954_v47, %v950_v35  ;;  %v958_v20 = vmul.f32 %v957_v36, %v953_v45  ;;  %v959_v4 = vmul.f32 %v957_v36, %v951_v46 }
 0x1c0   : > { %v968_v28 = vstv %s3144_s24  ;;  %v1019_v47 = vstv %s3177_s17  ;;  %v1016_v36 = vstv %s3180_s18  ;;  %vm1065_vm15 = vcmp.lt.s32.totalorder %v2435_v18, 115  ;;  %s3263_s24 = sld [smem:[#allocation3 + $0x1e]]  ;;  %s2124_s18 = smov 82  }
 0x1c1   : > { %v960_v61 = vadd.f32 %v958_v20, %v955_v17  ;;  %v961_v39 = vadd.f32 %v959_v4, %v956_v50  ;;  %v969_v1 = vmul.f32 %v1964_v37, %v968_v28  ;;  %s1823_s17 = sld [smem:[#allocation3 + $0x50]] }
 0x1c3   : > { %v962_v31 = vsel %vm344_vm14, %v960_v61, 0.0  ;;  %v963_v60 = vsel %vm345_vm1, %v961_v39, 0.0  ;;  %1240 = vrot.lane.b32.xlu1 %v2282_v43, %s2117_s23  ;;  %1238 = vrot.lane.b32.xlu0 %v2267_v40, %s2117_s23  ;;  %v970_v32 = vadd.f32 %v969_v1, %v967_v10  ;;  %s2122_s23 = smov 94  }
 0x1c4   : > { %v964_v27 = vadd.f32 %v962_v31, %v939_v59  ;;  %v965_v25 = vadd.f32 %v963_v60, %v940_v58  ;;  %1257 = vrot.lane.b32.xlu2 %v2269_v41, %s2118_s14 }
 0x1c5   : > { %v981_v42 = vpop.permute.xlu1 %980  ;;  %v979_v8 = vpop.permute.xlu0 %978  ;;  %v972_v21 = vperm.slane %v970_v32, 0  ;;  %v973_v57 = vperm.slane %v970_v32, 1 }
 0x1c6   : > { %v987_v54 = vsel %vm986_vm10, %v979_v8, %v3115_v12  ;;  %v989_v56 = vsel %vm986_vm10, %v3115_v12, %v979_v8  ;;  %v3173_v30 = vpop.permute.xlu2 %1034 }
 0x1c7   : > { %v992_v5 = vmul.f32 %v991_v51, %v987_v54  ;;  %v993_v62 = vmul.f32 %v991_v51, %v989_v56  ;;  %v976_v38 = vadd.f32 %v972_v21, %v964_v27  ;;  %v977_v2 = vadd.f32 %v973_v57, %v965_v25 }
 0x1c8   : > { %v1041_v27 = vstv %s3196_s15  ;;  %v1044_v25 = vstv %s3200_s20  ;;  %s3306_s15 = sld [smem:[#allocation3 + $0x20]]  ;;  %s2125_s20 = smov 81  }
 0x1cb   : > { %1261 = vrot.lane.b32.xlu1 %v2267_v40, %s2118_s14  ;;  %1259 = vrot.lane.b32.xlu0 %v2284_v44, %s2118_s14 }
 0x1cc   : > { %1263 = vrot.lane.b32.xlu2 %v2282_v43, %s2118_s14  ;;  %s1774_s14 = sld [smem:[#allocation3 + $0x1f]] }
 0x1cd   : > { %v1004_v12 = vpop.permute.xlu1 %1003  ;;  %v985_v0 = vpop.permute.xlu0 %984 }
 0x1ce   : > { %v988_v14 = vsel %vm986_vm10, %v981_v42, %v985_v0  ;;  %v990_v13 = vsel %vm986_vm10, %v985_v0, %v981_v42  ;;  %v3187_v49 = vpop.permute.xlu2 %1061  ;;  %vm1088_vm10 = vcmp.lt.s32.totalorder %v2435_v18, 114 }
 0x1cf   : > { %v995_v9 = vmul.f32 %v994_v63, %v988_v14  ;;  %v996_v6 = vmul.f32 %v994_v63, %v990_v13 }
 0x1d1   : > { %v997_v7 = vadd.f32 %v995_v9, %v992_v5  ;;  %v998_v33 = vadd.f32 %v996_v6, %v993_v62 }
 0x1d3   : > { %v999_v3 = vsel %vm346_vm3, %v997_v7, 0.0  ;;  %v1000_v19 = vsel %vm347_vm4, %v998_v33, 0.0  ;;  %1284 = vrot.lane.b32.xlu1 %v2284_v44, %s2119_s19  ;;  %1282 = vrot.lane.b32.xlu0 %v2269_v41, %s2119_s19  ;;  %v1073_v33 = vstv %s1820_s6  ;;  %s2126_s6 = smov 80  }
 0x1d4   : > { %v1001_v59 = vadd.f32 %v999_v3, %v976_v38  ;;  %v1002_v58 = vadd.f32 %v1000_v19, %v977_v2  ;;  %1286 = vrot.lane.b32.xlu2 %v2267_v40, %s2119_s19 }
 0x1d5   : > { %v1010_v15 = vpop.permute.xlu1 %1009  ;;  %v1008_v48 = vpop.permute.xlu0 %1007 }
 0x1d6   : > { %v1013_v35 = vsel %vm1011_vm6, %v3133_v53, %v1010_v15  ;;  %v1015_v52 = vsel %vm1011_vm6, %v1010_v15, %v3133_v53  ;;  %v1012_v46 = vsel %vm1011_vm6, %v1004_v12, %v1008_v48  ;;  %v1014_v45 = vsel %vm1011_vm6, %v1008_v48, %v1004_v12  ;;  %v3205_v17 = vpop.permute.xlu2 %1082 }
 0x1d7   : > { %v1020_v50 = vmul.f32 %v1019_v47, %v1013_v35  ;;  %v1021_v20 = vmul.f32 %v1019_v47, %v1015_v52  ;;  %v1017_v4 = vmul.f32 %v1016_v36, %v1012_v46  ;;  %v1018_v61 = vmul.f32 %v1016_v36, %v1014_v45 }
 0x1d8   : > { %v1096_v52 = vstv %s3245_s8  ;;  %v1093_v46 = vstv %s3247_s22  ;;  %vm1113_vm6 = vcmp.lt.s32.totalorder %v2435_v18, 113  ;;  %s1826_s8 = sld [smem:[#allocation3 + $0x53]]  ;;  %s2127_s22 = smov 79  }
 0x1d9   : > { %v1022_v39 = vadd.f32 %v1020_v50, %v1017_v4  ;;  %v1023_v24 = vadd.f32 %v1021_v20, %v1018_v61 }
 0x1db   : > { %v1024_v31 = vsel %vm348_vm11, %v1022_v39, 0.0  ;;  %v1025_v60 = vsel %vm3633_vm8, %v1023_v24, 0.0  ;;  %1307 = vrot.lane.b32.xlu1 %v2269_v41, %s2120_s4  ;;  %1288 = vrot.lane.b32.xlu0 %v2282_v43, %s2119_s19  ;;  %vm1138_vm8 = vcmp.lt.s32.totalorder %v2435_v18, 112  ;;  %s3304_s19 = sld [smem:[#allocation3 + $0x51]] }
 0x1dc   : > { %v1026_v53 = vadd.f32 %v1024_v31, %v1001_v59  ;;  %v1027_v28 = vadd.f32 %v1025_v60, %v1002_v58  ;;  %1309 = vrot.lane.b32.xlu2 %v2284_v44, %s2120_s4 }
 0x1dd   : > { %v1033_v42 = vpop.permute.xlu1 %1032  ;;  %v1031_v8 = vpop.permute.xlu0 %1030 }
 0x1de   : > { %v1037_v54 = vsel %vm1036_vm0, %v3153_v55, %v1033_v42  ;;  %v1039_v56 = vsel %vm1036_vm0, %v1033_v42, %v3153_v55  ;;  %v1038_v23 = vsel %vm1036_vm0, %v1031_v8, %v3173_v30  ;;  %v1040_v10 = vsel %vm1036_vm0, %v3173_v30, %v1031_v8  ;;  %v3221_v37 = vpop.permute.xlu2 %1105 }
 0x1df   : > { %v1042_v1 = vmul.f32 %v1041_v27, %v1037_v54  ;;  %v1043_v32 = vmul.f32 %v1041_v27, %v1039_v56  ;;  %v1045_v51 = vmul.f32 %v1044_v25, %v1038_v23  ;;  %v1046_v63 = vmul.f32 %v1044_v25, %v1040_v10 }
 0x1e0   : > { %v1118_v56 = vstv %s3263_s24  ;;  %v1121_v23 = vstv %s3267_s28  ;;  %vm1161_vm0 = vcmp.lt.s32.totalorder %v2435_v18, 111  ;;  %s3364_s24 = sld [smem:[#allocation3 + $0x23]]  ;;  %s2128_s28 = smov 93  }
 0x1e1   : > { %v1047_v12 = vadd.f32 %v1045_v51, %v1042_v1  ;;  %v1048_v0 = vadd.f32 %v1046_v63, %v1043_v32 }
 0x1e3   : > { %v1049_v21 = vsel %vm350_vm2, %v1047_v12, 0.0  ;;  %v1050_v57 = vsel %vm351_vm5, %v1048_v0, 0.0  ;;  %1313 = vrot.lane.b32.xlu1 %v2282_v43, %s2120_s4  ;;  %1311 = vrot.lane.b32.xlu0 %v2267_v40, %s2120_s4  ;;  %s3318_s4 = sld [smem:[#allocation3 + $0x21]] }
 0x1e4   : > { %v1051_v55 = vadd.f32 %v1049_v21, %v1026_v53  ;;  %v1052_v30 = vadd.f32 %v1050_v57, %v1027_v28  ;;  %1330 = vrot.lane.b32.xlu2 %v2269_v41, %s2121_s7 }
 0x1e5   : > { %v1060_v14 = vpop.permute.xlu1 %1059  ;;  %v1058_v13 = vpop.permute.xlu0 %1057 }
 0x1e6   : > { %v3232_v5 = vadd.f32 %v1051_v55, %v3098_v11  ;;  %v3235_v62 = vadd.f32 %v1052_v30, %v3101_v16  ;;  %v1066_v9 = vsel %vm1065_vm15, %v1058_v13, %v3187_v49  ;;  %v1068_v6 = vsel %vm1065_vm15, %v3187_v49, %v1058_v13  ;;  %v1112_v7 = vpop.permute.xlu2 %1111 }
 0x1e7   : > { %v1070_v11 = vstv %s1771_s5  ;;  %s3322_s5 = sld [smem:[#allocation3 + $0x52]] }
 0x1e8   : > { %v1071_v19 = vmul.f32 %v1070_v11, %v1066_v9  ;;  %v1072_v59 = vmul.f32 %v1070_v11, %v1068_v6 }
 0x1eb   : > { %1334 = vrot.lane.b32.xlu1 %v2267_v40, %s2121_s7  ;;  %1332 = vrot.lane.b32.xlu0 %v2284_v44, %s2121_s7 }
 0x1ec   : > { %1336 = vrot.lane.b32.xlu2 %v2282_v43, %s2121_s7  ;;  %s1777_s7 = sld [smem:[#allocation3 + $0x22]] }
 0x1ed   : > { %v1081_v16 = vpop.permute.xlu1 %1080  ;;  %v1064_v38 = vpop.permute.xlu0 %1063 }
 0x1ee   : > { %v1067_v2 = vsel %vm1065_vm15, %v1060_v14, %v1064_v38  ;;  %v1069_v49 = vsel %vm1065_vm15, %v1064_v38, %v1060_v14  ;;  %v3254_v3 = vpop.permute.xlu2 %1134  ;;  %vm1186_vm15 = vcmp.lt.s32.totalorder %v2435_v18, 110 }
 0x1ef   : > { %v1074_v58 = vmul.f32 %v1073_v33, %v1067_v2  ;;  %v1075_v47 = vmul.f32 %v1073_v33, %v1069_v49  ;;  %v1143_v49 = vstv %s1774_s14  ;;  %s3386_s14 = sld [smem:[#allocation3 + $0x55]] }
 0x1f1   : > { %v1076_v36 = vadd.f32 %v1074_v58, %v1071_v19  ;;  %v1077_v15 = vadd.f32 %v1075_v47, %v1072_v59  ;;  %v1146_v19 = vstv %s1823_s17  ;;  %s2129_s17 = smov 78  }
 0x1f3   : > { %v1078_v48 = vsel %vm340_vm7, %v1076_v36, 0.0  ;;  %v1079_v35 = vsel %vm341_vm9, %v1077_v15, 0.0  ;;  %1357 = vrot.lane.b32.xlu1 %v2284_v44, %s2122_s23  ;;  %1355 = vrot.lane.b32.xlu0 %v2269_v41, %s2122_s23 }
 0x1f4   : > { %1359 = vrot.lane.b32.xlu2 %v2267_v40, %s2122_s23 }
 0x1f5   : > { %v1087_v45 = vpop.permute.xlu1 %1086  ;;  %v1085_v50 = vpop.permute.xlu0 %1084 }
 0x1f6   : > { %v1090_v20 = vsel %vm1088_vm10, %v3205_v17, %v1087_v45  ;;  %v1092_v4 = vsel %vm1088_vm10, %v1087_v45, %v3205_v17  ;;  %v1089_v61 = vsel %vm1088_vm10, %v1081_v16, %v1085_v50  ;;  %v1091_v39 = vsel %vm1088_vm10, %v1085_v50, %v1081_v16  ;;  %v3272_v24 = vpop.permute.xlu2 %1155 }
 0x1f7   : > { %v1097_v31 = vmul.f32 %v1096_v52, %v1090_v20  ;;  %v1098_v60 = vmul.f32 %v1096_v52, %v1092_v4  ;;  %v1094_v53 = vmul.f32 %v1093_v46, %v1089_v61  ;;  %v1095_v28 = vmul.f32 %v1093_v46, %v1091_v39 }
 0x1f8   : > { %v1169_v4 = vstv %s3304_s19  ;;  %v1166_v61 = vstv %s3306_s15  ;;  %vm3634_vm10 = vcmp.lt.s32.totalorder %v2502_v34, 14  ;;  %s1829_s19 = sld [smem:[#allocation3 + $0x56]]  ;;  %s2130_s15 = smov 77  }
 0x1f9   : > { %v1099_v27 = vadd.f32 %v1097_v31, %v1094_v53  ;;  %v1100_v25 = vadd.f32 %v1098_v60, %v1095_v28 }
 0x1fb   : > { %v1101_v42 = vsel %vm342_vm12, %v1099_v27, 0.0  ;;  %v1102_v8 = vsel %vm343_vm13, %v1100_v25, 0.0  ;;  %1411 = vrot.lane.b32.xlu1 %v2269_v41, %s2123_s30  ;;  %1361 = vrot.lane.b32.xlu0 %v2282_v43, %s2122_s23  ;;  %s3361_s23 = sld [smem:[#allocation3 + $0x54]] }
 0x1fc   : > { %v1103_v17 = vadd.f32 %v1101_v42, %v1078_v48  ;;  %v1104_v54 = vadd.f32 %v1102_v8, %v1079_v35  ;;  %1413 = vrot.lane.b32.xlu2 %v2284_v44, %s2123_s30 }
 0x1fd   : > { %v1110_v10 = vpop.permute.xlu1 %1109  ;;  %v1108_v1 = vpop.permute.xlu0 %1107 }
 0x1fe   : > { %v1114_v32 = vsel %vm1113_vm6, %v3221_v37, %v1110_v10  ;;  %v1116_v51 = vsel %vm1113_vm6, %v1110_v10, %v3221_v37  ;;  %v1115_v63 = vsel %vm1113_vm6, %v1108_v1, %v1112_v7  ;;  %v1117_v12 = vsel %vm1113_vm6, %v1112_v7, %v1108_v1  ;;  %v3286_v0 = vpop.permute.xlu2 %1178 }
 0x1ff   : > { %v1119_v21 = vmul.f32 %v1118_v56, %v1114_v32  ;;  %v1120_v57 = vmul.f32 %v1118_v56, %v1116_v51  ;;  %v1122_v55 = vmul.f32 %v1121_v23, %v1115_v63  ;;  %v1123_v30 = vmul.f32 %v1121_v23, %v1117_v12 }
 0x200   : > { %v1191_v51 = vstv %s3318_s4  ;;  %v1194_v63 = vstv %s3322_s5  ;;  %vm1211_vm6 = vcmp.lt.s32.totalorder %v2435_v18, 109  ;;  %s3448_s4 = sld [smem:[#allocation3 + $0x26]] }
 0x201   : > { %v1124_v14 = vadd.f32 %v1122_v55, %v1119_v21  ;;  %v1125_v13 = vadd.f32 %v1123_v30, %v1120_v57  ;;  %s3460_s5 = sld [smem:[#allocation3 + $0x27]] }
 0x203   : > { %v1126_v9 = vsel %vm344_vm14, %v1124_v14, 0.0  ;;  %v1127_v6 = vsel %vm345_vm1, %v1125_v13, 0.0  ;;  %1417 = vrot.lane.b32.xlu1 %v2282_v43, %s2123_s30  ;;  %1415 = vrot.lane.b32.xlu0 %v2267_v40, %s2123_s30  ;;  %s3383_s30 = sld [smem:[#allocation3 + $0x24]] }
 0x204   : > { %v1128_v37 = vadd.f32 %v1126_v9, %v1103_v17  ;;  %v1129_v7 = vadd.f32 %v1127_v6, %v1104_v54  ;;  %1434 = vrot.lane.b32.xlu2 %v2269_v41, %s2124_s18 }
 0x205   : > { %v1133_v11 = vpop.permute.xlu1 %1132  ;;  %v1131_v33 = vpop.permute.xlu0 %1130 }
 0x206   : > { %v1139_v16 = vsel %vm1138_vm8, %v1131_v33, %v3254_v3  ;;  %v1141_v38 = vsel %vm1138_vm8, %v3254_v3, %v1131_v33  ;;  %v1185_v2 = vpop.permute.xlu2 %1184 }
 0x207   : > { %v1144_v15 = vmul.f32 %v1143_v49, %v1139_v16  ;;  %v1145_v48 = vmul.f32 %v1143_v49, %v1141_v38 }
 0x20b   : > { %1438 = vrot.lane.b32.xlu1 %v2267_v40, %s2124_s18  ;;  %1436 = vrot.lane.b32.xlu0 %v2284_v44, %s2124_s18 }
 0x20c   : > { %1440 = vrot.lane.b32.xlu2 %v2282_v43, %s2124_s18  ;;  %s1780_s18 = sld [smem:[#allocation3 + $0x25]] }
 0x20d   : > { %v1154_v59 = vpop.permute.xlu1 %1153  ;;  %v1137_v58 = vpop.permute.xlu0 %1136 }
 0x20e   : > { %v1140_v47 = vsel %vm1138_vm8, %v1133_v11, %v1137_v58  ;;  %v1142_v3 = vsel %vm1138_vm8, %v1137_v58, %v1133_v11  ;;  %v3313_v36 = vpop.permute.xlu2 %1207  ;;  %vm1055_vm8 = vcmp.lt.s32.totalorder %v2823_v26, 15 }
 0x20f   : > { %v1147_v35 = vmul.f32 %v1146_v19, %v1140_v47  ;;  %v1148_v52 = vmul.f32 %v1146_v19, %v1142_v3  ;;  %v1216_v3 = vstv %s1777_s7  ;;  %s1783_s7 = sld [smem:[#allocation3 + $0x28]] }
 0x211   : > { %v1149_v46 = vadd.f32 %v1147_v35, %v1144_v15  ;;  %v1150_v45 = vadd.f32 %v1148_v52, %v1145_v48  ;;  %v1219_v15 = vstv %s1826_s8  ;;  %s1832_s8 = sld [smem:[#allocation3 + $0x59]] }
 0x213   : > { %v1151_v50 = vadd.f32 %v1149_v46, %v1128_v37  ;;  %v1152_v20 = vadd.f32 %v1150_v45, %v1129_v7  ;;  %1461 = vrot.lane.b32.xlu1 %v2284_v44, %s2125_s20  ;;  %1459 = vrot.lane.b32.xlu0 %v2269_v41, %s2125_s20 }
 0x214   : > { %1463 = vrot.lane.b32.xlu2 %v2267_v40, %s2125_s20 }
 0x215   : > { %v1160_v39 = vpop.permute.xlu1 %1159  ;;  %v1158_v31 = vpop.permute.xlu0 %1157 }
 0x216   : > { %v1163_v60 = vsel %vm1161_vm0, %v3272_v24, %v1160_v39  ;;  %v1165_v53 = vsel %vm1161_vm0, %v1160_v39, %v3272_v24  ;;  %v1162_v28 = vsel %vm1161_vm0, %v1154_v59, %v1158_v31  ;;  %v1164_v27 = vsel %vm1161_vm0, %v1158_v31, %v1154_v59  ;;  %v3327_v25 = vpop.permute.xlu2 %1236 }
 0x217   : > { %v1170_v42 = vmul.f32 %v1169_v4, %v1163_v60  ;;  %v1171_v8 = vmul.f32 %v1169_v4, %v1165_v53  ;;  %v1167_v17 = vmul.f32 %v1166_v61, %v1162_v28  ;;  %v1168_v54 = vmul.f32 %v1166_v61, %v1164_v27 }
 0x218   : > { %vm1056_vm0 = vcmp.lt.s32.totalorder %v2857_v29, 15  ;;  %v1250_v27 = vstv %s3361_s23  ;;  %s3481_s23 = sld [smem:[#allocation3 + $0x2a]] }
 0x219   : > { %v1172_v56 = vadd.f32 %v1170_v42, %v1167_v17  ;;  %v1173_v23 = vadd.f32 %v1171_v8, %v1168_v54  ;;  %v1247_v8 = vstv %s3364_s24  ;;  %s3492_s24 = sld [smem:[#allocation3 + $0x2b]] }
 0x21b   : > { %v1174_v10 = vsel %vm346_vm3, %v1172_v56, 0.0  ;;  %v1175_v1 = vsel %vm347_vm4, %v1173_v23, 0.0  ;;  %1484 = vrot.lane.b32.xlu1 %v2269_v41, %s2126_s6  ;;  %1465 = vrot.lane.b32.xlu0 %v2282_v43, %s2125_s20  ;;  %s3446_s20 = sld [smem:[#allocation3 + $0x57]] }
 0x21c   : > { %v1176_v24 = vadd.f32 %v1174_v10, %v1151_v50  ;;  %v1177_v32 = vadd.f32 %v1175_v1, %v1152_v20  ;;  %1486 = vrot.lane.b32.xlu2 %v2284_v44, %s2126_s6 }
 0x21d   : > { %v1183_v12 = vpop.permute.xlu1 %1182  ;;  %v1181_v21 = vpop.permute.xlu0 %1180 }
 0x21e   : > { %v1187_v57 = vsel %vm1186_vm15, %v3286_v0, %v1183_v12  ;;  %v1189_v55 = vsel %vm1186_vm15, %v1183_v12, %v3286_v0  ;;  %v1188_v30 = vsel %vm1186_vm15, %v1181_v21, %v1185_v2  ;;  %v1190_v14 = vsel %vm1186_vm15, %v1185_v2, %v1181_v21  ;;  %v3341_v13 = vpop.permute.xlu2 %1257 }
 0x21f   : > { %v1192_v9 = vmul.f32 %v1191_v51, %v1187_v57  ;;  %v1193_v6 = vmul.f32 %v1191_v51, %v1189_v55  ;;  %v1195_v37 = vmul.f32 %v1194_v63, %v1188_v30  ;;  %v1196_v7 = vmul.f32 %v1194_v63, %v1190_v14 }
 0x220   : > { %vm1242_vm15 = vcmp.lt.s32.totalorder %v2435_v18, 99 }
 0x221   : > { %v1197_v11 = vadd.f32 %v1195_v37, %v1192_v9  ;;  %v1198_v33 = vadd.f32 %v1196_v7, %v1193_v6 }
 0x223   : > { %v1199_v16 = vsel %vm348_vm11, %v1197_v11, 0.0  ;;  %v1200_v38 = vsel %vm3634_vm10, %v1198_v33, 0.0  ;;  %1490 = vrot.lane.b32.xlu1 %v2282_v43, %s2126_s6  ;;  %1488 = vrot.lane.b32.xlu0 %v2267_v40, %s2126_s6  ;;  %vm1265_vm10 = vcmp.lt.s32.totalorder %v2435_v18, 98  ;;  %s1831_s6 = sld [smem:[#allocation3 + $0x58]] }
 0x224   : > { %v1201_v0 = vadd.f32 %v1199_v16, %v1176_v24  ;;  %v1202_v2 = vadd.f32 %v1200_v38, %v1177_v32  ;;  %1507 = vrot.lane.b32.xlu2 %v2269_v41, %s2127_s22 }
 0x225   : > { %v1206_v49 = vpop.permute.xlu1 %1205  ;;  %v1204_v19 = vpop.permute.xlu0 %1203 }
 0x226   : > { %v1212_v59 = vsel %vm1211_vm6, %v1204_v19, %v3313_v36  ;;  %v1214_v58 = vsel %vm1211_vm6, %v3313_v36, %v1204_v19  ;;  %v3357_v47 = vpop.permute.xlu2 %1263 }
 0x227   : > { %v1217_v45 = vmul.f32 %v1216_v3, %v1212_v59  ;;  %v1218_v50 = vmul.f32 %v1216_v3, %v1214_v58 }
 0x22b   : > { %1511 = vrot.lane.b32.xlu1 %v2267_v40, %s2127_s22  ;;  %1509 = vrot.lane.b32.xlu0 %v2284_v44, %s2127_s22 }
 0x22c   : > { %1513 = vrot.lane.b32.xlu2 %v2282_v43, %s2127_s22  ;;  %s3479_s22 = sld [smem:[#allocation3 + $0x5b]] }
 0x22d   : > { %v1235_v48 = vpop.permute.xlu1 %1234  ;;  %v1210_v35 = vpop.permute.xlu0 %1209 }
 0x22e   : > { %v1213_v52 = vsel %vm1211_vm6, %v1206_v49, %v1210_v35  ;;  %v1215_v36 = vsel %vm1211_vm6, %v1210_v35, %v1206_v49  ;;  %v3370_v46 = vpop.permute.xlu2 %1286  ;;  %vm1290_vm6 = vcmp.lt.s32.totalorder %v2435_v18, 97 }
 0x22f   : > { %v1220_v20 = vmul.f32 %v1219_v15, %v1213_v52  ;;  %v1221_v4 = vmul.f32 %v1219_v15, %v1215_v36 }
 0x231   : > { %v1222_v61 = vadd.f32 %v1220_v20, %v1217_v45  ;;  %v1223_v39 = vadd.f32 %v1221_v4, %v1218_v50  ;;  %v1295_v50 = vstv %s1780_s18  ;;  %v1298_v20 = vstv %s1829_s19  ;;  %s1788_s18 = sld [smem:[#allocation3 + $0x2d]] }
 0x232   : > { %s3518_s19 = sld [smem:[#allocation3 + $0x2e]] }
 0x233   : > { %v1224_v31 = vsel %vm350_vm2, %v1222_v61, 0.0  ;;  %v1225_v60 = vsel %vm351_vm5, %v1223_v39, 0.0  ;;  %1382 = vrot.lane.b32.xlu1 %v2284_v44, %s2128_s28  ;;  %1380 = vrot.lane.b32.xlu0 %v2269_v41, %s2128_s28 }
 0x234   : > { %v1226_v53 = vadd.f32 %v1224_v31, %v1201_v0  ;;  %v1227_v28 = vadd.f32 %v1225_v60, %v1202_v2  ;;  %1384 = vrot.lane.b32.xlu2 %v2267_v40, %s2128_s28 }
 0x235   : > { %v1241_v42 = vpop.permute.xlu1 %1240  ;;  %v1239_v17 = vpop.permute.xlu0 %1238 }
 0x236   : > { %v1228_v54 = vsel %vm1055_vm8, %v1226_v53, 0.0  ;;  %v1229_v56 = vsel %vm1056_vm0, %v1227_v28, 0.0  ;;  %v1244_v23 = vsel %vm1242_vm15, %v3327_v25, %v1241_v42  ;;  %v1246_v10 = vsel %vm1242_vm15, %v1241_v42, %v3327_v25  ;;  %v3401_v1 = vpop.permute.xlu2 %1309 }
 0x237   : > { %v3404_v24 = vadd.f32 %v1228_v54, %v3232_v5  ;;  %v3407_v32 = vadd.f32 %v1229_v56, %v3235_v62  ;;  %v1251_v51 = vmul.f32 %v1250_v27, %v1244_v23  ;;  %v1252_v63 = vmul.f32 %v1250_v27, %v1246_v10 }
 0x238   : > { %v1243_v12 = vsel %vm1242_vm15, %v1235_v48, %v1239_v17  ;;  %v1245_v21 = vsel %vm1242_vm15, %v1239_v17, %v1235_v48  ;;  %v1270_v5 = vstv %s3383_s30  ;;  %v1273_v62 = vstv %s3386_s14  ;;  %s1787_s30 = sld [smem:[#allocation3 + $0x2c]] }
 0x239   : > { %v1248_v57 = vmul.f32 %v1247_v8, %v1243_v12  ;;  %v1249_v25 = vmul.f32 %v1247_v8, %v1245_v21  ;;  %vm1315_vm8 = vcmp.lt.s32.totalorder %v2435_v18, 96  ;;  %v1323_v17 = vstv %s3446_s20  ;;  %s1836_s14 = sld [smem:[#allocation3 + $0x5d]] }
 0x23a   : > { %v1320_v54 = vstv %s3448_s4  ;;  %vm1338_vm0 = vcmp.lt.s32.totalorder %v2435_v18, 95  ;;  %vm1363_vm15 = vcmp.lt.s32.totalorder %v2435_v18, 94  ;;  %s1784_s20 = sld [smem:[#allocation3 + $0x29]] }
 0x23b   : > { %v1253_v55 = vadd.f32 %v1251_v51, %v1248_v57  ;;  %v1254_v30 = vadd.f32 %v1252_v63, %v1249_v25  ;;  %1532 = vrot.lane.b32.xlu1 %v2269_v41, %s2129_s17  ;;  %1386 = vrot.lane.b32.xlu0 %v2282_v43, %s2128_s28  ;;  %s1835_s28 = sld [smem:[#allocation3 + $0x5c]] }
 0x23c   : > { %1534 = vrot.lane.b32.xlu2 %v2284_v44, %s2129_s17  ;;  %s1833_s4 = sld [smem:[#allocation3 + $0x5a]] }
 0x23d   : > { %v1255_v14 = vsel %vm340_vm7, %v1253_v55, 0.0  ;;  %v1256_v9 = vsel %vm341_vm9, %v1254_v30, 0.0  ;;  %v1262_v6 = vpop.permute.xlu1 %1261  ;;  %v1260_v37 = vpop.permute.xlu0 %1259 }
 0x23e   : > { %v1266_v7 = vsel %vm1265_vm10, %v3341_v13, %v1262_v6  ;;  %v1268_v11 = vsel %vm1265_vm10, %v1262_v6, %v3341_v13  ;;  %v1267_v33 = vsel %vm1265_vm10, %v1260_v37, %v3357_v47  ;;  %v1269_v16 = vsel %vm1265_vm10, %v3357_v47, %v1260_v37  ;;  %v3428_v38 = vpop.permute.xlu2 %1330 }
 0x23f   : > { %v1271_v0 = vmul.f32 %v1270_v5, %v1266_v7  ;;  %v1272_v2 = vmul.f32 %v1270_v5, %v1268_v11  ;;  %v1274_v49 = vmul.f32 %v1273_v62, %v1267_v33  ;;  %v1275_v19 = vmul.f32 %v1273_v62, %v1269_v16 }
 0x240   : > { %v1343_v6 = vstv %s3460_s5  ;;  %v1346_v37 = vstv %s1831_s6  ;;  %vm3635_vm10 = vcmp.lt.s32.totalorder %v2502_v34, 14  ;;  %s3528_s5 = sld [smem:[#allocation3 + $0x60]] }
 0x241   : > { %v1276_v59 = vadd.f32 %v1274_v49, %v1271_v0  ;;  %v1277_v58 = vadd.f32 %v1275_v19, %v1272_v2  ;;  %s3530_s6 = sld [smem:[#allocation3 + $0x2f]] }
 0x243   : > { %v1278_v3 = vsel %vm342_vm12, %v1276_v59, 0.0  ;;  %v1279_v15 = vsel %vm343_vm13, %v1277_v58, 0.0  ;;  %1538 = vrot.lane.b32.xlu1 %v2282_v43, %s2129_s17  ;;  %1536 = vrot.lane.b32.xlu0 %v2267_v40, %s2129_s17  ;;  %s3511_s17 = sld [smem:[#allocation3 + $0x5e]] }
 0x244   : > { %v1280_v13 = vadd.f32 %v1278_v3, %v1255_v14  ;;  %v1281_v47 = vadd.f32 %v1279_v15, %v1256_v9  ;;  %1557 = vrot.lane.b32.xlu2 %v2269_v41, %s2130_s15 }
 0x245   : > { %v1285_v48 = vpop.permute.xlu1 %1284  ;;  %v1283_v35 = vpop.permute.xlu0 %1282 }
 0x246   : > { %v1291_v52 = vsel %vm1290_vm6, %v1283_v35, %v3370_v46  ;;  %v1293_v36 = vsel %vm1290_vm6, %v3370_v46, %v1283_v35  ;;  %v1337_v45 = vpop.permute.xlu2 %1336 }
 0x247   : > { %v1297_v39 = vmul.f32 %v1295_v50, %v1293_v36 }
 0x24b   : > { %1561 = vrot.lane.b32.xlu1 %v2267_v40, %s2130_s15  ;;  %1559 = vrot.lane.b32.xlu0 %v2284_v44, %s2130_s15  ;;  %v1296_v44 = vmul.f32 %v1295_v50, %v1291_v52  ;;  %v1368_v50 = vstv %s1783_s7  ;;  %s3542_s7 = sld [smem:[#allocation3 + $0x30]] }
 0x24c   : > { %1563 = vrot.lane.b32.xlu2 %v2282_v43, %s2130_s15  ;;  %s1838_s15 = sld [smem:[#allocation3 + $0x5f]] }
 0x24d   : > { %v1308_v41 = vpop.permute.xlu1 %1307  ;;  %v1289_v4 = vpop.permute.xlu0 %1288 }
 0x24e   : > { %v1292_v61 = vsel %vm1290_vm6, %v1285_v48, %v1289_v4  ;;  %v1294_v40 = vsel %vm1290_vm6, %v1289_v4, %v1285_v48  ;;  %v1360_v46 = vpop.permute.xlu2 %1359  ;;  %vm1419_vm6 = vcmp.lt.s32.totalorder %v2435_v18, 83 }
 0x24f   : > { %v1299_v31 = vmul.f32 %v1298_v20, %v1292_v61  ;;  %v1300_v60 = vmul.f32 %v1298_v20, %v1294_v40  ;;  %v1371_v20 = vstv %s1832_s8  ;;  %s3545_s8 = sld [smem:[#allocation3 + $0x61]] }
 0x251   : > { %v1301_v53 = vadd.f32 %v1299_v31, %v1296_v44  ;;  %v1302_v28 = vadd.f32 %v1300_v60, %v1297_v39 }
 0x253   : > { %v1303_v43 = vsel %vm344_vm14, %v1301_v53, 0.0  ;;  %v1304_v27 = vsel %vm345_vm1, %v1302_v28, 0.0 }
 0x254   : > { %v1305_v42 = vadd.f32 %v1303_v43, %v1280_v13  ;;  %v1306_v8 = vadd.f32 %v1304_v27, %v1281_v47 }
 0x255   : > { %v1314_v56 = vpop.permute.xlu1 %1313  ;;  %v1312_v23 = vpop.permute.xlu0 %1311 }
 0x256   : > { %v1317_v10 = vsel %vm1315_vm8, %v3401_v1, %v1314_v56  ;;  %v1319_v51 = vsel %vm1315_vm8, %v1314_v56, %v3401_v1  ;;  %v1316_v63 = vsel %vm1315_vm8, %v1308_v41, %v1312_v23  ;;  %v1318_v12 = vsel %vm1315_vm8, %v1312_v23, %v1308_v41  ;;  %v1414_v30 = vpop.permute.xlu2 %1413 }
 0x257   : > { %v1324_v21 = vmul.f32 %v1323_v17, %v1317_v10  ;;  %v1325_v57 = vmul.f32 %v1323_v17, %v1319_v51  ;;  %v1321_v25 = vmul.f32 %v1320_v54, %v1316_v63  ;;  %v1322_v55 = vmul.f32 %v1320_v54, %v1318_v12 }
 0x258   : > { %v1427_v17 = vstv %s3479_s22  ;;  %v1424_v54 = vstv %s3481_s23  ;;  %vm1442_vm8 = vcmp.lt.s32.totalorder %v2435_v18, 82  ;;  %s1849_s22 = sshll.u32 %s2167_s13, 3  ;;  %s175_s13 = scalar_lea.vmem [#allocation8], %s1742_s29 }
 0x259   : > { %v1326_v5 = vadd.f32 %v1324_v21, %v1321_v25  ;;  %v1327_v62 = vadd.f32 %v1325_v57, %v1322_v55  ;;  %s2030_s29 = scalar_lea.hbm %s3609_s2, 16 }
 0x25b   : > { %v1328_v14 = vadd.f32 %v1326_v5, %v1305_v42  ;;  %v1329_v9 = vadd.f32 %v1327_v62, %v1306_v8 }
 0x25d   : > { %v1335_v7 = vpop.permute.xlu1 %1334  ;;  %v1333_v11 = vpop.permute.xlu0 %1332 }
 0x25e   : > { %v1339_v33 = vsel %vm1338_vm0, %v3428_v38, %v1335_v7  ;;  %v1341_v1 = vsel %vm1338_vm0, %v1335_v7, %v3428_v38  ;;  %v1340_v16 = vsel %vm1338_vm0, %v1333_v11, %v1337_v45  ;;  %v1342_v0 = vsel %vm1338_vm0, %v1337_v45, %v1333_v11  ;;  %v1435_v15 = vpop.permute.xlu2 %1434  ;;  %vm3636_vm0 = vmmov %vm3635_vm10 }
 0x25f   : > { %v1344_v2 = vmul.f32 %v1343_v6, %v1339_v33  ;;  %v1345_v49 = vmul.f32 %v1343_v6, %v1341_v1  ;;  %v1347_v19 = vmul.f32 %v1346_v37, %v1340_v16  ;;  %v1348_v59 = vmul.f32 %v1346_v37, %v1342_v0 }
 0x260   : > { %v1447_v37 = vstv %s3492_s24  ;;  %v1450_v7 = vstv %s1835_s28  ;;  %s1646_s28 = scalar_lea.hbm %s3609_s2, %s1849_s22 }
 0x261   : > { %v1349_v58 = vadd.f32 %v1347_v19, %v1344_v2  ;;  %v1350_v3 = vadd.f32 %v1348_v59, %v1345_v49 }
 0x263   : > { %v1351_v13 = vsel %vm346_vm3, %v1349_v58, 0.0  ;;  %v1352_v47 = vsel %vm347_vm4, %v1350_v3, 0.0 }
 0x264   : > { %v1353_v48 = vadd.f32 %v1351_v13, %v1328_v14  ;;  %v1354_v38 = vadd.f32 %v1352_v47, %v1329_v9 }
 0x265   : > { %v1358_v35 = vpop.permute.xlu1 %1357  ;;  %v1356_v52 = vpop.permute.xlu0 %1355 }
 0x266   : > { %v1364_v36 = vsel %vm1363_vm15, %v1356_v52, %v1360_v46  ;;  %v1366_v45 = vsel %vm1363_vm15, %v1360_v46, %v1356_v52  ;;  %v1441_v41 = vpop.permute.xlu2 %1440 }
 0x267   : > { %v1369_v39 = vmul.f32 %v1368_v50, %v1364_v36  ;;  %v1370_v31 = vmul.f32 %v1368_v50, %v1366_v45  ;;  %v1472_v45 = vstv %s1787_s30  ;;  %s1648_s30 = sshll.u32 %s175_s13, 4  ;;  %s1649_s30 = int_to_ptr.vmem [resolvable:$true] %s1648_s30 }
 0x26d   : > { %v1412_v4 = vpop.permute.xlu1 %1411  ;;  %v1362_v61 = vpop.permute.xlu0 %1361 }
 0x26e   : > { %v1365_v40 = vsel %vm1363_vm15, %v1358_v35, %v1362_v61  ;;  %v1367_v44 = vsel %vm1363_vm15, %v1362_v61, %v1358_v35  ;;  %v1464_v21 = vpop.permute.xlu2 %1463  ;;  %vm1410_vm15 = vcmp.lt.s32.totalorder %v2857_v29, 13 }
 0x26f   : > { %v1372_v46 = vmul.f32 %v1371_v20, %v1365_v40  ;;  %v1373_v60 = vmul.f32 %v1371_v20, %v1367_v44 }
 0x271   : > { %v1374_v53 = vadd.f32 %v1372_v46, %v1369_v39  ;;  %v1375_v28 = vadd.f32 %v1373_v60, %v1370_v31 }
 0x273   : > { %v1376_v43 = vsel %vm348_vm11, %v1374_v53, 0.0  ;;  %v1377_v27 = vsel %vm3635_vm10, %v1375_v28, 0.0 }
 0x274   : > { %v3494_v42 = vadd.f32 %v1376_v43, %v1353_v48  ;;  %v3496_v8 = vadd.f32 %v1377_v27, %v1354_v38 }
 0x275   : > { %v1418_v56 = vpop.permute.xlu1 %1417  ;;  %v1416_v23 = vpop.permute.xlu0 %1415 }
 0x276   : > { %v1421_v10 = vsel %vm1419_vm6, %v1414_v30, %v1418_v56  ;;  %v1423_v51 = vsel %vm1419_vm6, %v1418_v56, %v1414_v30  ;;  %v1420_v63 = vsel %vm1419_vm6, %v1412_v4, %v1416_v23  ;;  %v1422_v12 = vsel %vm1419_vm6, %v1416_v23, %v1412_v4  ;;  %v1487_v58 = vpop.permute.xlu2 %1486 }
 0x277   : > { %v1428_v57 = vmul.f32 %v1427_v17, %v1421_v10  ;;  %v1429_v25 = vmul.f32 %v1427_v17, %v1423_v51  ;;  %v1425_v55 = vmul.f32 %v1424_v54, %v1420_v63  ;;  %v1426_v5 = vmul.f32 %v1424_v54, %v1422_v12 }
 0x278   : > { %v1500_v56 = vstv %s3511_s17  ;;  %v1497_v23 = vstv %s1788_s18  ;;  %s1635_s17 = scalar_lea.sflag [#allocation5], %s2243_s27 }
 0x279   : > { %v1430_v62 = vadd.f32 %v1428_v57, %v1425_v55  ;;  %v1431_v14 = vadd.f32 %v1429_v25, %v1426_v5 }
 0x27b   : > { %v1432_v9 = vsel %vm340_vm7, %v1430_v62, 0.0  ;;  %v1433_v6 = vsel %vm341_vm9, %v1431_v14, 0.0  ;;  %vm1467_vm7 = vcmp.lt.s32.totalorder %v2435_v18, 81  ;;  %vm1492_vm9 = vcmp.lt.s32.totalorder %v2435_v18, 80 }
 0x27d   : > { %v1439_v30 = vpop.permute.xlu1 %1438  ;;  %v1437_v11 = vpop.permute.xlu0 %1436 }
 0x27e   : > { %v1443_v33 = vsel %vm1442_vm8, %v1435_v15, %v1439_v30  ;;  %v1445_v1 = vsel %vm1442_vm8, %v1439_v30, %v1435_v15  ;;  %v1444_v16 = vsel %vm1442_vm8, %v1437_v11, %v1441_v41  ;;  %v1446_v0 = vsel %vm1442_vm8, %v1441_v41, %v1437_v11  ;;  %v1508_v36 = vpop.permute.xlu2 %1507 }
 0x27f   : > { %v1448_v2 = vmul.f32 %v1447_v37, %v1443_v33  ;;  %v1449_v49 = vmul.f32 %v1447_v37, %v1445_v1  ;;  %v1451_v19 = vmul.f32 %v1450_v7, %v1444_v16  ;;  %v1452_v59 = vmul.f32 %v1450_v7, %v1446_v0 }
 0x280   : > { %v1475_v41 = vstv %s1836_s14  ;;  %v1520_v30 = vstv %s3518_s19  ;;  %v1523_v11 = vstv %s1838_s15  ;;  %s1650_s14 = sshll.u32 %s1646_s28, 4  ;;  %s1651_s14 = int_to_ptr.hbm [resolvable:$true] %s1650_s14 }
 0x281   : > { %v1453_v3 = vadd.f32 %v1451_v19, %v1448_v2  ;;  %v1454_v13 = vadd.f32 %v1452_v59, %v1449_v49  ;;  %s2024_s18 = sshra.s32 %s1651_s14, 4  ;;  %s2025_s18 = int_to_ptr.hbm [resolvable:$true] %s2024_s18 }
 0x282   : > { %s2026_s19 = scalar_lea.hbm %s2025_s18, 8  ;;  %p2031_p9 = scmp.lt.s32.totalorder %s2025_s18, %s3609_s2 }
 0x283   : > { %v1455_v47 = vsel %vm342_vm12, %v1453_v3, 0.0  ;;  %v1456_v48 = vsel %vm343_vm13, %v1454_v13, 0.0  ;;  %vm1515_vm12 = vcmp.lt.s32.totalorder %v2435_v18, 79  ;;  %vm1388_vm13 = vcmp.lt.s32.totalorder %v2435_v18, 93  ;;  %p2027_p1 = scmp.ne.s32.totalorder %s2025_s18, %s2026_s19  ;;  %p2032_p10 = scmp.lt.s32.totalorder %s2030_s29, %s2026_s19 }
 0x284   : > { %v1457_v38 = vadd.f32 %v1455_v47, %v1432_v9  ;;  %v1458_v35 = vadd.f32 %v1456_v48, %v1433_v6 }
 0x285   : > { %v1462_v15 = vpop.permute.xlu1 %1461  ;;  %v1460_v52 = vpop.permute.xlu0 %1459  ;;  %p2028_p4 = pnand %p2027_p1, %p2212_p3  ;;  %p2033_p2 = por %p2032_p10, %p2031_p9 }
 0x286   : > { %v1468_v50 = vsel %vm1467_vm7, %v1460_v52, %v1464_v21  ;;  %v1470_v20 = vsel %vm1467_vm7, %v1464_v21, %v1460_v52  ;;  %v1514_v10 = vpop.permute.xlu2 %1513 }
 0x287   : > { %v1473_v39 = vmul.f32 %v1472_v45, %v1468_v50  ;;  %v1474_v31 = vmul.f32 %v1472_v45, %v1470_v20  ;;  %v1393_v20 = vstv %s1784_s20  ;;  %p2029_p8 = pneg %p2028_p4 }
 0x289   : > { %p2034_p11 = pnand %p2033_p2, %p2029_p8 }
 0x28d   : > { %v1485_v4 = vpop.permute.xlu1 %1484  ;;  %v1466_v61 = vpop.permute.xlu0 %1465 }
 0x28e   : > { %v1469_v40 = vsel %vm1467_vm7, %v1462_v15, %v1466_v61  ;;  %v1471_v44 = vsel %vm1467_vm7, %v1466_v61, %v1462_v15  ;;  %v1385_v19 = vpop.permute.xlu2 %1384  ;;  %v1396_v61 = vstv %s1833_s4 }
 0x28f   : > { %v1476_v46 = vmul.f32 %v1475_v41, %v1469_v40  ;;  %v1477_v60 = vmul.f32 %v1475_v41, %v1471_v44 }
 0x291   : > { %v1478_v53 = vadd.f32 %v1476_v46, %v1473_v39  ;;  %v1479_v28 = vadd.f32 %v1477_v60, %v1474_v31 }
 0x293   : > { %v1480_v43 = vsel %vm344_vm14, %v1478_v53, 0.0  ;;  %v1481_v27 = vsel %vm345_vm1, %v1479_v28, 0.0  ;;  %vm1232_vm14 = vcmp.lt.s32.totalorder %v2823_v26, 14  ;;  %vm1233_vm1 = vcmp.lt.s32.totalorder %v2857_v29, 14 }
 0x294   : > { %v1482_v17 = vadd.f32 %v1480_v43, %v1457_v38  ;;  %v1483_v54 = vadd.f32 %v1481_v27, %v1458_v35 }
 0x295   : > { %v1491_v51 = vpop.permute.xlu1 %1490  ;;  %v1489_v63 = vpop.permute.xlu0 %1488 }
 0x296   : > { %v1494_v12 = vsel %vm1492_vm9, %v1487_v58, %v1491_v51  ;;  %v1496_v21 = vsel %vm1492_vm9, %v1491_v51, %v1487_v58  ;;  %v1493_v57 = vsel %vm1492_vm9, %v1485_v4, %v1489_v63  ;;  %v1495_v25 = vsel %vm1492_vm9, %v1489_v63, %v1485_v4  ;;  %v1535_v50 = vpop.permute.xlu2 %1534 }
 0x297   : > { %v1501_v55 = vmul.f32 %v1500_v56, %v1494_v12  ;;  %v1502_v5 = vmul.f32 %v1500_v56, %v1496_v21  ;;  %v1498_v62 = vmul.f32 %v1497_v23, %v1493_v57  ;;  %v1499_v14 = vmul.f32 %v1497_v23, %v1495_v25 }
 0x298   : > { %v1548_v51 = vstv %s3528_s5  ;;  %v1545_v12 = vstv %s3530_s6 }
 0x299   : > { %v1503_v9 = vadd.f32 %v1501_v55, %v1498_v62  ;;  %v1504_v6 = vadd.f32 %v1502_v5, %v1499_v14 }
 0x29b   : > { %v1505_v37 = vadd.f32 %v1503_v9, %v1482_v17  ;;  %v1506_v7 = vadd.f32 %v1504_v6, %v1483_v54 }
 0x29d   : > { %v1512_v33 = vpop.permute.xlu1 %1511  ;;  %v1510_v1 = vpop.permute.xlu0 %1509 }
 0x29e   : > { %v1516_v16 = vsel %vm1515_vm12, %v1508_v36, %v1512_v33  ;;  %v1518_v0 = vsel %vm1515_vm12, %v1512_v33, %v1508_v36  ;;  %v1517_v2 = vsel %vm1515_vm12, %v1510_v1, %v1514_v10  ;;  %v1519_v49 = vsel %vm1515_vm12, %v1514_v10, %v1510_v1  ;;  %v1558_v17 = vpop.permute.xlu2 %1557 }
 0x29f   : > { %v1521_v59 = vmul.f32 %v1520_v30, %v1516_v16  ;;  %v1522_v58 = vmul.f32 %v1520_v30, %v1518_v0  ;;  %v1524_v3 = vmul.f32 %v1523_v11, %v1517_v2  ;;  %v1525_v13 = vmul.f32 %v1523_v11, %v1519_v49 }
 0x2a0   : > { %v1570_v33 = vstv %s3542_s7  ;;  %v1573_v0 = vstv %s3545_s8 }
 0x2a1   : > { %v1526_v47 = vadd.f32 %v1524_v3, %v1521_v59  ;;  %v1527_v48 = vadd.f32 %v1525_v13, %v1522_v58 }
 0x2a3   : > { %v1528_v38 = vsel %vm346_vm3, %v1526_v47, 0.0  ;;  %v1529_v35 = vsel %vm347_vm4, %v1527_v48, 0.0  ;;  %vm1540_vm3 = vcmp.lt.s32.totalorder %v2435_v18, 78  ;;  %vm1565_vm4 = vcmp.lt.s32.totalorder %v2435_v18, 77 }
 0x2a4   : > { %v1530_v15 = vadd.f32 %v1528_v38, %v1505_v37  ;;  %v1531_v52 = vadd.f32 %v1529_v35, %v1506_v7 }
 0x2a5   : > { %v1383_v36 = vpop.permute.xlu1 %1382  ;;  %v1381_v45 = vpop.permute.xlu0 %1380 }
 0x2a6   : > { %v1389_v41 = vsel %vm1388_vm13, %v1381_v45, %v1385_v19  ;;  %v1391_v4 = vsel %vm1388_vm13, %v1385_v19, %v1381_v45  ;;  %v1564_v1 = vpop.permute.xlu2 %1563 }
 0x2a7   : > { %v1394_v46 = vmul.f32 %v1393_v20, %v1389_v41  ;;  %v1395_v60 = vmul.f32 %v1393_v20, %v1391_v4 }
 0x2ad   : > { %v1533_v40 = vpop.permute.xlu1 %1532  ;;  %v1387_v44 = vpop.permute.xlu0 %1386 }
 0x2ae   : > { %v1390_v39 = vsel %vm1388_vm13, %v1383_v36, %v1387_v44  ;;  %v1392_v31 = vsel %vm1388_vm13, %v1387_v44, %v1383_v36  ;;  %vm3637_vm13 = vcmask 1043456  }
 0x2af   : > { %v1397_v53 = vmul.f32 %v1396_v61, %v1390_v39  ;;  %v1398_v28 = vmul.f32 %v1396_v61, %v1392_v31 }
 0x2b1   : > { %v1399_v43 = vadd.f32 %v1397_v53, %v1394_v46  ;;  %v1400_v27 = vadd.f32 %v1398_v28, %v1395_v60 }
 0x2b3   : > { %v1401_v54 = vsel %vm350_vm2, %v1399_v43, 0.0  ;;  %v1402_v56 = vsel %vm351_vm5, %v1400_v27, 0.0 }
 0x2b4   : > { %v1403_v23 = vadd.f32 %v1401_v54, %v3494_v42  ;;  %v1404_v10 = vadd.f32 %v1402_v56, %v3496_v8 }
 0x2b5   : > { %v1539_v63 = vpop.permute.xlu1 %1538  ;;  %v1537_v21 = vpop.permute.xlu0 %1536 }
 0x2b6   : > { %v1405_v57 = vsel %vm1232_vm14, %v1403_v23, 0.0  ;;  %v1406_v25 = vsel %vm1233_vm1, %v1404_v10, 0.0  ;;  %v1542_v55 = vsel %vm1540_vm3, %v1535_v50, %v1539_v63  ;;  %v1544_v5 = vsel %vm1540_vm3, %v1539_v63, %v1535_v50 }
 0x2b7   : > { %v1407_v42 = vadd.f32 %v1405_v57, %v3404_v24  ;;  %v1408_v8 = vadd.f32 %v1406_v25, %v3407_v32  ;;  %v1549_v62 = vmul.f32 %v1548_v51, %v1542_v55  ;;  %v1550_v14 = vmul.f32 %v1548_v51, %v1544_v5 }
 0x2b8   : > { %v1541_v9 = vsel %vm1540_vm3, %v1533_v40, %v1537_v21  ;;  %v1543_v6 = vsel %vm1540_vm3, %v1537_v21, %v1533_v40 }
 0x2b9   : > { %v1546_v37 = vmul.f32 %v1545_v12, %v1541_v9  ;;  %v1547_v7 = vmul.f32 %v1545_v12, %v1543_v6 }
 0x2bb   : > { %v1551_v30 = vadd.f32 %v1549_v62, %v1546_v37  ;;  %v1552_v11 = vadd.f32 %v1550_v14, %v1547_v7 }
 0x2bd   : > { %v1553_v24 = vsel %vm348_vm11, %v1551_v30, 0.0  ;;  %v1554_v32 = vsel %vm3636_vm0, %v1552_v11, 0.0  ;;  %v1562_v16 = vpop.permute.xlu1 %1561  ;;  %v1560_v2 = vpop.permute.xlu0 %1559  ;;  %vm1409_vm11 = vcmp.lt.s32.totalorder %v2823_v26, 13 }
 0x2be   : > { %v1555_v49 = vadd.f32 %v1553_v24, %v1530_v15  ;;  %v1556_v19 = vadd.f32 %v1554_v32, %v1531_v52  ;;  %v1566_v59 = vsel %vm1565_vm4, %v1558_v17, %v1562_v16  ;;  %v1568_v58 = vsel %vm1565_vm4, %v1562_v16, %v1558_v17 }
 0x2bf   : > { %v1571_v3 = vmul.f32 %v1570_v33, %v1566_v59  ;;  %v1572_v13 = vmul.f32 %v1570_v33, %v1568_v58  ;;  %v1567_v47 = vsel %vm1565_vm4, %v1560_v2, %v1564_v1  ;;  %v1569_v48 = vsel %vm1565_vm4, %v1564_v1, %v1560_v2 }
 0x2c0   : > { %v1574_v18 = vmul.f32 %v1573_v0, %v1567_v47  ;;  %v1575_v38 = vmul.f32 %v1573_v0, %v1569_v48 }
 0x2c2   : > { %v1576_v35 = vadd.f32 %v1574_v18, %v1571_v3  ;;  %v1577_v36 = vadd.f32 %v1575_v38, %v1572_v13 }
 0x2c4   : > { %v1578_v45 = vsel %vm350_vm2, %v1576_v35, 0.0  ;;  %v1579_v15 = vsel %vm351_vm5, %v1577_v36, 0.0 }
 0x2c5   : > { %v1580_v52 = vadd.f32 %v1578_v45, %v1555_v49  ;;  %v1581_v50 = vadd.f32 %v1579_v15, %v1556_v19 }
 0x2c7   : > { %v1582_v20 = vsel %vm1409_vm11, %v1580_v52, 0.0  ;;  %v1583_v41 = vsel %vm1410_vm15, %v1581_v50, 0.0 }
 0x2c8   : > { %v1584_v4 = vadd.f32 %v1582_v20, %v1407_v42  ;;  %v1585_v61 = vadd.f32 %v1583_v41, %v1408_v8  ;;  %v1624_v42 = vld [vmem:[%s2249_s3] sm:$0xff] }
 0x2ca   : > { %v1841_v40 = vmul.f32 -1.442695, %v1584_v4  ;;  %v1842_v44 = vmul.f32 -1.442695, %v1585_v61 }
 0x2cc   : > { %1955 = vpow2.f32 %v1841_v40 }
 0x2cd   : > { %1957 = vpow2.f32 %v1842_v44 }
 0x2d2   : > { %v1956_v39 = vpop.eup %1955 }
 0x2d3   : > { %v1958_v26 = vpop.eup %1957  ;;  %v1592_v31 = vadd.f32 1.0, %v1956_v39 }
 0x2d4   : > { %v1593_v29 = vadd.f32 1.0, %v1958_v26 }
 0x2d5   : > { %1959 = vrcp.f32 %v1592_v31  ;;  %v1605_v27 = vand.u32 2147483648, %v1592_v31  ;;  %v1603_v54 = vand.u32 2147483647, %v1592_v31  ;;  %vm1599_vm10 = vweird.f32 %v1592_v31 }
 0x2d6   : > { %1961 = vrcp.f32 %v1593_v29  ;;  %v1620_v17 = vand.u32 2147483648, %v1593_v29  ;;  %v1618_v23 = vand.u32 2147483647, %v1593_v29  ;;  %vm1614_vm8 = vweird.f32 %v1593_v29 }
 0x2d7   : > { %v1606_v12 = vor.u32 1.1754944e-38, %v1605_v27  ;;  %vm1604_vm9 = vcmp.eq.f32.partialorder %v1603_v54, 8.507059e+37 }
 0x2d8   : > { %v1621_v21 = vor.u32 1.1754944e-38, %v1620_v17  ;;  %vm1619_vm12 = vcmp.eq.f32.partialorder %v1618_v23, 8.507059e+37 }
 0x2db   : > { %v1960_v22 = vpop.eup %1959 }
 0x2dc   : > { %v1962_v46 = vpop.eup %1961  ;;  %v1595_v34 = vmul.f32 %v1960_v22, %v1592_v31  ;;  %vm1600_vm2 = vweird.f32 %v1960_v22 }
 0x2dd   : > { %v1610_v60 = vmul.f32 %v1962_v46, %v1593_v29  ;;  %vm1615_vm5 = vweird.f32 %v1962_v46  ;;  %vm1601_vm6 = vmor %vm1599_vm10, %vm1600_vm2 }
 0x2de   : > { %v1596_v53 = vsub.f32 1.0, %v1595_v34  ;;  %vm1616_vm7 = vmor %vm1614_vm8, %vm1615_vm5 }
 0x2df   : > { %v1611_v28 = vsub.f32 1.0, %v1610_v60 }
 0x2e0   : > { %v1597_v43 = vmul.f32 %v1960_v22, %v1596_v53 }
 0x2e1   : > { %v1612_v56 = vmul.f32 %v1962_v46, %v1611_v28 }
 0x2e2   : > { %v1598_v10 = vadd.f32 %v1960_v22, %v1597_v43 }
 0x2e3   : > { %v1613_v51 = vadd.f32 %v1962_v46, %v1612_v56 }
 0x2e4   : > { %v1602_v63 = vsel %vm1601_vm6, %v1960_v22, %v1598_v10 }
 0x2e5   : > { %v1617_v57 = vsel %vm1616_vm7, %v1962_v46, %v1613_v51  ;;  %v1607_v25 = vsel %vm1604_vm9, %v1606_v12, %v1602_v63 }
 0x2e6   : > { %v1622_v55 = vsel %vm1619_vm12, %v1621_v21, %v1617_v57  ;;  %v1625_v8 = vperm.slane %v1607_v25, 0 }
 0x2e7   : > { %v1626_v5 = vperm.slane %v1622_v55, 0 }
 0x2e9   : > { %v1629_v62 = vrot.slane %v1626_v5, 4 }
 0x2eb   : > { %v1630_v14 = vsel %vm3637_vm13, %v1625_v8, %v1629_v62 }
 0x2ec   : > { %v1632_v9 = vmul.f32 %v1630_v14, %v1624_v42 }
 0x2ee   : > { %1633 = vst [vmem:[%s175_s13] sm:$0xff] %v1632_v9 }
 0x2ef   : > { %2037 = shalt.err (!%p2034_p11)
}
 0x2f0   : > { %1856 = dma.vmem_to_hbm [thread:$0]  (%p2212_p3), %s1649_s30, 128, %s1651_s14, %s1635_s17  }
 0x2f1 PF: > { %s1662_s27 = sand.u32 1, %s2068_s9   ;;  %p3638_p12 = scmp.ge.s32.totalorder %s2080_s12, 2 }
 0x2f2   : > { %s1663_s5 = scalar_lea.sflag [#allocation5], %s1662_s27 }
 0x2f3   : > { %p1867_p13 = pnand %p3638_p12, %p2181_p6 }
 0x2f5   : > { %p1868_p0 = pneg %p1867_p13 }
 0x2f7   : > { %2063 = dma.done.wait (%p1868_p0), %s1663_s5, 128  }
 0x2f8   : > { %2065 = vsyncadd (%p1868_p0), %s1663_s5, 4294967168  ;;  %p16_p5 = scmp.ge.s32.totalorder %s2197_s21, 4   ;;  %s3639_s9 = smov %s2072_s10 }
 0x2f9   : > { %s3640_s10 = smov %s2076_s11  ;;  %s3641_s11 = smov %s2207_s25 }
 0x2fa   : > { %s3642_s12 = smov %s2197_s21  ;;  %18 = sbr.rel (!%p16_p5) target bundleno = 6 (0x6), region = 79 }
 0x2ff   :  { %1669 = vsyncpa [#allocation4], 1 }
 0x300   :  { %1671 = vsyncpa [#allocation4 + $0x1], 1 }
 0x301   :  { %1672 = vsyncpa [#allocation5], 1 }
 0x302   :  { %1674 = vsyncpa [#allocation5 + $0x1], 1 }
 0x303   :  { %1675 = vsyncpa [#allocation6], 1 }
 0x304   :  { %1677 = vsyncpa [#allocation6 + $0x1], 1 }

</bundles_post_ra>
